<compile_context>
chip_gen: v5e
topology: v5e:2x2
jax: 0.10.0
libtpu: 0.0.40
codegen_flags: <defaults>
</compile_context>

<pallas_src>
import numpy as np
import jax
import jax.numpy as jnp
from jax.experimental import pallas as pl
from jax.experimental.pallas import tpu as pltpu


# Matmul operand dtype.  f32 keeps the kernel bit-close to the reference on
# every TPU generation (v5e has no bf16 VPU/EUP path); flip to jnp.bfloat16
# on v6e/v7x for full-rate MXU + half the im2col bytes once validated.
_MM_DTYPE = jnp.float32


def _softplus(x):
    # torch.nn.functional.softplus (beta=1, threshold=20), log1p form.
    return jnp.where(x > 20.0, x, jnp.log1p(jnp.exp(jnp.minimum(x, 20.0))))


# ----------------------------- Pallas kernel ------------------------------ #

def _make_skip_dfd_kernel(h, w, cin, convs1, convs2):
    """Builds the fused SkipDoubleDirFullDil kernel for one (C, H*W) sample."""
    nd1, nf1, ndd1, nfd1 = convs1
    nd2, nf2, ndd2, nfd2 = convs2
    cm1 = 2 * nd1 + nf1            # softplus / conv2 width, block 1
    cd1 = 2 * ndd1 + nfd1          # dilated branch width, block 1
    c1 = cin + cd1 + cm1           # channels of x1 (skip #1)
    cm2 = 2 * nd2 + nf2
    cd2 = 2 * ndd2 + nfd2
    ctot = c1 + cd2 + cm2          # channels of the final output

    # (Cout, Cin, dilation) of the 6 fused dense 3x3 convs, in wpack order.
    conv_meta = ((cd1, cin, 2), (cm1, cin, 1), (cm1, cm1, 1),
                 (cd2, c1, 2), (cm2, c1, 1), (cm2, cm2, 1))

    def kernel(x_ref, w_ref, o_ref):

        def conv(xf, idx, hin):
            """Dense 3x3 conv (dilation dil) of a flat planar (Cin, hin*w)
            tensor as ONE matmul.  Row stride is the physical width `w`; only
            the leading `valid_width` columns of every row are meaningful
            (garbage columns only ever feed garbage columns)."""
            co, ci, dil = conv_meta[idx]
            assert xf.shape[0] == ci
            kk = 9 * ci + 1
            lout = (hin - 2 * dil) * w
            wmat = w_ref[idx][:co, :kk].astype(_MM_DTYPE)        # (co, kk)
            # 2*dil zero-pad so every tap is an in-bounds lane-offset slice.
            xp = jnp.concatenate(
                [xf, jnp.zeros((ci, 2 * dil), xf.dtype)], axis=1)
            taps = []
            for kh in range(3):
                for kw in range(3):
                    s = (kh * w + kw) * dil                      # lane shift
                    taps.append(jax.lax.slice(xp, (0, s), (ci, s + lout)))
            taps.append(jnp.ones((1, lout), xf.dtype))           # bias row
            cols = jnp.concatenate(taps, axis=0)                 # (kk, lout)
            return jnp.dot(wmat, cols.astype(_MM_DTYPE),
                           preferred_element_type=jnp.float32,
                           precision=jax.lax.Precision.HIGHEST)

        xf = x_ref[0].astype(jnp.float32)                        # (cin, h*w)

        # ---- DirFullDil #1 ----
        od1 = conv(xf, 0, h)                                     # (cd1, (h-4)*w)
        m1 = _softplus(conv(xf, 1, h))                           # (cm1, (h-2)*w)
        o21 = conv(m1, 2, h - 2)                                 # (cm1, (h-4)*w)
        # skip #1: crop x[2:-2, 2:-2]  ==  flat lane shift by 2*w + 2.
        xc = jax.lax.slice(xf, (0, 2 * w + 2),
                           (cin, 2 * w + 2 + (h - 4) * w))
        x1 = jnp.concatenate([xc, od1, o21], axis=0)             # (c1, (h-4)*w)

        # ---- DirFullDil #2 ----
        h1 = h - 4
        od2 = conv(x1, 3, h1)                                    # (cd2, (h-8)*w)
        m2 = _softplus(conv(x1, 4, h1))                          # (cm2, (h-6)*w)
        o22 = conv(m2, 5, h1 - 2)                                # (cm2, (h-8)*w)
        x1c = jax.lax.slice(x1, (0, 2 * w + 2),
                            (c1, 2 * w + 2 + (h - 8) * w))
        out_full = jnp.concatenate([x1c, od2, o22], axis=0)      # (ctot, (h-8)*w)

        # Compact the garbage right-edge columns (row stride w -> w-8) and
        # store one lane-dense slab.
        wo = w - 8
        rows = [jax.lax.slice(out_full, (0, y * w), (ctot, y * w + wo))
                for y in range(h - 8)]
        o_ref[0] = jnp.concatenate(rows, axis=1).astype(o_ref.dtype)

    return kernel, ctot


# ------------------------------ public forward ----------------------------- #

def skip_double_dir_full_dil(x_nchw, wpack, convs1, convs2):
    """Forward pass of SkipDoubleDirFullDil: one fused pallas_call.

    x_nchw : (N, C, H, W);  wpack : output of pack_skip_params.
    Returns (N, Ctot, H-8, W-8) in NCHW.  Both wrapper reshapes only merge /
    split trailing dims of contiguous arrays -> no HBM transpose passes.
    """
    n, c, h, w = x_nchw.shape
    kernel, ctot = _make_skip_dfd_kernel(h, w, c, convs1, convs2)
    ho, wo = h - 8, w - 8
    x_flat = x_nchw.reshape(n, c, h * w)

    out_flat = pl.pallas_call(
        kernel,
        out_shape=jax.ShapeDtypeStruct((n, ctot, ho * wo), jnp.float32),
        grid=(n,),
        in_specs=[pl.BlockSpec((1, c, h * w), lambda i: (i, 0, 0)),
                  pl.BlockSpec(wpack.shape, lambda i: (0, 0, 0))],
        out_specs=pl.BlockSpec((1, ctot, ho * wo), lambda i: (i, 0, 0)),
        compiler_params=pltpu.CompilerParams(
            # Batch axis is parallel -> both v7x TensorCores get work; raise
            # the scoped-VMEM cap explicitly (v5e defaults to only 16 MiB).
            dimension_semantics=("parallel",),
            vmem_limit_bytes=64 * 1024 * 1024),
    )(x_flat, wpack)

    return out_flat.reshape(n, ctot, ho, wo)


# ------------------------ parameter setup (host side) ---------------------- #

_CONV_NAMES = ("h1", "v1", "f1", "h2", "v2", "f2", "hd", "vd", "fd")


def init_dfd_params(key, c_in, n_dir, n_full, n_dd, n_fd):
    """Deterministic init of the 9 Conv2d layers of one DirFullDil (HWIO)."""
    c_mid = 2 * n_dir + n_full
    shapes = {
        "h1": (1, 3, c_in, n_dir), "v1": (3, 1, c_in, n_dir),
        "f1": (3, 3, c_in, n_full),
        "h2": (1, 3, c_mid, n_dir), "v2": (3, 1, c_mid, n_dir),
        "f2": (3, 3, c_mid, n_full),
        "hd": (1, 3, c_in, n_dd), "vd": (3, 1, c_in, n_dd),
        "fd": (3, 3, c_in, n_fd),
    }
    keys = jax.random.split(key, 2 * len(shapes))
    params = {}
    for i, name in enumerate(_CONV_NAMES):
        s = shapes[name]
        bound = 1.0 / float(np.sqrt(s[0] * s[1] * s[2]))
        wgt = jax.random.uniform(keys[2 * i], s, jnp.float32, -bound, bound)
        b = jax.random.uniform(keys[2 * i + 1], (1, s[3]), jnp.float32,
                               -bound, bound)
        params[name] = (wgt, b)
    return params


def fuse_dfd_params(p):
    """Pack the 9 small convs of a DirFullDil into 3 dense 3x3 convs (exact)."""
    def fuse3(wh, wv, wf):
        nh, nv, nf = wh.shape[-1], wv.shape[-1], wf.shape[-1]
        ci = wh.shape[2]
        wden = jnp.zeros((3, 3, ci, nh + nv + nf), jnp.float32)
        wden = wden.at[1, :, :, :nh].set(wh[0])            # (1,3) -> centre row
        wden = wden.at[:, 1, :, nh:nh + nv].set(wv[:, 0])  # (3,1) -> centre col
        wden = wden.at[:, :, :, nh + nv:].set(wf)          # full 3x3
        return wden

    wd = fuse3(p["hd"][0], p["vd"][0], p["fd"][0])
    bd = jnp.concatenate([p["hd"][1], p["vd"][1], p["fd"][1]], axis=-1)
    w1 = fuse3(p["h1"][0], p["v1"][0], p["f1"][0])
    b1 = jnp.concatenate([p["h1"][1], p["v1"][1], p["f1"][1]], axis=-1)
    w2 = fuse3(p["h2"][0], p["v2"][0], p["f2"][0])
    b2 = jnp.concatenate([p["h2"][1], p["v2"][1], p["f2"][1]], axis=-1)
    return wd, bd, w1, b1, w2, b2


def pack_skip_params(p1, p2):
    """One-time host-side packing: fuse to dense 3x3 convs, flatten each to
    the im2col layout (Cout, 9*Cin) with columns ordered (kh, kw, cin), fold
    the bias in as a trailing column, and stack all 6 convs into a single
    zero-padded (6, maxCout, maxK) tensor (one kernel operand)."""
    wd1, bd1, w11, b11, w21, b21 = fuse_dfd_params(p1)
    wd2, bd2, w12, b12, w22, b22 = fuse_dfd_params(p2)

    fused = []
    for wden, b in ((wd1, bd1), (w11, b11), (w21, b21),
                    (wd2, bd2), (w12, b12), (w22, b22)):
        ci, co = wden.shape[2], wden.shape[3]
        w2d = wden.reshape(9 * ci, co).T                     # (co, 9*ci)
        fused.append(jnp.concatenate([w2d, b.reshape(co, 1)], axis=1))

    mco = max(f.shape[0] for f in fused)
    mk = max(f.shape[1] for f in fused)
    wpack = jnp.zeros((len(fused), mco, mk), jnp.float32)
    for i, f in enumerate(fused):
        wpack = wpack.at[i, :f.shape[0], :f.shape[1]].set(f)
    return wpack


# ------------------- pure-JAX reference (unfused, lax.conv) ---------------- #

def _conv_ref(x, wgt, b, dil):
    out = jax.lax.conv_general_dilated(
        x, wgt, window_strides=(1, 1), padding="VALID",
        rhs_dilation=(dil, dil),
        dimension_numbers=("NCHW", "HWIO", "NCHW"),
        precision=jax.lax.Precision.HIGHEST)
    return out + b.reshape(1, -1, 1, 1)


def _dfd_ref(x, p):
    hd = _conv_ref(x, *p["hd"], 2)[:, :, 2:-2, :]
    vd = _conv_ref(x, *p["vd"], 2)[:, :, :, 2:-2]
    fd = _conv_ref(x, *p["fd"], 2)
    h = _conv_ref(x, *p["h1"], 1)[:, :, 1:-1, :]
    v = _conv_ref(x, *p["v1"], 1)[:, :, :, 1:-1]
    f = _conv_ref(x, *p["f1"], 1)
    xm = _softplus(jnp.concatenate([h, v, f], axis=1))
    h2 = _conv_ref(xm, *p["h2"], 1)[:, :, 1:-1, :]
    v2 = _conv_ref(xm, *p["v2"], 1)[:, :, :, 1:-1]
    f2 = _conv_ref(xm, *p["f2"], 1)
    return jnp.concatenate([hd, vd, fd, h2, v2, f2], axis=1)


def _skip_ref(x, p1, p2):
    x1 = jnp.concatenate([x[:, :, 2:-2, 2:-2], _dfd_ref(x, p1)], axis=1)
    return jnp.concatenate([x1[:, :, 2:-2, 2:-2], _dfd_ref(x1, p2)], axis=1)


# ---------------------------------- main ----------------------------------- #

if __name__ == "__main__":
    key = jax.random.PRNGKey(0)
    k_x, k_p1, k_p2 = jax.random.split(key, 3)

    N, C, H, W = 2, 4, 16, 16
    convs1 = (3, 4, 2, 2)    # (n_dir, n_full, n_dir_dil, n_full_dil)
    convs2 = (4, 4, 2, 2)

    x = jax.random.normal(k_x, (N, C, H, W), jnp.float32)
    p1 = init_dfd_params(k_p1, C, *convs1)
    c1_out = 2 * convs1[0] + convs1[1] + 2 * convs1[2] + convs1[3]
    p2 = init_dfd_params(k_p2, C + c1_out, *convs2)

    wpack = pack_skip_params(p1, p2)     # one-time fusion / packing

    fwd = jax.jit(lambda xx, ww: skip_double_dir_full_dil(xx, ww,
                                                          convs1, convs2))
    out = jax.block_until_ready(fwd(x, wpack))

    ref = _skip_ref(x, p1, p2)
    assert out.shape == ref.shape, (out.shape, ref.shape)
    # HIGHEST-precision MXU matmuls keep the fused kernel within ~1e-6 of the
    # unfused XLA reference; 2e-3 is a conservative bound that still catches
    # any weight-fusion / tap-ordering / indexing bug (those are O(1) errors).
    np.testing.assert_allclose(np.asarray(out), np.asarray(ref),
                               rtol=2e-3, atol=2e-3)
    print("KERNEL_OK")
</pallas_src>

<mosaic_0001>
module attributes {stable_mosaic.version = 11 : i64} {
  func.func @kernel(%arg0: i32, %arg1: memref<1x4x256xf32, #tpu.memory_space<vmem>>, %arg2: memref<6x12x181xf32, #tpu.memory_space<vmem>>, %arg3: memref<1x38x64xf32, #tpu.memory_space<vmem>>) attributes {dimension_semantics = [#tpu.dimension_semantics<parallel>], iteration_bounds = array<i64: 2>, scalar_prefetch = 0 : i64, scratch_operands = 0 : i64, tpu.core_type = #tpu.core_type<tc>, window_params = [{transform_indices = @transform_0, window_bounds = array<i64: 1, 4, 256>}, {pipeline_mode = #tpu.pipeline_mode<synchronous>, transform_indices = @transform_1, window_bounds = array<i64: 6, 12, 181>}, {transform_indices = @transform_2, window_bounds = array<i64: 1, 38, 64>}]} {
    %c0 = arith.constant 0 : index
    %c0_0 = arith.constant 0 : index
    %c0_1 = arith.constant 0 : index
    %0 = vector.load %arg1[%c0, %c0_0, %c0_1] : memref<1x4x256xf32, #tpu.memory_space<vmem>>, vector<1x4x256xf32>
    %1 = vector.shape_cast %0 : vector<1x4x256xf32> to vector<4x256xf32>
    %c0_2 = arith.constant 0 : index
    %c0_3 = arith.constant 0 : index
    %c0_4 = arith.constant 0 : index
    %2 = vector.load %arg2[%c0_2, %c0_3, %c0_4] : memref<6x12x181xf32, #tpu.memory_space<vmem>>, vector<1x12x181xf32>
    %3 = vector.shape_cast %2 : vector<1x12x181xf32> to vector<12x181xf32>
    %4 = vector.extract_strided_slice %3 {offsets = [0, 0], sizes = [6, 37], strides = [1, 1]} : vector<12x181xf32> to vector<6x37xf32>
    %cst = arith.constant 0.000000e+00 : f32
    %5 = vector.broadcast %cst : f32 to vector<4x4xf32>
    %6 = tpu.concatenate %1, %5 in 1 : vector<4x256xf32>, vector<4x4xf32> -> vector<4x260xf32>
    %7 = vector.extract_strided_slice %6 {offsets = [0, 0], sizes = [4, 192], strides = [1, 1]} : vector<4x260xf32> to vector<4x192xf32>
    %8 = vector.extract_strided_slice %6 {offsets = [0, 2], sizes = [4, 192], strides = [1, 1]} : vector<4x260xf32> to vector<4x192xf32>
    %9 = vector.extract_strided_slice %6 {offsets = [0, 4], sizes = [4, 192], strides = [1, 1]} : vector<4x260xf32> to vector<4x192xf32>
    %10 = vector.extract_strided_slice %6 {offsets = [0, 32], sizes = [4, 192], strides = [1, 1]} : vector<4x260xf32> to vector<4x192xf32>
    %11 = vector.extract_strided_slice %6 {offsets = [0, 34], sizes = [4, 192], strides = [1, 1]} : vector<4x260xf32> to vector<4x192xf32>
    %12 = vector.extract_strided_slice %6 {offsets = [0, 36], sizes = [4, 192], strides = [1, 1]} : vector<4x260xf32> to vector<4x192xf32>
    %13 = vector.extract_strided_slice %6 {offsets = [0, 64], sizes = [4, 192], strides = [1, 1]} : vector<4x260xf32> to vector<4x192xf32>
    %14 = vector.extract_strided_slice %6 {offsets = [0, 66], sizes = [4, 192], strides = [1, 1]} : vector<4x260xf32> to vector<4x192xf32>
    %15 = vector.extract_strided_slice %6 {offsets = [0, 68], sizes = [4, 192], strides = [1, 1]} : vector<4x260xf32> to vector<4x192xf32>
    %cst_5 = arith.constant 1.000000e+00 : f32
    %16 = vector.broadcast %cst_5 : f32 to vector<1x192xf32>
    %17 = tpu.concatenate %7, %8, %9, %10, %11, %12, %13, %14, %15, %16 in 0 : vector<4x192xf32>, vector<4x192xf32>, vector<4x192xf32>, vector<4x192xf32>, vector<4x192xf32>, vector<4x192xf32>, vector<4x192xf32>, vector<4x192xf32>, vector<4x192xf32>, vector<1x192xf32> -> vector<37x192xf32>
    %cst_6 = arith.constant dense<0.000000e+00> : vector<6x192xf32>
    %18 = tpu.matmul %4, %17, %cst_6 {dimension_numbers = #tpu.dot_dimension_numbers<[1], [0], [0], [1], [0, 0, 1, 1], [], []>, precision = #tpu.contract_precision<fp32>} : vector<6x37xf32>, vector<37x192xf32>, vector<6x192xf32> -> vector<6x192xf32>
    %c1 = arith.constant 1 : index
    %c0_7 = arith.constant 0 : index
    %c0_8 = arith.constant 0 : index
    %19 = vector.load %arg2[%c1, %c0_7, %c0_8] : memref<6x12x181xf32, #tpu.memory_space<vmem>>, vector<1x12x181xf32>
    %20 = vector.shape_cast %19 : vector<1x12x181xf32> to vector<12x181xf32>
    %21 = vector.extract_strided_slice %20 {offsets = [0, 0], sizes = [10, 37], strides = [1, 1]} : vector<12x181xf32> to vector<10x37xf32>
    %cst_9 = arith.constant 0.000000e+00 : f32
    %22 = vector.broadcast %cst_9 : f32 to vector<4x2xf32>
    %23 = tpu.concatenate %1, %22 in 1 : vector<4x256xf32>, vector<4x2xf32> -> vector<4x258xf32>
    %24 = vector.extract_strided_slice %23 {offsets = [0, 0], sizes = [4, 224], strides = [1, 1]} : vector<4x258xf32> to vector<4x224xf32>
    %25 = vector.extract_strided_slice %23 {offsets = [0, 1], sizes = [4, 224], strides = [1, 1]} : vector<4x258xf32> to vector<4x224xf32>
    %26 = vector.extract_strided_slice %23 {offsets = [0, 2], sizes = [4, 224], strides = [1, 1]} : vector<4x258xf32> to vector<4x224xf32>
    %27 = vector.extract_strided_slice %23 {offsets = [0, 16], sizes = [4, 224], strides = [1, 1]} : vector<4x258xf32> to vector<4x224xf32>
    %28 = vector.extract_strided_slice %23 {offsets = [0, 17], sizes = [4, 224], strides = [1, 1]} : vector<4x258xf32> to vector<4x224xf32>
    %29 = vector.extract_strided_slice %23 {offsets = [0, 18], sizes = [4, 224], strides = [1, 1]} : vector<4x258xf32> to vector<4x224xf32>
    %30 = vector.extract_strided_slice %23 {offsets = [0, 32], sizes = [4, 224], strides = [1, 1]} : vector<4x258xf32> to vector<4x224xf32>
    %31 = vector.extract_strided_slice %23 {offsets = [0, 33], sizes = [4, 224], strides = [1, 1]} : vector<4x258xf32> to vector<4x224xf32>
    %32 = vector.extract_strided_slice %23 {offsets = [0, 34], sizes = [4, 224], strides = [1, 1]} : vector<4x258xf32> to vector<4x224xf32>
    %cst_10 = arith.constant 1.000000e+00 : f32
    %33 = vector.broadcast %cst_10 : f32 to vector<1x224xf32>
    %34 = tpu.concatenate %24, %25, %26, %27, %28, %29, %30, %31, %32, %33 in 0 : vector<4x224xf32>, vector<4x224xf32>, vector<4x224xf32>, vector<4x224xf32>, vector<4x224xf32>, vector<4x224xf32>, vector<4x224xf32>, vector<4x224xf32>, vector<4x224xf32>, vector<1x224xf32> -> vector<37x224xf32>
    %cst_11 = arith.constant dense<0.000000e+00> : vector<10x224xf32>
    %35 = tpu.matmul %21, %34, %cst_11 {dimension_numbers = #tpu.dot_dimension_numbers<[1], [0], [0], [1], [0, 0, 1, 1], [], []>, precision = #tpu.contract_precision<fp32>} : vector<10x37xf32>, vector<37x224xf32>, vector<10x224xf32> -> vector<10x224xf32>
    %cst_12 = arith.constant 2.000000e+01 : f32
    %36 = vector.broadcast %cst_12 : f32 to vector<10x224xf32>
    %37 = arith.cmpf ogt, %35, %36 : vector<10x224xf32>
    %cst_13 = arith.constant 2.000000e+01 : f32
    %38 = vector.broadcast %cst_13 : f32 to vector<10x224xf32>
    %39 = arith.minimumf %35, %38 : vector<10x224xf32>
    %40 = math.exp %39 : vector<10x224xf32>
    %41 = math.log1p %40 : vector<10x224xf32>
    %42 = arith.select %37, %35, %41 : vector<10x224xi1>, vector<10x224xf32>
    %c2 = arith.constant 2 : index
    %c0_14 = arith.constant 0 : index
    %c0_15 = arith.constant 0 : index
    %43 = vector.load %arg2[%c2, %c0_14, %c0_15] : memref<6x12x181xf32, #tpu.memory_space<vmem>>, vector<1x12x181xf32>
    %44 = vector.shape_cast %43 : vector<1x12x181xf32> to vector<12x181xf32>
    %45 = vector.extract_strided_slice %44 {offsets = [0, 0], sizes = [10, 91], strides = [1, 1]} : vector<12x181xf32> to vector<10x91xf32>
    %cst_16 = arith.constant 0.000000e+00 : f32
    %46 = vector.broadcast %cst_16 : f32 to vector<10x2xf32>
    %47 = tpu.concatenate %42, %46 in 1 : vector<10x224xf32>, vector<10x2xf32> -> vector<10x226xf32>
    %48 = vector.extract_strided_slice %47 {offsets = [0, 0], sizes = [10, 192], strides = [1, 1]} : vector<10x226xf32> to vector<10x192xf32>
    %49 = vector.extract_strided_slice %47 {offsets = [0, 1], sizes = [10, 192], strides = [1, 1]} : vector<10x226xf32> to vector<10x192xf32>
    %50 = vector.extract_strided_slice %47 {offsets = [0, 2], sizes = [10, 192], strides = [1, 1]} : vector<10x226xf32> to vector<10x192xf32>
    %51 = vector.extract_strided_slice %47 {offsets = [0, 16], sizes = [10, 192], strides = [1, 1]} : vector<10x226xf32> to vector<10x192xf32>
    %52 = vector.extract_strided_slice %47 {offsets = [0, 17], sizes = [10, 192], strides = [1, 1]} : vector<10x226xf32> to vector<10x192xf32>
    %53 = vector.extract_strided_slice %47 {offsets = [0, 18], sizes = [10, 192], strides = [1, 1]} : vector<10x226xf32> to vector<10x192xf32>
    %54 = vector.extract_strided_slice %47 {offsets = [0, 32], sizes = [10, 192], strides = [1, 1]} : vector<10x226xf32> to vector<10x192xf32>
    %55 = vector.extract_strided_slice %47 {offsets = [0, 33], sizes = [10, 192], strides = [1, 1]} : vector<10x226xf32> to vector<10x192xf32>
    %56 = vector.extract_strided_slice %47 {offsets = [0, 34], sizes = [10, 192], strides = [1, 1]} : vector<10x226xf32> to vector<10x192xf32>
    %cst_17 = arith.constant 1.000000e+00 : f32
    %57 = vector.broadcast %cst_17 : f32 to vector<1x192xf32>
    %58 = tpu.concatenate %48, %49, %50, %51, %52, %53, %54, %55, %56, %57 in 0 : vector<10x192xf32>, vector<10x192xf32>, vector<10x192xf32>, vector<10x192xf32>, vector<10x192xf32>, vector<10x192xf32>, vector<10x192xf32>, vector<10x192xf32>, vector<10x192xf32>, vector<1x192xf32> -> vector<91x192xf32>
    %cst_18 = arith.constant dense<0.000000e+00> : vector<10x192xf32>
    %59 = tpu.matmul %45, %58, %cst_18 {dimension_numbers = #tpu.dot_dimension_numbers<[1], [0], [0], [1], [0, 0, 1, 1], [], []>, precision = #tpu.contract_precision<fp32>} : vector<10x91xf32>, vector<91x192xf32>, vector<10x192xf32> -> vector<10x192xf32>
    %60 = vector.extract_strided_slice %1 {offsets = [0, 34], sizes = [4, 192], strides = [1, 1]} : vector<4x256xf32> to vector<4x192xf32>
    %61 = tpu.concatenate %60, %18, %59 in 0 : vector<4x192xf32>, vector<6x192xf32>, vector<10x192xf32> -> vector<20x192xf32>
    %c3 = arith.constant 3 : index
    %c0_19 = arith.constant 0 : index
    %c0_20 = arith.constant 0 : index
    %62 = vector.load %arg2[%c3, %c0_19, %c0_20] : memref<6x12x181xf32, #tpu.memory_space<vmem>>, vector<1x12x181xf32>
    %63 = vector.shape_cast %62 : vector<1x12x181xf32> to vector<12x181xf32>
    %64 = vector.extract_strided_slice %63 {offsets = [0, 0], sizes = [6, 181], strides = [1, 1]} : vector<12x181xf32> to vector<6x181xf32>
    %cst_21 = arith.constant 0.000000e+00 : f32
    %65 = vector.broadcast %cst_21 : f32 to vector<20x4xf32>
    %66 = tpu.concatenate %61, %65 in 1 : vector<20x192xf32>, vector<20x4xf32> -> vector<20x196xf32>
    %67 = vector.extract_strided_slice %66 {offsets = [0, 0], sizes = [20, 128], strides = [1, 1]} : vector<20x196xf32> to vector<20x128xf32>
    %68 = vector.extract_strided_slice %66 {offsets = [0, 2], sizes = [20, 128], strides = [1, 1]} : vector<20x196xf32> to vector<20x128xf32>
    %69 = vector.extract_strided_slice %66 {offsets = [0, 4], sizes = [20, 128], strides = [1, 1]} : vector<20x196xf32> to vector<20x128xf32>
    %70 = vector.extract_strided_slice %66 {offsets = [0, 32], sizes = [20, 128], strides = [1, 1]} : vector<20x196xf32> to vector<20x128xf32>
    %71 = vector.extract_strided_slice %66 {offsets = [0, 34], sizes = [20, 128], strides = [1, 1]} : vector<20x196xf32> to vector<20x128xf32>
    %72 = vector.extract_strided_slice %66 {offsets = [0, 36], sizes = [20, 128], strides = [1, 1]} : vector<20x196xf32> to vector<20x128xf32>
    %73 = vector.extract_strided_slice %66 {offsets = [0, 64], sizes = [20, 128], strides = [1, 1]} : vector<20x196xf32> to vector<20x128xf32>
    %74 = vector.extract_strided_slice %66 {offsets = [0, 66], sizes = [20, 128], strides = [1, 1]} : vector<20x196xf32> to vector<20x128xf32>
    %75 = vector.extract_strided_slice %66 {offsets = [0, 68], sizes = [20, 128], strides = [1, 1]} : vector<20x196xf32> to vector<20x128xf32>
    %cst_22 = arith.constant 1.000000e+00 : f32
    %76 = vector.broadcast %cst_22 : f32 to vector<1x128xf32>
    %77 = tpu.concatenate %67, %68, %69, %70, %71, %72, %73, %74, %75, %76 in 0 : vector<20x128xf32>, vector<20x128xf32>, vector<20x128xf32>, vector<20x128xf32>, vector<20x128xf32>, vector<20x128xf32>, vector<20x128xf32>, vector<20x128xf32>, vector<20x128xf32>, vector<1x128xf32> -> vector<181x128xf32>
    %cst_23 = arith.constant dense<0.000000e+00> : vector<6x128xf32>
    %78 = tpu.matmul %64, %77, %cst_23 {dimension_numbers = #tpu.dot_dimension_numbers<[1], [0], [0], [1], [0, 0, 1, 1], [], []>, precision = #tpu.contract_precision<fp32>} : vector<6x181xf32>, vector<181x128xf32>, vector<6x128xf32> -> vector<6x128xf32>
    %c4 = arith.constant 4 : index
    %c0_24 = arith.constant 0 : index
    %c0_25 = arith.constant 0 : index
    %79 = vector.load %arg2[%c4, %c0_24, %c0_25] : memref<6x12x181xf32, #tpu.memory_space<vmem>>, vector<1x12x181xf32>
    %80 = vector.shape_cast %79 : vector<1x12x181xf32> to vector<12x181xf32>
    %cst_26 = arith.constant 0.000000e+00 : f32
    %81 = vector.broadcast %cst_26 : f32 to vector<20x2xf32>
    %82 = tpu.concatenate %61, %81 in 1 : vector<20x192xf32>, vector<20x2xf32> -> vector<20x194xf32>
    %83 = vector.extract_strided_slice %82 {offsets = [0, 0], sizes = [20, 160], strides = [1, 1]} : vector<20x194xf32> to vector<20x160xf32>
    %84 = vector.extract_strided_slice %82 {offsets = [0, 1], sizes = [20, 160], strides = [1, 1]} : vector<20x194xf32> to vector<20x160xf32>
    %85 = vector.extract_strided_slice %82 {offsets = [0, 2], sizes = [20, 160], strides = [1, 1]} : vector<20x194xf32> to vector<20x160xf32>
    %86 = vector.extract_strided_slice %82 {offsets = [0, 16], sizes = [20, 160], strides = [1, 1]} : vector<20x194xf32> to vector<20x160xf32>
    %87 = vector.extract_strided_slice %82 {offsets = [0, 17], sizes = [20, 160], strides = [1, 1]} : vector<20x194xf32> to vector<20x160xf32>
    %88 = vector.extract_strided_slice %82 {offsets = [0, 18], sizes = [20, 160], strides = [1, 1]} : vector<20x194xf32> to vector<20x160xf32>
    %89 = vector.extract_strided_slice %82 {offsets = [0, 32], sizes = [20, 160], strides = [1, 1]} : vector<20x194xf32> to vector<20x160xf32>
    %90 = vector.extract_strided_slice %82 {offsets = [0, 33], sizes = [20, 160], strides = [1, 1]} : vector<20x194xf32> to vector<20x160xf32>
    %91 = vector.extract_strided_slice %82 {offsets = [0, 34], sizes = [20, 160], strides = [1, 1]} : vector<20x194xf32> to vector<20x160xf32>
    %cst_27 = arith.constant 1.000000e+00 : f32
    %92 = vector.broadcast %cst_27 : f32 to vector<1x160xf32>
    %93 = tpu.concatenate %83, %84, %85, %86, %87, %88, %89, %90, %91, %92 in 0 : vector<20x160xf32>, vector<20x160xf32>, vector<20x160xf32>, vector<20x160xf32>, vector<20x160xf32>, vector<20x160xf32>, vector<20x160xf32>, vector<20x160xf32>, vector<20x160xf32>, vector<1x160xf32> -> vector<181x160xf32>
    %cst_28 = arith.constant dense<0.000000e+00> : vector<12x160xf32>
    %94 = tpu.matmul %80, %93, %cst_28 {dimension_numbers = #tpu.dot_dimension_numbers<[1], [0], [0], [1], [0, 0, 1, 1], [], []>, precision = #tpu.contract_precision<fp32>} : vector<12x181xf32>, vector<181x160xf32>, vector<12x160xf32> -> vector<12x160xf32>
    %cst_29 = arith.constant 2.000000e+01 : f32
    %95 = vector.broadcast %cst_29 : f32 to vector<12x160xf32>
    %96 = arith.cmpf ogt, %94, %95 : vector<12x160xf32>
    %cst_30 = arith.constant 2.000000e+01 : f32
    %97 = vector.broadcast %cst_30 : f32 to vector<12x160xf32>
    %98 = arith.minimumf %94, %97 : vector<12x160xf32>
    %99 = math.exp %98 : vector<12x160xf32>
    %100 = math.log1p %99 : vector<12x160xf32>
    %101 = arith.select %96, %94, %100 : vector<12x160xi1>, vector<12x160xf32>
    %c5 = arith.constant 5 : index
    %c0_31 = arith.constant 0 : index
    %c0_32 = arith.constant 0 : index
    %102 = vector.load %arg2[%c5, %c0_31, %c0_32] : memref<6x12x181xf32, #tpu.memory_space<vmem>>, vector<1x12x181xf32>
    %103 = vector.shape_cast %102 : vector<1x12x181xf32> to vector<12x181xf32>
    %104 = vector.extract_strided_slice %103 {offsets = [0, 0], sizes = [12, 109], strides = [1, 1]} : vector<12x181xf32> to vector<12x109xf32>
    %cst_33 = arith.constant 0.000000e+00 : f32
    %105 = vector.broadcast %cst_33 : f32 to vector<12x2xf32>
    %106 = tpu.concatenate %101, %105 in 1 : vector<12x160xf32>, vector<12x2xf32> -> vector<12x162xf32>
    %107 = vector.extract_strided_slice %106 {offsets = [0, 0], sizes = [12, 128], strides = [1, 1]} : vector<12x162xf32> to vector<12x128xf32>
    %108 = vector.extract_strided_slice %106 {offsets = [0, 1], sizes = [12, 128], strides = [1, 1]} : vector<12x162xf32> to vector<12x128xf32>
    %109 = vector.extract_strided_slice %106 {offsets = [0, 2], sizes = [12, 128], strides = [1, 1]} : vector<12x162xf32> to vector<12x128xf32>
    %110 = vector.extract_strided_slice %106 {offsets = [0, 16], sizes = [12, 128], strides = [1, 1]} : vector<12x162xf32> to vector<12x128xf32>
    %111 = vector.extract_strided_slice %106 {offsets = [0, 17], sizes = [12, 128], strides = [1, 1]} : vector<12x162xf32> to vector<12x128xf32>
    %112 = vector.extract_strided_slice %106 {offsets = [0, 18], sizes = [12, 128], strides = [1, 1]} : vector<12x162xf32> to vector<12x128xf32>
    %113 = vector.extract_strided_slice %106 {offsets = [0, 32], sizes = [12, 128], strides = [1, 1]} : vector<12x162xf32> to vector<12x128xf32>
    %114 = vector.extract_strided_slice %106 {offsets = [0, 33], sizes = [12, 128], strides = [1, 1]} : vector<12x162xf32> to vector<12x128xf32>
    %115 = vector.extract_strided_slice %106 {offsets = [0, 34], sizes = [12, 128], strides = [1, 1]} : vector<12x162xf32> to vector<12x128xf32>
    %cst_34 = arith.constant 1.000000e+00 : f32
    %116 = vector.broadcast %cst_34 : f32 to vector<1x128xf32>
    %117 = tpu.concatenate %107, %108, %109, %110, %111, %112, %113, %114, %115, %116 in 0 : vector<12x128xf32>, vector<12x128xf32>, vector<12x128xf32>, vector<12x128xf32>, vector<12x128xf32>, vector<12x128xf32>, vector<12x128xf32>, vector<12x128xf32>, vector<12x128xf32>, vector<1x128xf32> -> vector<109x128xf32>
    %cst_35 = arith.constant dense<0.000000e+00> : vector<12x128xf32>
    %118 = tpu.matmul %104, %117, %cst_35 {dimension_numbers = #tpu.dot_dimension_numbers<[1], [0], [0], [1], [0, 0, 1, 1], [], []>, precision = #tpu.contract_precision<fp32>} : vector<12x109xf32>, vector<109x128xf32>, vector<12x128xf32> -> vector<12x128xf32>
    %119 = vector.extract_strided_slice %61 {offsets = [0, 34], sizes = [20, 128], strides = [1, 1]} : vector<20x192xf32> to vector<20x128xf32>
    %120 = tpu.concatenate %119, %78, %118 in 0 : vector<20x128xf32>, vector<6x128xf32>, vector<12x128xf32> -> vector<38x128xf32>
    %121 = vector.extract_strided_slice %120 {offsets = [0, 0], sizes = [38, 8], strides = [1, 1]} : vector<38x128xf32> to vector<38x8xf32>
    %122 = vector.extract_strided_slice %120 {offsets = [0, 16], sizes = [38, 8], strides = [1, 1]} : vector<38x128xf32> to vector<38x8xf32>
    %123 = vector.extract_strided_slice %120 {offsets = [0, 32], sizes = [38, 8], strides = [1, 1]} : vector<38x128xf32> to vector<38x8xf32>
    %124 = vector.extract_strided_slice %120 {offsets = [0, 48], sizes = [38, 8], strides = [1, 1]} : vector<38x128xf32> to vector<38x8xf32>
    %125 = vector.extract_strided_slice %120 {offsets = [0, 64], sizes = [38, 8], strides = [1, 1]} : vector<38x128xf32> to vector<38x8xf32>
    %126 = vector.extract_strided_slice %120 {offsets = [0, 80], sizes = [38, 8], strides = [1, 1]} : vector<38x128xf32> to vector<38x8xf32>
    %127 = vector.extract_strided_slice %120 {offsets = [0, 96], sizes = [38, 8], strides = [1, 1]} : vector<38x128xf32> to vector<38x8xf32>
    %128 = vector.extract_strided_slice %120 {offsets = [0, 112], sizes = [38, 8], strides = [1, 1]} : vector<38x128xf32> to vector<38x8xf32>
    %129 = tpu.concatenate %121, %122, %123, %124, %125, %126, %127, %128 in 1 : vector<38x8xf32>, vector<38x8xf32>, vector<38x8xf32>, vector<38x8xf32>, vector<38x8xf32>, vector<38x8xf32>, vector<38x8xf32>, vector<38x8xf32> -> vector<38x64xf32>
    %c0_36 = arith.constant 0 : index
    %c0_37 = arith.constant 0 : index
    %c0_38 = arith.constant 0 : index
    %130 = vector.load %arg3[%c0_36, %c0_37, %c0_38] : memref<1x38x64xf32, #tpu.memory_space<vmem>>, vector<1x38x64xf32>
    %131 = vector.shape_cast %130 : vector<1x38x64xf32> to vector<38x64xf32>
    %132 = vector.shape_cast %129 : vector<38x64xf32> to vector<1x38x64xf32>
    tpu.vector_store %arg3[%c0_36, %c0_37, %c0_38], %132 {strides = array<i32>} : memref<1x38x64xf32, #tpu.memory_space<vmem>>, vector<1x38x64xf32>,
    return
  }
  func.func @transform_0(%arg0: i32) -> (i32, i32, i32) {
    %c0_i32 = arith.constant 0 : i32
    %c0_i32_0 = arith.constant 0 : i32
    %c0_i32_1 = arith.constant 0 : i32
    return %arg0, %c0_i32, %c0_i32_0 : i32, i32, i32
  }
  func.func @transform_1(%arg0: i32) -> (i32, i32, i32) {
    %c0_i32 = arith.constant 0 : i32
    %c0_i32_0 = arith.constant 0 : i32
    %c0_i32_1 = arith.constant 0 : i32
    %c0_i32_2 = arith.constant 0 : i32
    return %c0_i32, %c0_i32_0, %c0_i32_1 : i32, i32, i32
  }
  func.func @transform_2(%arg0: i32) -> (i32, i32, i32) {
    %c0_i32 = arith.constant 0 : i32
    %c0_i32_0 = arith.constant 0 : i32
    %c0_i32_1 = arith.constant 0 : i32
    return %arg0, %c0_i32, %c0_i32_0 : i32, i32, i32
  }
}

</mosaic_0001>

<bundles_post_ra>
// kernel: _lambda_.1
= control target key start
LH: loop header
LB: loop body
LE: loop exit
PB: predicated region body
PF: predicated region fallthrough
CT: control target
= control target key end

     0   :  { %7 = vsyncpa [#allocation3], 0  ;;  %s5281_s9 = smov 0   ;;  %s8522_s0 = inlined_call_operand.vmem [shape: f32[2,4,256], index: 0, kind: input, shape index: {}]   ;;  %s8523_s1 = inlined_call_operand.hbm [shape: f32[6,12,181], index: 1, kind: input, shape index: {}]   ;;  %s8524_s2 = inlined_call_operand.vmem [shape: f32[2,38,64], index: 2, kind: output, shape index: {}]  }
   0x1 LB: > { %s102_s12 = sshll.u32 %s8523_s1, 4  ;;  %s5108_s13 = sadd.s32 4294967295, %s5238_s9   ;;  %s5238_s9 = sphi %s5281_s9, %s13_s9   ;;  %s103_s12 = int_to_ptr.hbm [resolvable:$true] %s102_s12 }
   0x2   : > { %p5110_p0 = scmp.ge.s32.totalorder %s5238_s9, 1  ;;  %p91_p1 = scmp.lt.s32.totalorder %s5238_s9, 3 }
   0x3   : > { %p5130_p2 = scmp.eq.s32.totalorder %s5108_s13, 0  ;;  %s5240_s14 = smov [#allocation2]  }
   0x4   : > { %p92_p3 = pnand %p5110_p0, %p91_p1  ;;  %s104_s15 = sshll.u32 %s5240_s14, 4  ;;  %s105_s15 = int_to_ptr.vmem [resolvable:$true] %s104_s15 }
   0x5   : > { %s5241_s16 = smov 256   ;;  %s5242_s17 = smov 16  }
   0x6   : > { %p5126_p4 = pneg %p92_p3  ;;  %128 = sbr.rel (%p92_p3) target bundleno = 2240 (0x8c0), region = 28 }
   0x8   : > { %p5127_p5 = pnand %p5130_p2, %p5126_p4 }
   0xa   : > { %5129 = dma.hbm_to_vmem [thread:$0]  (!%p5127_p5), %s103_s12, 3072, %s105_s15, [#allocation3], %s5241_s16, %s5241_s16, %s5242_s17  }
   0xb   : > { %5233 = dma.done.wait (%p5130_p2), [#allocation3], 3072  }
   0xc   : > { %5235 = vsyncadd (%p5130_p2), [#allocation3], 4294964224  ;;  %p151_p6 = scmp.lt.s32.totalorder %s5108_s13, 1  ;;  %s5243_s22 = smov 64   ;;  %v5251_v7 = vmov 0.0   ;;  %vm8527_vm0 = vcmask 506880  }
   0xd   : > { %s5244_s23 = smov 60   ;;  %s5245_s24 = smov 62   ;;  %v220_v8 = vrot.slane %v5251_v7, 4  ;;  %vm215_vm1 = vcmask 523264   ;;  %vm8528_vm2 = vcmask 490496   ;;  %vm243_vm3 = vcmask 1043456  }
   0xe   : > { %s8825_s13 = smov (!%p151_p6, %s5108_s13), 1  ;;  %s5246_s25 = smov 94   ;;  %vm8525_vm4 = vcmask 1044480   ;;  %v162_v38 = vld [vmem:[#allocation2] sm:$0xff]  ;;  %vm254_vm5 = vcmask 302080   ;;  %vm199_vm6 = vcmask 769024  }
   0xf   : > { %s5120_s18 = sshll.u32 %s8825_s13, 3  ;;  %s5247_s26 = smov 92   ;;  %vm8526_vm7 = vcmask 752640   ;;  %v256_v42 = vsel %vm254_vm5, %v162_v38, 0  ;;  %vm8529_vm8 = vcmask 1014784   ;;  %vm191_vm9 = vcmask 785408  }
  0x10   : > { %s155_s21 = scalar_lea.vmem %s8522_s0, %s5120_s18  ;;  %s5248_s27 = smov 124   ;;  %v5408_v47 = vand.u32 4294901760, %v256_v42  ;;  %vm175_vm10 = vcmask 1031168   ;;  %vm723_vm11 = vcmask 777216   ;;  %vm698_vm12 = vcmask 908288  }
  0x11   : > { %v161_v0 = vld [vmem:[%s155_s21] sm:$0xff]  ;;  %s5249_s28 = smov 96   ;;  %s5250_s29 = smov 126   ;;  %vm706_vm13 = vcmask 900096   ;;  %vm690_vm14 = vcmask 916480   ;;  %vm675_vm15 = vcmask 1039360  }
  0x12   : > { %164 = vst [vmem:[#allocation1] ss:$2 sm:$0xff] %v161_v0  ;;  %s5252_s30 = smov 95   ;;  %s5253_s3 = smov 111   ;;  %v5416_v51 = vsub.f32 %v256_v42, %v5408_v47 }
  0x13   : > { %s5254_s4 = smov 110   ;;  %s5255_s5 = smov 112  }
  0x14   : > { %s5256_s6 = smov 127   ;;  %v5425_v60 = vand.u32 4294901760, %v5416_v51  ;;  %s5257_s7 = smov 34  }
  0x15   : > { %s5258_s8 = smov 68   ;;  %s5259_s10 = smov 52  }
  0x16   : > { %s5260_s11 = smov 44   ;;  %s5261_s12 = smov 36  }
  0x17   : > { %s5262_s14 = smov 28   ;;  %s5263_s15 = smov 20  }
  0x18   : > { %s5264_s16 = smov 12   ;;  %s5265_s17 = smov 4  }
  0x19   : > { %v5298_v1 = vld.sshfl [vmem:[#allocation1] sm:$0xff pattern:$0x75316420]  ;;  %v5300_v2 = vld.sshfl [vmem:[#allocation1 + $0x8] sm:$0xff pattern:$0x75316420] }
  0x1a   : > { %211 = vrot.lane.b32.xlu1 %v5298_v1, %s5243_s22  ;;  %232 = vrot.lane.b32.xlu0 %v5298_v1, %s5244_s23  ;;  %v169_v3 = vrot.slane %v5298_v1, 4  ;;  %664 = vst [vmem:[#allocation1] ss:$2 sm:$0xff] %v161_v0  ;;  %v170_v4 = vrot.slane %v5300_v2, 4  ;;  %s5121_s18 = smul.u32 40, %s8825_s13 }
  0x1c   : > { %221 = vrot.lane.b32.xlu2 %v169_v3, %s5245_s24  ;;  %s8462_s21 = scalar_lea.vmem %s8524_s2, %s5121_s18 }
  0x21   : > { %v5314_v5 = vld.sshfl [vmem:[#allocation1 + $0x8] sm:$0xff pattern:$0x75316420]  ;;  %v5316_v6 = vld.sshfl [vmem:[#allocation1] sm:$0xff pattern:$0x75316420] }
  0x22   : > { %213 = vrot.lane.b32.xlu1 %v5300_v2, %s5243_s22  ;;  %234 = vrot.lane.b32.xlu0 %v5300_v2, %s5244_s23  ;;  %2083 = vst [vmem:[#allocation1] ss:$2 sm:$0xff] %v161_v0  ;;  %v669_v9 = vrot.slane %v5316_v6, 4  ;;  %v670_v10 = vrot.slane %v5314_v5, 4 }
  0x24   : > { %223 = vrot.lane.b32.xlu2 %v170_v4, %s5245_s24 }
  0x2a   : > { %197 = vrot.lane.b32.xlu1 %v5300_v2, %s5246_s25  ;;  %195 = vrot.lane.b32.xlu0 %v5298_v1, %s5246_s25 }
  0x2c   : > { %203 = vrot.lane.b32.xlu2 %v169_v3, %s5247_s26 }
  0x32   : > { %179 = vrot.lane.b32.xlu1 %v5298_v1, %s5248_s27  ;;  %205 = vrot.lane.b32.xlu0 %v170_v4, %s5247_s26 }
  0x34   : > { %181 = vrot.lane.b32.xlu2 %v5300_v2, %s5248_s27 }
  0x3a   : > { %189 = vrot.lane.b32.xlu1 %v170_v4, %s5249_s28  ;;  %187 = vrot.lane.b32.xlu0 %v169_v3, %s5249_s28 }
  0x3c   : > { %171 = vrot.lane.b32.xlu2 %v169_v3, %s5250_s29  ;;  %v289_v3 = vsub.f32 %v5416_v51, %v5425_v60 }
  0x42   : > { %236 = vrot.lane.b32.xlu1 %v5251_v7, %s5244_s23  ;;  %173 = vrot.lane.b32.xlu0 %v170_v4, %s5250_s29 }
  0x44   : > { %225 = vrot.lane.b32.xlu2 %v220_v8, %s5245_s24 }
  0x4a   : > { %730 = vrot.lane.b32.xlu1 %v5314_v5, %s5246_s25  ;;  %728 = vrot.lane.b32.xlu0 %v5316_v6, %s5246_s25 }
  0x4c   : > { %710 = vrot.lane.b32.xlu2 %v5316_v6, %s5249_s28 }
  0x52   : > { %717 = vrot.lane.b32.xlu1 %v669_v9, %s5252_s30  ;;  %712 = vrot.lane.b32.xlu0 %v5314_v5, %s5249_s28 }
  0x54   : > { %719 = vrot.lane.b32.xlu2 %v670_v10, %s5252_s30 }
  0x5a   : > { %696 = vrot.lane.b32.xlu1 %v5314_v5, %s5253_s3  ;;  %694 = vrot.lane.b32.xlu0 %v5316_v6, %s5253_s3 }
  0x5c   : > { %702 = vrot.lane.b32.xlu2 %v669_v9, %s5254_s4 }
  0x62   : > { %679 = vrot.lane.b32.xlu1 %v5316_v6, %s5250_s29  ;;  %704 = vrot.lane.b32.xlu0 %v670_v10, %s5254_s4 }
  0x64   : > { %681 = vrot.lane.b32.xlu2 %v5314_v5, %s5250_s29 }
  0x6a   : > { %688 = vrot.lane.b32.xlu1 %v670_v10, %s5255_s5  ;;  %686 = vrot.lane.b32.xlu0 %v669_v9, %s5255_s5 }
  0x6c   : > { %671 = vrot.lane.b32.xlu2 %v669_v9, %s5256_s6 }
  0x72   : > { %732 = vrot.lane.b32.xlu1 %v5251_v7, %s5246_s25  ;;  %673 = vrot.lane.b32.xlu0 %v670_v10, %s5256_s6 }
  0x74   : > { %721 = vrot.lane.b32.xlu2 %v220_v8, %s5252_s30 }
  0x76   : > { %v222_v11 = vpop.permute.xlu2 %221 }
  0x7e   : > { %v5362_v12 = vpop.permute.xlu2 %223 }
  0x7f   : > { %v228_v17 = vsel %vm8527_vm0, %v222_v11, %v5362_v12 }
  0x86   : > { %v204_v13 = vpop.permute.xlu2 %203 }
  0x8c   : > { %v212_v14 = vpop.permute.xlu1 %211  ;;  %v233_v15 = vpop.permute.xlu0 %232 }
  0x8e   : > { %v5364_v16 = vpop.permute.xlu2 %181 }
  0x94   : > { %v5368_v18 = vpop.permute.xlu1 %213  ;;  %v5370_v19 = vpop.permute.xlu0 %234 }
  0x95   : > { %v216_v20 = vsel %vm215_vm1, %v212_v14, %v5368_v18  ;;  %v239_v21 = vsel %vm8528_vm2, %v233_v15, %v5370_v19 }
  0x96   : > { %v250_v22 = vsel %vm243_vm3, %v216_v20, %v228_v17  ;;  %v252_v23 = vsel %vm243_vm3, %v239_v21, 1.0  ;;  %v5378_v24 = vpop.permute.xlu2 %171  ;;  %v5448_v20 = vand.u32 4294901760, %v289_v3 }
  0x97   : > { %v5380_v25 = vand.u32 4294901760, %v250_v22  ;;  %v260_v26 = vsel %vm8525_vm4, %v252_v23, 0 }
  0x98   : > { %v5383_v27 = vand.u32 4294901760, %v260_v26 }
  0x99   : > { %v5386_v28 = vsub.f32 %v250_v22, %v5380_v25 }
  0x9a   : > { %277 = vmatpush.msra.mxu2 %v5383_v27  ;;  %449 = vmatpush.msra.mxu1 %v5383_v27  ;;  %v5391_v29 = vsub.f32 %v260_v26, %v5383_v27 }
  0x9b   : > { %v314_v30 = vand.u32 4294901760, %v5386_v28 }
  0x9c   : > { %v5394_v31 = vpop.permute.xlu1 %197  ;;  %v196_v32 = vpop.permute.xlu0 %195  ;;  %279 = vmatpush.msra.mxu2 %v5380_v25  ;;  %451 = vmatpush.msra.mxu1 %v5380_v25  ;;  %v308_v33 = vand.u32 4294901760, %v5391_v29 }
  0x9d   : > { %v315_v35 = vsub.f32 %v5386_v28, %v314_v30  ;;  %v200_v43 = vsel %vm199_vm6, %v196_v32, %v5394_v31 }
  0x9e   : > { %415 = vmatpush.msra.mxu0 %v308_v33  ;;  %v309_v34 = vsub.f32 %v5391_v29, %v308_v33  ;;  %v226_v36 = vpop.permute.xlu2 %225 }
  0x9f   : > { %v316_v39 = vand.u32 4294901760, %v315_v35  ;;  %v229_v62 = vsel %vm8527_vm0, %v5362_v12, %v226_v36 }
  0xa0   : > { %419 = vmatpush.msra.mxu0 %v314_v30  ;;  %v310_v37 = vand.u32 4294901760, %v309_v34  ;;  %v251_v11 = vsel %vm243_vm3, %v5368_v18, %v229_v62 }
  0xa1   : > { %v5454_v18 = vand.u32 4294901760, %v251_v11 }
  0xa2   : > { %311 = vmatpush.msra.mxu3 %v310_v37 }
  0xa3   : > { %v5483_v34 = vsub.f32 %v251_v11, %v5454_v18 }
  0xa4   : > { %v180_v40 = vpop.permute.xlu1 %179  ;;  %v206_v41 = vpop.permute.xlu0 %205  ;;  %317 = vmatpush.msra.mxu3 %v316_v39 }
  0xa5   : > { %v208_v44 = vsel %vm8526_vm7, %v204_v13, %v206_v41  ;;  %v184_v54 = vsel %vm8529_vm8, %v180_v40, %v5364_v16  ;;  %v249_v22 = vsel %vm243_vm3, %v5394_v31, %v206_v41  ;;  %vm1324_vm7 = vcmask 1045504  }
  0xa6   : > { %v248_v45 = vsel %vm243_vm3, %v200_v43, %v208_v44  ;;  %v5410_v48 = vpop.permute.xlu2 %710  ;;  %v5471_v31 = vand.u32 4294901760, %v249_v22 }
  0xa7   : > { %v5406_v46 = vand.u32 4294901760, %v248_v45 }
  0xa8   : > { %v5497_v39 = vsub.f32 %v249_v22, %v5471_v31 }
  0xa9   : > { %281 = vmatpush.msra.mxu2 %v5406_v46  ;;  %453 = vmatpush.msra.mxu1 %v5406_v46  ;;  %v319_v49 = vsub.f32 %v248_v45, %v5406_v46 }
  0xab   : > { %v320_v50 = vand.u32 4294901760, %v319_v49 }
  0xac   : > { %v190_v52 = vpop.permute.xlu1 %189  ;;  %v188_v53 = vpop.permute.xlu0 %187 }
  0xad   : > { %v192_v55 = vsel %vm191_vm9, %v188_v53, %v190_v52  ;;  %423 = vmatpush.msra.mxu0 %v320_v50  ;;  %v321_v56 = vsub.f32 %v319_v49, %v320_v50  ;;  %v247_v23 = vsel %vm243_vm3, %v5364_v16, %v190_v52 }
  0xae   : > { %v246_v57 = vsel %vm243_vm3, %v184_v54, %v192_v55  ;;  %v5432_v63 = vpop.permute.xlu2 %719  ;;  %v5485_v35 = vand.u32 4294901760, %v247_v23 }
  0xaf   : > { %v5422_v58 = vand.u32 4294901760, %v246_v57  ;;  %v322_v59 = vand.u32 4294901760, %v321_v56 }
  0xb0   : > { %v5507_v42 = vsub.f32 %v247_v23, %v5485_v35 }
  0xb1   : > { %v325_v61 = vsub.f32 %v246_v57, %v5422_v58  ;;  %283 = vmatpush.msra.mxu2 %v5422_v58  ;;  %323 = vmatpush.msra.mxu3 %v322_v59 }
  0xb2   : > { %455 = vmatpush.msra.mxu1 %v5422_v58  ;;  %v524_v59 = vand.u32 4294901760, %v5507_v42 }
  0xb3   : > { %v326_v0 = vand.u32 4294901760, %v325_v61 }
  0xb4   : > { %v237_v4 = vpop.permute.xlu1 %236  ;;  %v174_v7 = vpop.permute.xlu0 %173 }
  0xb5   : > { %v240_v8 = vsel %vm8528_vm2, %v5370_v19, %v237_v4  ;;  %v176_v9 = vsel %vm175_vm10, %v5378_v24, %v174_v7  ;;  %427 = vmatpush.msra.mxu0 %v326_v0  ;;  %v327_v10 = vsub.f32 %v325_v61, %v326_v0  ;;  %v245_v33 = vsel %vm243_vm3, %v5300_v2, %v174_v7 }
  0xb6   : > { %v253_v12 = vsel %vm243_vm3, %v240_v8, 1.0  ;;  %v244_v13 = vsel %vm243_vm3, %v5298_v1, %v176_v9  ;;  %v5493_v2 = vand.u32 4294901760, %v245_v33  ;;  %v525_v8 = vsub.f32 %v5507_v42, %v524_v59 }
  0xb7   : > { %v263_v14 = vsel %vm8525_vm4, %v253_v12, 0  ;;  %v5446_v15 = vand.u32 4294901760, %v244_v13  ;;  %v328_v17 = vand.u32 4294901760, %v327_v10  ;;  %v662_v12 = vld [vmem:[#allocation2 + $0x20] sm:$0xff] }
  0xb8   : > { %v5450_v19 = vand.u32 4294901760, %v263_v14  ;;  %v5522_v52 = vsub.f32 %v245_v33, %v5493_v2 }
  0xb9   : > { %285 = vmatpush.msra.mxu2 %v5446_v15  ;;  %329 = vmatpush.msra.mxu3 %v328_v17  ;;  %v331_v21 = vsub.f32 %v244_v13, %v5446_v15  ;;  %v749_v17 = vsel %vm254_vm5, %v662_v12, 0 }
  0xba   : > { %457 = vmatpush.msra.mxu1 %v5446_v15  ;;  %291 = vmatmul.f32.vlgmr.msra.gmra.mxu2 %v5448_v20  ;;  %v5468_v30 = vsub.f32 %v263_v14, %v5450_v19  ;;  %v530_v3 = vand.u32 4294901760, %v5522_v52  ;;  %v526_v14 = vand.u32 4294901760, %v525_v8 }
  0xbb   : > { %354 = vmatpush.msrb.mxu2 %v5391_v29  ;;  %v332_v1 = vand.u32 4294901760, %v331_v21  ;;  %459 = vmatmul.f32.vlgmr.msra.gmra.mxu1 %v5408_v47  ;;  %v5473_v29 = vpop.permute.xlu2 %702 }
  0xbc   : > { %583 = vmatpush.msrb.mxu1 %v5450_v19  ;;  %v5464_v24 = vpop.permute.xlu1 %730  ;;  %v729_v26 = vpop.permute.xlu0 %728  ;;  %v506_v41 = vand.u32 4294901760, %v5468_v30  ;;  %v531_v11 = vsub.f32 %v5522_v52, %v530_v3 }
  0xbd   : > { %357 = vmatpush.msrb.mxu2 %v5386_v28  ;;  %v734_v32 = vsel %vm199_vm6, %v729_v26, %v5464_v24  ;;  %431 = vmatpush.msra.mxu0 %v332_v1  ;;  %v333_v16 = vsub.f32 %v331_v21, %v332_v1  ;;  %v5568_v1 = vand.u32 4294901760, %v749_v17 }
  0xbe   : > { %585 = vmatpush.msrb.mxu1 %v5454_v18  ;;  %v746_v28 = vsel %vm243_vm3, %v734_v32, 1.0  ;;  %433 = vmatmul.f32.vlgmr.msra.gmra.mxu0 %v5408_v47  ;;  %v507_v54 = vsub.f32 %v5468_v30, %v506_v41  ;;  %v663_v32 = vld [vmem:[#allocation2 + $0x30] sm:$0xf] }
  0xbf   : > { %360 = vmatpush.msrb.mxu2 %v319_v49  ;;  %552 = vmatpush.msrb.mxu0 %v5468_v30  ;;  %v755_v36 = vsel %vm8525_vm4, %v746_v28, 0  ;;  %v334_v37 = vand.u32 4294901760, %v333_v16  ;;  %v512_v49 = vand.u32 4294901760, %v5483_v34 }
  0xc0   : > { %587 = vmatpush.msrb.mxu1 %v5471_v31  ;;  %v5490_v38 = vand.u32 4294901760, %v755_v36  ;;  %v508_v62 = vand.u32 4294901760, %v507_v54 }
  0xc1   : > { %363 = vmatpush.msrb.mxu2 %v325_v61  ;;  %555 = vmatpush.msrb.mxu0 %v5483_v34  ;;  %v513_v57 = vsub.f32 %v5483_v34, %v512_v49 }
  0xc2   : > { %589 = vmatpush.msrb.mxu1 %v5485_v35  ;;  %335 = vmatpush.msra.mxu3 %v334_v37  ;;  %v5500_v40 = vsub.f32 %v755_v36, %v5490_v38 }
  0xc3   : > { %366 = vmatpush.msrb.mxu2 %v331_v21  ;;  %558 = vmatpush.msrb.mxu0 %v5497_v39  ;;  %v5533_v55 = vpop.permute.xlu2 %681  ;;  %v514_v7 = vand.u32 4294901760, %v513_v57  ;;  %v532_v21 = vand.u32 4294901760, %v531_v11 }
  0xc4   : > { %385 = vmatpush.msrb.mxu3 %v5383_v27  ;;  %591 = vmatpush.msrb.mxu1 %v5493_v2  ;;  %v811_v43 = vand.u32 4294901760, %v5500_v40  ;;  %v718_v44 = vpop.permute.xlu1 %717  ;;  %v5511_v45 = vpop.permute.xlu0 %712 }
  0xc5   : > { %475 = vmatpush.msra.mxu2 %v5450_v19  ;;  %v724_v27 = vsel %vm723_vm11, %v718_v44, %v5432_v63  ;;  %v714_v50 = vsel %vm191_vm9, %v5410_v48, %v5511_v45  ;;  %561 = vmatpush.msrb.mxu0 %v5507_v42  ;;  %v518_v48 = vand.u32 4294901760, %v5497_v39 }
  0xc6   : > { %387 = vmatpush.msrb.mxu3 %v5380_v25  ;;  %v744_v53 = vsel %vm243_vm3, %v714_v50, %v724_v27  ;;  %v812_v25 = vsub.f32 %v5500_v40, %v811_v43  ;;  %369 = vmatmul.f32.vlgmr.msrb.gmra.mxu2 %v5416_v51 }
  0xc7   : > { %337 = vmatmul.f32.vlgmr.msra.gmra.mxu3 %v5408_v47  ;;  %477 = vmatpush.msra.mxu2 %v5454_v18  ;;  %v5535_v56 = vand.u32 4294901760, %v744_v53  ;;  %v519_v0 = vsub.f32 %v5497_v39, %v518_v48 }
  0xc8   : > { %389 = vmatpush.msrb.mxu3 %v5406_v46  ;;  %564 = vmatpush.msrb.mxu0 %v5522_v52  ;;  %v813_v46 = vand.u32 4294901760, %v812_v25 }
  0xc9   : > { %479 = vmatpush.msra.mxu2 %v5471_v31  ;;  %v5544_v61 = vsub.f32 %v744_v53, %v5535_v56  ;;  %567 = vmatmul.f32.vlgmr.msrb.gmra.mxu0 %v5416_v51  ;;  %v520_v10 = vand.u32 4294901760, %v519_v0 }
  0xca   : > { %772 = vmatpush.msra.mxu0 %v5490_v38  ;;  %391 = vmatpush.msrb.mxu3 %v5422_v58 }
  0xcb   : > { %481 = vmatpush.msra.mxu2 %v5485_v35  ;;  %814 = vmatpush.msra.mxu1 %v813_v46  ;;  %v817_v4 = vand.u32 4294901760, %v5544_v61 }
  0xcc   : > { %774 = vmatpush.msra.mxu0 %v5535_v56  ;;  %393 = vmatpush.msrb.mxu3 %v5446_v15  ;;  %v5555_v58 = vpop.permute.xlu1 %696  ;;  %v695_v51 = vpop.permute.xlu0 %694 }
  0xcd   : > { %483 = vmatpush.msra.mxu2 %v5493_v2  ;;  %v818_v9 = vsub.f32 %v5544_v61, %v817_v4  ;;  %595 = vmatmul.f32.vlgmr.msrb.gmra.mxu1 %v5425_v60  ;;  %v5565_v15 = vpop.permute.xlu2 %671  ;;  %v699_v23 = vsel %vm698_vm12, %v695_v51, %v5555_v58 }
  0xce   : > { %509 = vmatpush.msra.mxu3 %v508_v62  ;;  %489 = vmatmul.f32.vlgmr.msra.gmra.mxu2 %v5448_v20 }
  0xcf   : > { %613 = vmatpush.msrb.mxu2 %v506_v41  ;;  %397 = vmatmul.f32.vlgmr.msrb.gmra.mxu3 %v5425_v60  ;;  %v819_v13 = vand.u32 4294901760, %v818_v9 }
  0xd0   : > { %515 = vmatpush.msra.mxu3 %v514_v7 }
  0xd1   : > { %617 = vmatpush.msrb.mxu2 %v512_v49  ;;  %820 = vmatpush.msra.mxu1 %v819_v13 }
  0xd2   : > { %521 = vmatpush.msra.mxu3 %v520_v10 }
  0xd3   : > { %621 = vmatpush.msrb.mxu2 %v518_v48 }
  0xd4   : > { %527 = vmatpush.msra.mxu3 %v526_v14  ;;  %v680_v60 = vpop.permute.xlu1 %679  ;;  %v705_v22 = vpop.permute.xlu0 %704 }
  0xd5   : > { %625 = vmatpush.msrb.mxu2 %v524_v59  ;;  %v707_v20 = vsel %vm706_vm13, %v5473_v29, %v705_v22  ;;  %v722_v16 = vpop.permute.xlu2 %721  ;;  %v683_v34 = vsel %vm175_vm10, %v680_v60, %v5533_v55 }
  0xd6   : > { %533 = vmatpush.msra.mxu3 %v532_v21  ;;  %v742_v26 = vsel %vm243_vm3, %v699_v23, %v707_v20  ;;  %v725_v39 = vsel %vm723_vm11, %v5432_v63, %v722_v16 }
  0xd7   : > { %629 = vmatpush.msrb.mxu2 %v530_v3  ;;  %535 = vmatmul.f32.vlgmr.msra.gmra.mxu3 %v5408_v47  ;;  %v5578_v30 = vand.u32 4294901760, %v742_v26 }
  0xd8   : > { %647 = vmatpush.msrb.mxu3 %v5450_v19  ;;  %v5588_v19 = vsub.f32 %v749_v17, %v5568_v1  ;;  %631 = vmatmul.f32.vlgmr.msrb.gmra.mxu2 %v5408_v47 }
  0xd9   : > { %861 = vmatpush.msra.mxu2 %v5500_v40  ;;  %776 = vmatpush.msra.mxu0 %v5578_v30  ;;  %v5585_v29 = vsub.f32 %v742_v26, %v5578_v30 }
  0xda   : > { %649 = vmatpush.msrb.mxu3 %v5454_v18 }
  0xdb   : > { %864 = vmatpush.msra.mxu2 %v5544_v61  ;;  %v823_v18 = vand.u32 4294901760, %v5585_v29 }
  0xdc   : > { %651 = vmatpush.msrb.mxu3 %v5471_v31  ;;  %v752_v31 = vsel %vm254_vm5, %v663_v32, 0  ;;  %v689_v33 = vpop.permute.xlu1 %688  ;;  %v687_v28 = vpop.permute.xlu0 %686 }
  0xdd   : > { %867 = vmatpush.msra.mxu2 %v5585_v29  ;;  %v691_v36 = vsel %vm690_vm14, %v687_v28, %v689_v33  ;;  %v824_v37 = vsub.f32 %v5585_v29, %v823_v18  ;;  %v5609_v42 = vand.u32 4294901760, %v752_v31  ;;  %v741_v59 = vsel %vm243_vm3, %v5533_v55, %v689_v33 }
  0xde   : > { %653 = vmatpush.msrb.mxu3 %v5485_v35  ;;  %v5603_v35 = vand.u32 4294901760, %v5588_v19  ;;  %v740_v41 = vsel %vm243_vm3, %v683_v34, %v691_v36  ;;  %v5652_v55 = vand.u32 4294901760, %v741_v59 }
  0xdf   : > { %v5611_v44 = vand.u32 4294901760, %v740_v41  ;;  %v825_v49 = vand.u32 4294901760, %v824_v37  ;;  %v5623_v50 = vsub.f32 %v752_v31, %v5609_v42 }
  0xe0   : > { %655 = vmatpush.msrb.mxu3 %v5493_v2  ;;  %v745_v2 = vsel %vm243_vm3, %v5511_v45, %v725_v39  ;;  %v784_v27 = vsub.f32 %v5588_v19, %v5603_v35  ;;  %v743_v45 = vsel %vm243_vm3, %v5555_v58, %v705_v22  ;;  %v1057_v21 = vsub.f32 %v741_v59, %v5652_v55 }
  0xe1   : > { %657 = vmatmul.f32.vlgmr.msrb.gmra.mxu3 %v5408_v47  ;;  %778 = vmatpush.msra.mxu0 %v5611_v44  ;;  %v828_v63 = vsub.f32 %v740_v41, %v5611_v44  ;;  %v5625_v52 = vand.u32 4294901760, %v745_v2  ;;  %v5642_v3 = vand.u32 4294901760, %v5623_v50  ;;  %v5644_v58 = vand.u32 4294901760, %v743_v45 }
  0xe2   : > { %897 = vmatpush.msra.mxu3 %v5490_v38  ;;  %826 = vmatpush.msra.mxu1 %v825_v49  ;;  %v5634_v57 = vand.u32 4294901760, %v784_v27  ;;  %v1058_v61 = vand.u32 4294901760, %v1057_v21 }
  0xe3   : > { %870 = vmatpush.msra.mxu2 %v828_v63  ;;  %v829_v47 = vand.u32 4294901760, %v828_v63  ;;  %v1045_v8 = vsub.f32 %v745_v2, %v5625_v52  ;;  %v792_v12 = vsub.f32 %v5623_v50, %v5642_v3  ;;  %v1051_v13 = vsub.f32 %v743_v45, %v5644_v58 }
  0xe4   : > { %899 = vmatpush.msra.mxu3 %v5535_v56  ;;  %v733_v53 = vpop.permute.xlu1 %732  ;;  %v674_v25 = vpop.permute.xlu0 %673 }
  0xe5   : > { %v735_v54 = vsel %vm199_vm6, %v5464_v24, %v733_v53  ;;  %v676_v48 = vsel %vm675_vm15, %v5565_v15, %v674_v25  ;;  %v830_v46 = vsub.f32 %v828_v63, %v829_v47  ;;  %v739_v10 = vsel %vm243_vm3, %v5314_v5, %v674_v25 }
  0xe6   : > { %901 = vmatpush.msra.mxu3 %v5578_v30  ;;  %v747_v62 = vsel %vm243_vm3, %v735_v54, 1.0  ;;  %v738_v0 = vsel %vm243_vm3, %v5316_v6, %v676_v48  ;;  %v5666_v15 = vand.u32 4294901760, %v739_v10  ;;  %v1046_v17 = vand.u32 4294901760, %v1045_v8 }
  0xe7   : > { %v758_v24 = vsel %vm8525_vm4, %v747_v62, 0  ;;  %v5647_v51 = vand.u32 4294901760, %v738_v0  ;;  %v831_v7 = vand.u32 4294901760, %v830_v46  ;;  %v793_v40 = vand.u32 4294901760, %v792_v12 }
  0xe8   : > { %903 = vmatpush.msra.mxu3 %v5611_v44  ;;  %v5650_v9 = vand.u32 4294901760, %v758_v24  ;;  %v1052_v23 = vand.u32 4294901760, %v1051_v13  ;;  %v1063_v20 = vsub.f32 %v739_v10, %v5666_v15  ;;  %v1047_v32 = vsub.f32 %v1045_v8, %v1046_v17 }
  0xe9   : > { %780 = vmatpush.msra.mxu0 %v5647_v51  ;;  %832 = vmatpush.msra.mxu1 %v831_v7  ;;  %v834_v6 = vsub.f32 %v738_v0, %v5647_v51 }
  0xea   : > { %v1039_v11 = vsub.f32 %v758_v24, %v5650_v9  ;;  %905 = vmatpush.msra.mxu3 %v5647_v51  ;;  %786 = vmatmul.f32.vlgmr.msra.gmra.mxu0 %v5634_v57  ;;  %v1048_v29 = vand.u32 4294901760, %v1047_v32  ;;  %v1064_v16 = vand.u32 4294901760, %v1063_v20 }
  0xeb   : > { %933 = vmatpush.msrb.mxu0 %v811_v43  ;;  %873 = vmatpush.msra.mxu2 %v834_v6  ;;  %v835_v5 = vand.u32 4294901760, %v834_v6 }
  0xec   : > { %v1040_v14 = vand.u32 4294901760, %v1039_v11  ;;  %909 = vmatmul.f32.vlgmr.msra.gmra.mxu3 %v5603_v35  ;;  %876 = vmatmul.f32.vlgmr.msra.gmra.mxu2 %v5588_v19 }
  0xed   : > { %1001 = vmatpush.msrb.mxu2 %v5650_v9  ;;  %937 = vmatpush.msrb.mxu0 %v817_v4  ;;  %v836_v60 = vsub.f32 %v834_v6, %v835_v5  ;;  %v1053_v4 = vsub.f32 %v1051_v13, %v1052_v23 }
  0xee   : > { %v1041_v43 = vsub.f32 %v1039_v11, %v1040_v14 }
  0xef   : > { %1003 = vmatpush.msrb.mxu2 %v5625_v52  ;;  %941 = vmatpush.msrb.mxu0 %v823_v18  ;;  %v837_v22 = vand.u32 4294901760, %v836_v60  ;;  %v1059_v18 = vsub.f32 %v1057_v21, %v1058_v61  ;;  %v1054_v31 = vand.u32 4294901760, %v1053_v4 }
  0xf0   : > { %v1042_v26 = vand.u32 4294901760, %v1041_v43 }
  0xf1   : > { %1005 = vmatpush.msrb.mxu2 %v5644_v58  ;;  %945 = vmatpush.msrb.mxu0 %v829_v47  ;;  %v1060_v33 = vand.u32 4294901760, %v1059_v18 }
  0xf2   : > { %838 = vmatpush.msra.mxu1 %v837_v22  ;;  %794 = vmatmul.f32.gmra.mxu0 %v793_v40 }
  0xf3   : > { %840 = vmatmul.f32.vlgmr.msra.gmra.mxu1 %v5568_v1  ;;  %949 = vmatpush.msrb.mxu0 %v835_v5 }
  0xf4   : > { %971 = vmatpush.msrb.mxu1 %v5490_v38  ;;  %1007 = vmatpush.msrb.mxu2 %v5652_v55  ;;  %v1065_v38 = vsub.f32 %v1063_v20, %v1064_v16 }
  0xf5   : > { %1043 = vmatpush.msrb.mxu3 %v1042_v26  ;;  %1090 = vmatpush.msra.mxu0 %v1039_v11 }
  0xf6   : > { %973 = vmatpush.msrb.mxu1 %v5535_v56  ;;  %1009 = vmatpush.msrb.mxu2 %v5666_v15  ;;  %v1066_v56 = vand.u32 4294901760, %v1065_v38 }
  0xf7   : > { %1049 = vmatpush.msrb.mxu3 %v1048_v29  ;;  %1093 = vmatpush.msra.mxu0 %v1045_v8 }
  0xf8   : > { %1162 = vmatpush.msra.mxu2 %v1040_v14  ;;  %975 = vmatpush.msrb.mxu1 %v5578_v30 }
  0xf9   : > { %881 = vmatmul.f32.gmra.mxu2 %v5623_v50  ;;  %1055 = vmatpush.msrb.mxu3 %v1054_v31 }
  0xfa   : > { %1096 = vmatpush.msra.mxu0 %v1051_v13  ;;  %1166 = vmatpush.msra.mxu2 %v1046_v17 }
  0xfb   : > { %915 = vmatmul.f32.gmra.mxu3 %v5642_v3  ;;  %977 = vmatpush.msrb.mxu1 %v5611_v44 }
  0xfc   : > { %1061 = vmatpush.msrb.mxu3 %v1060_v33  ;;  %1099 = vmatpush.msra.mxu0 %v1057_v21 }
  0xfd   : > { %1170 = vmatpush.msra.mxu2 %v1052_v23  ;;  %844 = vmatmul.f32.gmra.mxu1 %v5609_v42 }
  0xfe   : > { %951 = vmatmul.f32.vlgmr.msrb.gmra.mxu0 %v5568_v1  ;;  %979 = vmatpush.msrb.mxu1 %v5647_v51 }
  0xff   : > { %1067 = vmatpush.msrb.mxu3 %v1066_v56  ;;  %1102 = vmatpush.msra.mxu0 %v1063_v20 }
 0x100   : > { %1126 = vmatpush.msra.mxu1 %v5650_v9  ;;  %1174 = vmatpush.msra.mxu2 %v1058_v61 }
 0x101   : > { %1200 = vmatpush.msra.mxu3 %v5650_v9  ;;  %1015 = vmatmul.f32.vlgmr.msrb.gmra.mxu2 %v5634_v57 }
 0x102   : > { %1128 = vmatpush.msra.mxu1 %v5625_v52  ;;  %1178 = vmatpush.msra.mxu2 %v1064_v16 }
 0x103   : > { %1202 = vmatpush.msra.mxu3 %v5625_v52 }
 0x104   : > { %1130 = vmatpush.msra.mxu1 %v5644_v58  ;;  %1069 = vmatmul.f32.vlgmr.msrb.gmra.mxu3 %v5568_v1 }
 0x105   : > { %1204 = vmatpush.msra.mxu3 %v5644_v58  ;;  %981 = vmatmul.f32.vlgmr.msrb.gmra.mxu1 %v5568_v1 }
 0x106   : > { %1132 = vmatpush.msra.mxu1 %v5652_v55  ;;  %955 = vmatmul.f32.gmra.mxu0 %v5609_v42 }
 0x107   : > { %1206 = vmatpush.msra.mxu3 %v5652_v55 }
 0x108   : > { %1134 = vmatpush.msra.mxu1 %v5666_v15 }
 0x109   : > { %1208 = vmatpush.msra.mxu3 %v5666_v15  ;;  %1023 = vmatmul.f32.gmra.mxu2 %v793_v40 }
 0x10c   : > { %1073 = vmatmul.f32.gmra.mxu3 %v5609_v42 }
 0x10d   : > { %985 = vmatmul.f32.gmra.mxu1 %v5609_v42 }
 0x10e   : > { %1105 = vmatmul.f32.vlgmr.msra.gmra.mxu0 %v5588_v19 }
 0x111   : > { %1180 = vmatmul.f32.vlgmr.msra.gmra.mxu2 %v5568_v1 }
 0x114   : > { %1210 = vmatmul.f32.vlgmr.msra.gmra.mxu3 %v5568_v1 }
 0x115   : > { %1138 = vmatmul.f32.vlgmr.msra.gmra.mxu1 %v5603_v35 }
 0x116   : > { %1110 = vmatmul.f32.gmra.mxu0 %v5623_v50 }
 0x119   : > { %1184 = vmatmul.f32.gmra.mxu2 %v5609_v42 }
 0x11c   : > { %1214 = vmatmul.f32.gmra.mxu3 %v5609_v42 }
 0x11d   : > { %1144 = vmatmul.f32.gmra.mxu1 %v5642_v3 }
 0x138   : > { %v5725_v1 = vpop.f32.mrf.mxu1 }
 0x13b   : > { %v5719_v19 = vpop.f32.mrf.mxu0 }
 0x13d   : > { %v5715_v30 = vpop.f32.mrf.mxu2 }
 0x146   : > { %v5727_v37 = vpop.f32.mrf.mxu0 }
 0x149   : > { %v5721_v34 = vpop.f32.mrf.mxu2 }
 0x14a   : > { %v5717_v28 = vpop.f32.mrf.mxu3  ;;  %v5733_v41 = vpop.f32.mrf.mxu1 }
 0x151   : > { %v5729_v35 = vpop.f32.mrf.mxu2 }
 0x152   : > { %v5723_v36 = vpop.f32.mrf.mxu3 }
 0x15a   : > { %v5731_v39 = vpop.f32.mrf.mxu3 }
 0x15b   : > { %v5735_v44 = vpop.f32.mrf.mxu2 }
 0x164   : > { %v5737_v49 = vpop.f32.mrf.mxu3 }
 0x167   : > { %v787_v42 = vpop.f32.mrf.mxu0 }
 0x16f   : > { %v795_v2 = vpop.f32.mrf.mxu0  ;;  %v877_v27 = vpop.f32.mrf.mxu2 }
 0x170   : > { %v841_v63 = vpop.f32.mrf.mxu1  ;;  %v910_v50 = vpop.f32.mrf.mxu3 }
 0x171   : > { %v842_v47 = vadd.f32 %v841_v63, %v787_v42 }
 0x173   : > { %v878_v25 = vadd.f32 %v877_v27, %v842_v47 }
 0x175   : > { %v911_v48 = vadd.f32 %v910_v50, %v878_v25 }
 0x17a   : > { %v845_v52 = vpop.f32.mrf.mxu1 }
 0x17b   : > { %v952_v45 = vpop.f32.mrf.mxu0  ;;  %v846_v46 = vadd.f32 %v845_v52, %v795_v2 }
 0x17c   : > { %v882_v53 = vpop.f32.mrf.mxu2  ;;  %v953_v57 = vadd.f32 %v952_v45, %v911_v48 }
 0x17d   : > { %v883_v0 = vadd.f32 %v882_v53, %v846_v46 }
 0x17e   : > { %v916_v54 = vpop.f32.mrf.mxu3 }
 0x17f   : > { %v917_v7 = vadd.f32 %v916_v54, %v883_v0 }
 0x182   : > { %v982_v62 = vpop.f32.mrf.mxu1 }
 0x183   : > { %v956_v59 = vpop.f32.mrf.mxu0  ;;  %v983_v3 = vadd.f32 %v982_v62, %v953_v57 }
 0x184   : > { %v1016_v58 = vpop.f32.mrf.mxu2  ;;  %v957_v9 = vadd.f32 %v956_v59, %v917_v7 }
 0x185   : > { %v1222_v24 = vmin.f32 %v983_v3, 20.0  ;;  %vm1218_vm4 = vcmp.gt.f32.partialorder %v983_v3, 20.0 }
 0x187   : > { %v1070_v51 = vpop.f32.mrf.mxu3  ;;  %v1226_v8 = vmul.f32 1.442695, %v1222_v24 }
 0x188   : > { %v1071_v6 = vadd.f32 %v1070_v51, %v1016_v58 }
 0x189   : > { %5166 = vpow2.f32 %v1226_v8 }
 0x18a   : > { %v986_v55 = vpop.f32.mrf.mxu1 }
 0x18b   : > { %v1106_v10 = vpop.f32.mrf.mxu0  ;;  %v987_v11 = vadd.f32 %v986_v55, %v957_v9 }
 0x18c   : > { %v1024_v12 = vpop.f32.mrf.mxu2  ;;  %v1107_v17 = vadd.f32 %v1106_v10, %v1071_v6 }
 0x18d   : > { %v1224_v13 = vmin.f32 %v987_v11, 20.0 }
 0x18f   : > { %v1074_v5 = vpop.f32.mrf.mxu3  ;;  %v5167_v14 = vpop.eup %5166  ;;  %v1230_v15 = vmul.f32 1.442695, %v1224_v13 }
 0x190   : > { %v1234_v21 = vadd.f32 1.0, %v5167_v14  ;;  %v1237_v60 = vmul.f32 -0.5, %v5167_v14  ;;  %v1075_v43 = vadd.f32 %v1074_v5, %v1024_v12  ;;  %v1240_v4 = vand.u32 2147483647, %v5167_v14 }
 0x191   : > { %5168 = vpow2.f32 %v1230_v15 }
 0x192   : > { %5170 = vlog2.f32 %v1234_v21  ;;  %v1139_v40 = vpop.f32.mrf.mxu1  ;;  %v1238_v26 = vadd.f32 1.0, %v1237_v60  ;;  %vm1241_vm5 = vcmp.lt.f32.partialorder %v1240_v4, 0.0004427343 }
 0x193   : > { %v1140_v22 = vadd.f32 %v1139_v40, %v1107_v17  ;;  %v1111_v20 = vpop.f32.mrf.mxu0 }
 0x194   : > { %v1181_v23 = vpop.f32.mrf.mxu2  ;;  %v1112_v18 = vadd.f32 %v1111_v20, %v1075_v43  ;;  %v1239_v56 = vmul.f32 %v5167_v14, %v1238_v26 }
 0x195   : > { %v1182_v32 = vadd.f32 %v1181_v23, %v1140_v22 }
 0x197   : > { %v1211_v61 = vpop.f32.mrf.mxu3  ;;  %v5169_v29 = vpop.eup %5168 }
 0x198   : > { %v5739_v16 = vadd.f32 %v1211_v61, %v1182_v32  ;;  %v5171_v31 = vpop.eup %5170  ;;  %v1252_v38 = vadd.f32 1.0, %v5169_v29  ;;  %v1255_v42 = vmul.f32 -0.5, %v5169_v29  ;;  %v1258_v46 = vand.u32 2147483647, %v5169_v29 }
 0x199   : > { %v1236_v33 = vmul.f32 0.6931472, %v5171_v31 }
 0x19a   : > { %v1223_v2 = vmin.f32 %v5739_v16, 20.0  ;;  %5172 = vlog2.f32 %v1252_v38  ;;  %v1145_v63 = vpop.f32.mrf.mxu1  ;;  %v1256_v53 = vadd.f32 1.0, %v1255_v42  ;;  %vm1219_vm0 = vcmp.gt.f32.partialorder %v5739_v16, 20.0 }
 0x19b   : > { %v1242_v27 = vsel %vm1241_vm5, %v1239_v56, %v1236_v33  ;;  %v1146_v47 = vadd.f32 %v1145_v63, %v1112_v18  ;;  %vm1259_vm5 = vcmp.lt.f32.partialorder %v1258_v46, 0.0004427343 }
 0x19c   : > { %v1228_v50 = vmul.f32 1.442695, %v1223_v2  ;;  %v1185_v52 = vpop.f32.mrf.mxu2  ;;  %v5742_v45 = vsel %vm1218_vm4, %v983_v3, %v1242_v27  ;;  %v1257_v0 = vmul.f32 %v5169_v29, %v1256_v53  ;;  %vm1220_vm4 = vcmp.gt.f32.partialorder %v987_v11, 20.0 }
 0x19d   : > { %v1186_v25 = vadd.f32 %v1185_v52, %v1146_v47  ;;  %1345 = vrot.lane.b32.xlu0 %v5742_v45, %s5253_s3  ;;  %1401 = vrot.lane.b32.xlu2 %v5742_v45, %s5246_s25  ;;  %v5749_v48 = vrot.slane %v5742_v45, 6  ;;  %v1325_v51 = vrot.slane %v5742_v45, 2  ;;  %v5755_v7 = vrot.slane %v5742_v45, 4 }
 0x19e   : > { %5174 = vpow2.f32 %v1228_v50  ;;  %v339_v52 = vadd.f32 %v5717_v28, %v5715_v30 }
 0x19f   : > { %v1215_v54 = vpop.f32.mrf.mxu3  ;;  %1359 = vrot.lane.b32.xlu1 %v5749_v48, %s5254_s4 }
 0x1a0   : > { %v1216_v57 = vadd.f32 %v1215_v54, %v1186_v25  ;;  %v5173_v59 = vpop.eup %5172  ;;  %v371_v25 = vadd.f32 %v5721_v34, %v339_v52 }
 0x1a1   : > { %v1254_v62 = vmul.f32 0.6931472, %v5173_v59 }
 0x1a2   : > { %v1225_v3 = vmin.f32 %v1216_v57, 20.0  ;;  %vm1221_vm8 = vcmp.gt.f32.partialorder %v1216_v57, 20.0  ;;  %v399_v46 = vadd.f32 %v5723_v36, %v371_v25 }
 0x1a3   : > { %v1260_v58 = vsel %vm1259_vm5, %v1257_v0, %v1254_v62 }
 0x1a4   : > { %v1232_v24 = vmul.f32 1.442695, %v1225_v3  ;;  %v5757_v8 = vsel %vm1220_vm4, %v987_v11, %v1260_v58  ;;  %v5175_v9 = vpop.eup %5174  ;;  %vm1283_vm4 = vcmask 1041408   ;;  %v435_v30 = vadd.f32 %v5719_v19, %v399_v46 }
 0x1a5   : > { %1387 = vrot.lane.b32.xlu2 %v1325_v51, %s5252_s30  ;;  %1373 = vrot.lane.b32.xlu0 %v5755_v7, %s5249_s28  ;;  %v1327_v55 = vrot.slane %v5757_v8, 2  ;;  %v1243_v6 = vadd.f32 1.0, %v5175_v9  ;;  %v1286_v13 = vrot.slane %v5757_v8, 6  ;;  %v1246_v11 = vmul.f32 -0.5, %v5175_v9 }
 0x1a6   : > { %5176 = vpow2.f32 %v1232_v24  ;;  %v1249_v21 = vand.u32 2147483647, %v5175_v9  ;;  %v1306_v40 = vrot.slane %v5757_v8, 4  ;;  %v461_v34 = vadd.f32 %v5725_v1, %v435_v30 }
 0x1a7   : > { %v1328_v10 = vsel %vm1324_vm7, %v1325_v51, %v1327_v55  ;;  %5178 = vlog2.f32 %v1243_v6  ;;  %v1287_v14 = vsel %vm1283_vm4, %v5749_v48, %v1286_v13  ;;  %v1247_v15 = vadd.f32 1.0, %v1246_v11 }
 0x1a8   : > { %1391 = vrot.lane.b32.xlu1 %v1328_v10, %s5252_s30  ;;  %vm1250_vm5 = vcmp.lt.f32.partialorder %v1249_v21, 0.0004427343  ;;  %v1307_v20 = vsel %vm243_vm3, %v5755_v7, %v1306_v40  ;;  %v2090_v36 = vrot.slane %v461_v34, 4 }
 0x1a9   : > { %v1248_v22 = vmul.f32 %v5175_v9, %v1247_v15 }
 0x1ac   : > { %v5177_v12 = vpop.eup %5176 }
 0x1ad   : > { %1331 = vrot.lane.b32.xlu0 %v1325_v51, %s5255_s5  ;;  %1349 = vrot.lane.b32.xlu2 %v5757_v8, %s5253_s3  ;;  %v1261_v5 = vadd.f32 1.0, %v5177_v12  ;;  %v5179_v17 = vpop.eup %5178  ;;  %v1264_v60 = vmul.f32 -0.5, %v5177_v12  ;;  %v1267_v32 = vand.u32 2147483647, %v5177_v12 }
 0x1ae   : > { %v1245_v43 = vmul.f32 0.6931472, %v5179_v17 }
 0x1af   : > { %5180 = vlog2.f32 %v1261_v5  ;;  %v1265_v23 = vadd.f32 1.0, %v1264_v60  ;;  %vm1268_vm2 = vcmp.lt.f32.partialorder %v1267_v32, 0.0004427343  ;;  %v2084_v60 = vld.sshfl [vmem:[#allocation1] sm:$0xff pattern:$0x75316420] }
 0x1b0   : > { %1363 = vrot.lane.b32.xlu1 %v1287_v14, %s5254_s4  ;;  %v1251_v61 = vsel %vm1250_vm5, %v1248_v22, %v1245_v43  ;;  %vm8672_vm5 = vcmask 490496  }
 0x1b1   : > { %v1266_v29 = vmul.f32 %v5177_v12, %v1265_v23  ;;  %v1271_v18 = vsel %vm1219_vm0, %v5739_v16, %v1251_v61  ;;  %vm1436_vm0 = vcmask 1042432  }
 0x1b2   : > { %v5784_v31 = vsel %vm191_vm9, %v1271_v18, 0.0 }
 0x1b3   : > { %v1285_v56 = vrot.slane %v5784_v31, 6  ;;  %v1305_v16 = vrot.slane %v5784_v31, 4  ;;  %v1326_v63 = vrot.slane %v5784_v31, 2 }
 0x1b5   : > { %1405 = vrot.lane.b32.xlu0 %v5757_v8, %s5246_s25  ;;  %1335 = vrot.lane.b32.xlu2 %v1328_v10, %s5255_s5  ;;  %v5181_v26 = vpop.eup %5180 }
 0x1b6   : > { %v1263_v4 = vmul.f32 0.6931472, %v5181_v26 }
 0x1b8   : > { %1314 = vrot.lane.b32.xlu1 %v1307_v20, %s5250_s29  ;;  %v1269_v38 = vsel %vm1268_vm2, %v1266_v29, %v1263_v4  ;;  %vm1429_vm2 = vcmask 744448  }
 0x1b9   : > { %v1273_v33 = vsel %vm1221_vm8, %v1216_v57, %v1269_v38  ;;  %v537_v57 = vadd.f32 %v5731_v39, %v5729_v35  ;;  %vm2096_vm8 = vcmask 277504  }
 0x1ba   : > { %v5790_v42 = vsel %vm191_vm9, %v1273_v33, 0.0 }
 0x1bb   : > { %v1329_v2 = vrot.slane %v5790_v42, 2  ;;  %v1288_v50 = vrot.slane %v5790_v42, 6  ;;  %v1308_v53 = vrot.slane %v5790_v42, 4  ;;  %v569_v28 = vadd.f32 %v5727_v37, %v537_v57 }
 0x1bd   : > { %1377 = vrot.lane.b32.xlu0 %v1307_v20, %s5249_s28  ;;  %1294 = vrot.lane.b32.xlu2 %v1287_v14, %s5256_s6  ;;  %v1330_v27 = vsel %vm1324_vm7, %v1326_v63, %v1329_v2  ;;  %v1289_v47 = vsel %vm1283_vm4, %v1285_v56, %v1288_v50  ;;  %v1309_v54 = vsel %vm243_vm3, %v1305_v16, %v1308_v53 }
 0x1be   : > { %v597_v59 = vadd.f32 %v5733_v41, %v569_v28 }
 0x1c0   : > { %1347 = vrot.lane.b32.xlu1 %v5784_v31, %s5253_s3  ;;  %v633_v35 = vadd.f32 %v5735_v44, %v597_v59 }
 0x1c2   : > { %v659_v19 = vadd.f32 %v5737_v49, %v633_v35 }
 0x1c4   : > { %v2091_v37 = vrot.slane %v659_v19, 4 }
 0x1c5   : > { %1403 = vrot.lane.b32.xlu0 %v5784_v31, %s5246_s25  ;;  %1361 = vrot.lane.b32.xlu2 %v1285_v56, %s5254_s4 }
 0x1c8   : > { %1375 = vrot.lane.b32.xlu1 %v1305_v16, %s5249_s28 }
 0x1cd   : > { %1389 = vrot.lane.b32.xlu0 %v1326_v63, %s5252_s30  ;;  %1393 = vrot.lane.b32.xlu2 %v1330_v27, %s5252_s30 }
 0x1d0   : > { %1333 = vrot.lane.b32.xlu1 %v1326_v63, %s5255_s5 }
 0x1d5   : > { %1351 = vrot.lane.b32.xlu0 %v5790_v42, %s5253_s3  ;;  %1365 = vrot.lane.b32.xlu2 %v1289_v47, %s5254_s4 }
 0x1d8   : > { %1407 = vrot.lane.b32.xlu1 %v5790_v42, %s5246_s25 }
 0x1dd   : > { %1337 = vrot.lane.b32.xlu0 %v1330_v27, %s5255_s5  ;;  %1316 = vrot.lane.b32.xlu2 %v1309_v54, %s5250_s29 }
 0x1e0   : > { %1379 = vrot.lane.b32.xlu1 %v1309_v54, %s5249_s28 }
 0x1e5   : > { %1296 = vrot.lane.b32.xlu0 %v1289_v47, %s5256_s6  ;;  %1312 = vrot.lane.b32.xlu2 %v1305_v16, %s5250_s29 }
 0x1e8   : > { %1310 = vrot.lane.b32.xlu1 %v5755_v7, %s5250_s29 }
 0x1ed   : > { %1290 = vrot.lane.b32.xlu0 %v5749_v48, %s5256_s6  ;;  %2092 = vrot.lane.b32.xlu2 %v2090_v36, %s5257_s7 }
 0x1f0   : > { %1292 = vrot.lane.b32.xlu1 %v1285_v56, %s5256_s6 }
 0x1f5   : > { %2094 = vrot.lane.b32.xlu0 %v2091_v37, %s5257_s7 }
 0x1f7   : > { %v1402_v1 = vpop.permute.xlu2 %1401 }
 0x1ff   : > { %v5836_v39 = vpop.permute.xlu2 %1387 }
 0x207   : > { %v1350_v41 = vpop.permute.xlu2 %1349 }
 0x20f   : > { %v1346_v62 = vpop.permute.xlu0 %1345  ;;  %v1336_v0 = vpop.permute.xlu2 %1335 }
 0x211   : > { %v1360_v44 = vpop.permute.xlu1 %1359 }
 0x217   : > { %v1374_v3 = vpop.permute.xlu0 %1373  ;;  %v5838_v58 = vpop.permute.xlu2 %1294 }
 0x21a   : > { %v1392_v48 = vpop.permute.xlu1 %1391 }
 0x21f   : > { %v1332_v24 = vpop.permute.xlu0 %1331  ;;  %v5840_v51 = vpop.permute.xlu2 %1361 }
 0x220   : > { %v1367_v56 = vsel %vm706_vm13, %v1360_v44, %v5840_v51 }
 0x222   : > { %v1364_v49 = vpop.permute.xlu1 %1363 }
 0x227   : > { %v1406_v7 = vpop.permute.xlu0 %1405  ;;  %v5842_v9 = vpop.permute.xlu2 %1393 }
 0x228   : > { %v1396_v40 = vsel %vm723_vm11, %v1392_v48, %v5842_v9  ;;  %v5948_v48 = vand.u32 4294901760, %v5742_v45 }
 0x229   : > { %v5876_v32 = vand.u32 4294901760, %v1396_v40 }
 0x22a   : > { %v1315_v55 = vpop.permute.xlu1 %1314 }
 0x22b   : > { %v5895_v27 = vsub.f32 %v1396_v40, %v5876_v32 }
 0x22d   : > { %v8537_v34 = vand.u32 4294901760, %v5895_v27 }
 0x22f   : > { %v1378_v10 = vpop.permute.xlu0 %1377  ;;  %v5844_v6 = vpop.permute.xlu2 %1365 }
 0x230   : > { %v1368_v61 = vsel %vm706_vm13, %v1364_v49, %v5844_v6 }
 0x232   : > { %v5846_v12 = vpop.permute.xlu1 %1347 }
 0x233   : > { %v1353_v50 = vsel %vm698_vm12, %v1346_v62, %v5846_v12 }
 0x234   : > { %v5915_v30 = vand.u32 4294901760, %v1353_v50 }
 0x237   : > { %v5848_v13 = vpop.permute.xlu0 %1403  ;;  %v5850_v11 = vpop.permute.xlu2 %1316 }
 0x238   : > { %v1409_v21 = vsel %vm199_vm6, %v1402_v1, %v5848_v13  ;;  %v1319_v28 = vsel %vm175_vm10, %v1315_v55, %v5850_v11  ;;  %v1507_v55 = vsub.f32 %v5895_v27, %v8537_v34 }
 0x239   : > { %v5864_v43 = vand.u32 4294901760, %v1409_v21 }
 0x23a   : > { %v5852_v5 = vpop.permute.xlu1 %1375 }
 0x23b   : > { %v1381_v20 = vsel %vm191_vm9, %v1374_v3, %v5852_v5  ;;  %v5887_v33 = vsub.f32 %v1409_v21, %v5864_v43 }
 0x23c   : > { %v1423_v18 = vsel %vm243_vm3, %v1368_v61, %v1381_v20 }
 0x23d   : > { %v5899_v47 = vand.u32 4294901760, %v1423_v18  ;;  %v8538_v25 = vand.u32 4294901760, %v5887_v33 }
 0x23f   : > { %v5854_v14 = vpop.permute.xlu0 %1389  ;;  %v5856_v15 = vpop.permute.xlu2 %1312  ;;  %v5927_v37 = vsub.f32 %v1423_v18, %v5899_v47 }
 0x240   : > { %v1395_v1 = vsel %vm723_vm11, %v5836_v39, %v5854_v14 }
 0x241   : > { %v8533_v40 = vand.u32 4294901760, %v5927_v37 }
 0x242   : > { %v5858_v17 = vpop.permute.xlu1 %1333 }
 0x243   : > { %v1339_v54 = vsel %vm690_vm14, %v1332_v24, %v5858_v17 }
 0x247   : > { %v5866_v22 = vpop.permute.xlu0 %1351  ;;  %v5868_v23 = vpop.permute.xlu2 %2092 }
 0x248   : > { %v5874_v26 = vsel %vm243_vm3, %v2084_v60, %v5868_v23  ;;  %v1354_v4 = vsel %vm698_vm12, %v1350_v41, %v5866_v22  ;;  %v1419_v41 = vsel %vm1324_vm7, %v1319_v28, %v1339_v54  ;;  %v5963_v60 = vsub.f32 %v1353_v50, %v5915_v30 }
 0x249   : > { %8633 = vst [vmem:[#allocation5_spill] sm:$0xff] %v5874_v26  ;;  %2135 = vrot.lane.b32.xlu0 %v5874_v26, %s5246_s25  ;;  %v1421_v2 = vsel %vm1283_vm4, %v1354_v4, %v1367_v56  ;;  %v1519_v54 = vsub.f32 %v5927_v37, %v8533_v40 }
 0x24a   : > { %v1408_v29 = vpop.permute.xlu1 %1407  ;;  %v5908_v46 = vand.u32 4294901760, %v1421_v2 }
 0x24b   : > { %v1410_v38 = vsel %vm199_vm6, %v1406_v7, %v1408_v29  ;;  %v1428_v59 = vsel %vm1283_vm4, %v1408_v29, 1.0 }
 0x24c   : > { %v1427_v16 = vsel %vm1283_vm4, %v1410_v38, 1.0  ;;  %v5945_v3 = vsub.f32 %v1421_v2, %v5908_v46  ;;  %v1441_v24 = vsel %vm1436_vm0, %v1428_v59, 0  ;;  %v1508_v38 = vand.u32 4294901760, %v1507_v55 }
 0x24d   : > { %v1438_v63 = vsel %vm1436_vm0, %v1427_v16, 0  ;;  %v5973_v4 = vand.u32 4294901760, %v1441_v24  ;;  %v5984_v2 = vsub.f32 %v5742_v45, %v5948_v48  ;;  %v8530_v59 = vand.u32 4294901760, %v5963_v60 }
 0x24e   : > { %v5901_v52 = vand.u32 4294901760, %v1438_v63  ;;  %v8532_v18 = vand.u32 4294901760, %v5945_v3  ;;  %v6023_v55 = vand.u32 4294901760, %v5842_v9  ;;  %vm8675_vm0 = vcmask 506880  }
 0x24f   : > { %v5903_v53 = vpop.permute.xlu0 %1337  ;;  %v8637_v26 = vand.u32 4294901760, %v5984_v2 }
 0x250   : > { %v5911_v57 = vsub.f32 %v1438_v63, %v5901_v52  ;;  %1448 = vmatpush.msrb.mxu0 %v5901_v52  ;;  %1629 = vmatpush.msrb.mxu3 %v5901_v52  ;;  %v1340_v36 = vsel %vm690_vm14, %v1336_v0, %v5903_v53  ;;  %v1501_v0 = vsub.f32 %v5887_v33, %v8538_v25  ;;  %v5987_v63 = vand.u32 4294901760, %v5848_v13 }
 0x251   : > { %v5951_v49 = vand.u32 4294901760, %v1340_v36 }
 0x252   : > { %1579 = vmatpush.msrb.mxu2 %v5911_v57  ;;  %v1380_v35 = vpop.permute.xlu1 %1379  ;;  %1450 = vmatpush.msrb.mxu0 %v5864_v43  ;;  %v8540_v19 = vand.u32 4294901760, %v5911_v57  ;;  %v1502_v29 = vand.u32 4294901760, %v1501_v0 }
 0x253   : > { %v1382_v62 = vsel %vm191_vm9, %v1378_v10, %v1380_v35  ;;  %1631 = vmatpush.msrb.mxu3 %v5864_v43  ;;  %v5959_v10 = vand.u32 4294901760, %v1419_v41  ;;  %v5980_v16 = vsub.f32 %v1340_v36, %v5951_v49  ;;  %v1426_v0 = vsel %vm1324_vm7, %v1380_v35, %v5854_v14 }
 0x254   : > { %v1425_v44 = vsel %vm1324_vm7, %v1382_v62, %v1395_v1  ;;  %1452 = vmatpush.msrb.mxu0 %v5876_v32  ;;  %1582 = vmatpush.msrb.mxu2 %v5887_v33  ;;  %v1495_v39 = vsub.f32 %v5911_v57, %v8540_v19  ;;  %v1424_v14 = vsel %vm243_vm3, %v5844_v6, %v5852_v5  ;;  %v6114_v19 = vand.u32 4294901760, %v5903_v53 }
 0x255   : > { %v5953_v7 = vand.u32 4294901760, %v1425_v44  ;;  %1633 = vmatpush.msrb.mxu3 %v5876_v32  ;;  %v5994_v28 = vsub.f32 %v1419_v41, %v5959_v10  ;;  %v6008_v41 = vsub.f32 %v1441_v24, %v5973_v4  ;;  %v8531_v24 = vand.u32 4294901760, %v5980_v16 }
 0x256   : > { %1585 = vmatpush.msrb.mxu2 %v5895_v27  ;;  %v1496_v21 = vand.u32 4294901760, %v1495_v39  ;;  %v1531_v35 = vsub.f32 %v5963_v60, %v8530_v59  ;;  %v1422_v5 = vsel %vm1283_vm4, %v5866_v22, %v5840_v51  ;;  %v6058_v59 = vand.u32 4294901760, %v1424_v14 }
 0x257   : > { %v5966_v20 = vpop.permute.xlu0 %1296  ;;  %1454 = vmatpush.msrb.mxu0 %v5953_v7  ;;  %1635 = vmatpush.msrb.mxu3 %v5953_v7  ;;  %v5971_v61 = vsub.f32 %v1425_v44, %v5953_v7  ;;  %v6073_v40 = vand.u32 4294901760, %v1422_v5 }
 0x258   : > { %1497 = vmatpush.msrb.mxu1 %v1496_v21  ;;  %v1299_v45 = vsel %vm675_vm15, %v5838_v58, %v5966_v20  ;;  %v1525_v58 = vsub.f32 %v5945_v3, %v8532_v18  ;;  %v6027_v21 = vsub.f32 %v5848_v13, %v5987_v63  ;;  %v8535_v13 = vand.u32 4294901760, %v5994_v28 }
 0x259   : > { %1456 = vmatpush.msrb.mxu0 %v5899_v47  ;;  %1588 = vmatpush.msrb.mxu2 %v5971_v61  ;;  %v8534_v56 = vand.u32 4294901760, %v5971_v61 }
 0x25a   : > { %1637 = vmatpush.msrb.mxu3 %v5899_v47  ;;  %v1311_v50 = vpop.permute.xlu1 %1310  ;;  %1503 = vmatpush.msrb.mxu1 %v1502_v29  ;;  %v8541_v18 = vand.u32 4294901760, %v6027_v21 }
 0x25b   : > { %v1318_v36 = vsel %vm175_vm10, %v1311_v50, %v5856_v15  ;;  %1458 = vmatpush.msrb.mxu0 %v5908_v46  ;;  %1591 = vmatpush.msrb.mxu2 %v5927_v37  ;;  %v1513_v1 = vsub.f32 %v5971_v61, %v8534_v56 }
 0x25c   : > { %v1417_v62 = vsel %vm243_vm3, %v1299_v45, %v1318_v36  ;;  %1639 = vmatpush.msrb.mxu3 %v5908_v46  ;;  %1509 = vmatpush.msrb.mxu1 %v1508_v38  ;;  %v1520_v38 = vand.u32 4294901760, %v1519_v54  ;;  %v1275_v45 = vld [vmem:[#allocation2 + $0x40] sm:$0xff]  ;;  %v6041_v36 = vand.u32 4294901760, %v1426_v0  ;;  %v1526_v54 = vand.u32 4294901760, %v1525_v58 }
 0x25d   : > { %v6017_v44 = vand.u32 4294901760, %v1417_v62  ;;  %1460 = vmatpush.msrb.mxu0 %v5915_v30  ;;  %1594 = vmatpush.msrb.mxu2 %v5945_v3  ;;  %v1514_v39 = vand.u32 4294901760, %v1513_v1  ;;  %v1537_v1 = vsub.f32 %v5980_v16, %v8531_v24  ;;  %v1431_v58 = vsel %vm1429_vm2, %v1275_v45, 0 }
 0x25e   : > { %1641 = vmatpush.msrb.mxu3 %v5915_v30  ;;  %v1543_v24 = vsub.f32 %v5994_v28, %v8535_v13  ;;  %v6076_v56 = vsub.f32 %v1426_v0, %v6041_v36  ;;  %v6087_v13 = vand.u32 4294901760, %v1431_v58  ;;  %v6090_v0 = vand.u32 4294901760, %v5846_v12 }
 0x25f   : > { %v1291_v29 = vpop.permute.xlu0 %1290  ;;  %1462 = vmatpush.msrb.mxu0 %v5951_v49  ;;  %1515 = vmatpush.msrb.mxu1 %v1514_v39  ;;  %v6038_v50 = vsub.f32 %v1417_v62, %v6017_v44  ;;  %v8536_v62 = vand.u32 4294901760, %v6008_v41  ;;  %v6056_v39 = vsub.f32 %v5842_v9, %v6023_v55  ;;  %v1532_v9 = vand.u32 4294901760, %v1531_v35 }
 0x260   : > { %1597 = vmatpush.msrb.mxu2 %v5963_v60  ;;  %1643 = vmatpush.msrb.mxu3 %v5951_v49  ;;  %v1544_v25 = vand.u32 4294901760, %v1543_v24  ;;  %v1821_v6 = vsub.f32 %v6027_v21, %v8541_v18  ;;  %v1276_v18 = vld [vmem:[#allocation2 + $0x50] sm:$0xf] }
 0x261   : > { %1464 = vmatpush.msrb.mxu0 %v5959_v10  ;;  %1521 = vmatpush.msrb.mxu1 %v1520_v38  ;;  %v8539_v22 = vand.u32 4294901760, %v6038_v50 }
 0x262   : > { %1600 = vmatpush.msrb.mxu2 %v5980_v16  ;;  %1645 = vmatpush.msrb.mxu3 %v5959_v10  ;;  %v6062_v51 = vpop.permute.xlu1 %1292 }
 0x263   : > { %v1298_v38 = vsel %vm675_vm15, %v1291_v29, %v6062_v51  ;;  %1466 = vmatpush.msrb.mxu0 %v6017_v44  ;;  %1527 = vmatpush.msrb.mxu1 %v1526_v54  ;;  %v1538_v29 = vand.u32 4294901760, %v1537_v1  ;;  %v1815_v54 = vsub.f32 %v6008_v41, %v8536_v62  ;;  %v8544_v1 = vand.u32 4294901760, %v6056_v39 }
 0x264   : > { %v1415_v45 = vsel %vm1283_vm4, %v5757_v8, %v1298_v38  ;;  %1603 = vmatpush.msrb.mxu2 %v5994_v28  ;;  %1647 = vmatpush.msrb.mxu3 %v6017_v44  ;;  %v6093_v8 = vsub.f32 %v1424_v14, %v6058_v59  ;;  %v2085_v38 = vld.sshfl [vmem:[#allocation1 + $0x8] sm:$0xff pattern:$0x75316420]  ;;  %v1420_v62 = vsel %vm1324_vm7, %v5850_v11, %v5858_v17  ;;  %vm8671_vm7 = vcmask 1014784  }
 0x265   : > { %v6082_v35 = vand.u32 4294901760, %v1415_v45  ;;  %1533 = vmatpush.msrb.mxu1 %v1532_v9  ;;  %v1549_v9 = vsub.f32 %v6038_v50, %v8539_v22  ;;  %v6111_v22 = vsub.f32 %v1422_v5, %v6073_v40  ;;  %v1816_v5 = vand.u32 4294901760, %v1815_v54 }
 0x266   : > { %1606 = vmatpush.msrb.mxu2 %v6038_v50  ;;  %v6141_v17 = vand.u32 4294901760, %v1420_v62  ;;  %v1822_v54 = vand.u32 4294901760, %v1821_v6  ;;  %v8639_v6 = vand.u32 4294901760, %v5887_v33  ;;  %v8641_v33 = vand.u32 4294901760, %v5895_v27 }
 0x267   : > { %v2095_v34 = vpop.permute.xlu0 %2094  ;;  %1468 = vmatpush.msrb.mxu0 %v6082_v35  ;;  %1539 = vmatpush.msrb.mxu1 %v1538_v29  ;;  %v6105_v14 = vsub.f32 %v1415_v45, %v6082_v35  ;;  %v6129_v29 = vsub.f32 %v1431_v58, %v6087_v13  ;;  %v1418_v58 = vsel %vm243_vm3, %v5966_v20, %v5856_v15  ;;  %v1434_v20 = vsel %vm1429_vm2, %v1276_v18, 0 }
 0x268   : > { %v6118_v11 = vsel %vm2096_vm8, %v5868_v23, %v2095_v34  ;;  %1649 = vmatpush.msrb.mxu3 %v6082_v35  ;;  %v6133_v34 = vsub.f32 %v5846_v12, %v6090_v0  ;;  %v8636_v12 = vand.u32 4294901760, %v5911_v57  ;;  %v8640_v18 = vand.u32 4294901760, %v6093_v8 }
 0x269   : > { %8634 = vst [vmem:[#allocation6_spill] sm:$0xff] %v6118_v11  ;;  %v6124_v24 = vsel %vm243_vm3, %v2085_v38, %v6118_v11  ;;  %1470 = vmatpush.msrb.mxu0 %v5948_v48  ;;  %1545 = vmatpush.msrb.mxu1 %v1544_v25  ;;  %v8546_v45 = vand.u32 4294901760, %v6105_v14  ;;  %v1550_v38 = vand.u32 4294901760, %v1549_v9  ;;  %v1827_v25 = vsub.f32 %v6056_v39, %v8544_v1 }
 0x26a   : > { %8635 = vst [vmem:[#allocation7_spill] sm:$0xff] %v6124_v24  ;;  %1609 = vmatpush.msrb.mxu2 %v6105_v14  ;;  %1651 = vmatpush.msrb.mxu3 %v5948_v48  ;;  %v1561_v1 = vsub.f32 %v5984_v2, %v8637_v26  ;;  %v8638_v11 = vand.u32 4294901760, %v6076_v56  ;;  %v1416_v26 = vsel %vm1283_vm4, %v5790_v42, %v6062_v51  ;;  %v1850_v42 = vand.u32 4294901760, %v6133_v34 }
 0x26b   : > { %1672 = vmatpush.msra.mxu0 %v8636_v12  ;;  %v1555_v9 = vsub.f32 %v6105_v14, %v8546_v45  ;;  %2137 = vrot.lane.b32.xlu1 %v6124_v24, %s5246_s25  ;;  %v6174_v12 = vand.u32 4294901760, %v1418_v58  ;;  %v1839_v45 = vsub.f32 %v6093_v8, %v8640_v18  ;;  %v6182_v51 = vsub.f32 %v1420_v62, %v6141_v17 }
 0x26c   : > { %1817 = vmatpush.msra.mxu3 %v1816_v5  ;;  %1551 = vmatpush.msrb.mxu1 %v1550_v38  ;;  %v1833_v15 = vsub.f32 %v6076_v56, %v8638_v11  ;;  %v6163_v5 = vsub.f32 %v5903_v53, %v6114_v19  ;;  %v6172_v11 = vand.u32 4294901760, %v6129_v29  ;;  %v1828_v53 = vand.u32 4294901760, %v1827_v25 }
 0x26d   : > { %1612 = vmatpush.msrb.mxu2 %v5984_v2  ;;  %1676 = vmatpush.msra.mxu0 %v8639_v6  ;;  %v1556_v38 = vand.u32 4294901760, %v1555_v9  ;;  %v1562_v9 = vand.u32 4294901760, %v1561_v1  ;;  %v6186_v6 = vand.u32 4294901760, %v1434_v20  ;;  %v6188_v57 = vand.u32 4294901760, %v1416_v26 }
 0x26e   : > { %1823 = vmatpush.msra.mxu3 %v1822_v54  ;;  %v1834_v25 = vand.u32 4294901760, %v1833_v15  ;;  %v8642_v54 = vand.u32 4294901760, %v6111_v22  ;;  %v8643_v62 = vand.u32 4294901760, %v5971_v61  ;;  %v1474_v27 = vsub.f32 %v6129_v29, %v6172_v11  ;;  %1615 = vmatmul.f32.vlgmr.msrb.gmra.mxu2 %v6129_v29 }
 0x26f   : > { %1768 = vmatpush.msra.mxu2 %v5973_v4  ;;  %1680 = vmatpush.msra.mxu0 %v8641_v33  ;;  %v1856_v1 = vand.u32 4294901760, %v6163_v5  ;;  %v1840_v15 = vand.u32 4294901760, %v1839_v45  ;;  %v8644_v61 = vand.u32 4294901760, %v5927_v37  ;;  %v1862_v33 = vand.u32 4294901760, %v6182_v51 }
 0x270   : > { %1557 = vmatpush.msrb.mxu1 %v1556_v38  ;;  %1829 = vmatpush.msra.mxu3 %v1828_v53  ;;  %v1845_v18 = vsub.f32 %v6111_v22, %v8642_v54  ;;  %v6200_v38 = vsub.f32 %v1418_v58, %v6174_v12  ;;  %v1851_v53 = vsub.f32 %v6133_v34, %v1850_v42  ;;  %v6214_v58 = vand.u32 4294901760, %v5784_v31 }
 0x271   : > { %1770 = vmatpush.msra.mxu2 %v5987_v63  ;;  %1684 = vmatpush.msra.mxu0 %v8643_v62  ;;  %v8645_v37 = vand.u32 4294901760, %v5945_v3  ;;  %v8646_v62 = vand.u32 4294901760, %v5963_v60  ;;  %v8647_v60 = vand.u32 4294901760, %v5980_v16  ;;  %vm8678_vm2 = vcmask 752640  }
 0x272   : > { %1563 = vmatpush.msrb.mxu1 %v1562_v9  ;;  %1835 = vmatpush.msra.mxu3 %v1834_v25  ;;  %v6211_v9 = vsub.f32 %v1434_v20, %v6186_v6  ;;  %v6217_v25 = vsub.f32 %v1416_v26, %v6188_v57  ;;  %v1846_v45 = vand.u32 4294901760, %v1845_v18  ;;  %v1857_v20 = vsub.f32 %v6163_v5, %v1856_v1 }
 0x273   : > { %1772 = vmatpush.msra.mxu2 %v6023_v55  ;;  %1688 = vmatpush.msra.mxu0 %v8644_v61  ;;  %v1852_v26 = vand.u32 4294901760, %v1851_v53  ;;  %v1868_v54 = vand.u32 4294901760, %v6200_v38  ;;  %v6241_v18 = vsub.f32 %v5784_v31, %v6214_v58 }
 0x274   : > { %1731 = vmatpush.msra.mxu1 %v5901_v52  ;;  %1841 = vmatpush.msra.mxu3 %v1840_v15  ;;  %v6223_v52 = vand.u32 4294901760, %v1474_v27  ;;  %v6237_v3 = vand.u32 4294901760, %v6211_v9  ;;  %v1874_v27 = vand.u32 4294901760, %v6217_v25 }
 0x275   : > { %1774 = vmatpush.msra.mxu2 %v6041_v36  ;;  %1692 = vmatpush.msra.mxu0 %v8645_v37  ;;  %v1869_v31 = vsub.f32 %v6200_v38, %v1868_v54  ;;  %v1880_v61 = vand.u32 4294901760, %v6241_v18 }
 0x276   : > { %1733 = vmatpush.msra.mxu1 %v5864_v43  ;;  %1847 = vmatpush.msra.mxu3 %v1846_v45  ;;  %v1863_v43 = vsub.f32 %v6182_v51, %v1862_v33  ;;  %v1482_v53 = vsub.f32 %v6211_v9, %v6237_v3  ;;  %v1875_v16 = vsub.f32 %v6217_v25, %v1874_v27  ;;  %v8649_v45 = vand.u32 4294901760, %v6038_v50 }
 0x277   : > { %1776 = vmatpush.msra.mxu2 %v6058_v59  ;;  %1696 = vmatpush.msra.mxu0 %v8646_v62  ;;  %v1870_v37 = vand.u32 4294901760, %v1869_v31  ;;  %v8651_v50 = vand.u32 4294901760, %v5984_v2  ;;  %v8655_v2 = vand.u32 4294901760, %v6076_v56 }
 0x278   : > { %1735 = vmatpush.msra.mxu1 %v5876_v32  ;;  %1853 = vmatpush.msra.mxu3 %v1852_v26  ;;  %v1858_v32 = vand.u32 4294901760, %v1857_v20  ;;  %v1864_v15 = vand.u32 4294901760, %v1863_v43  ;;  %v8650_v20 = vand.u32 4294901760, %v6105_v14  ;;  %v1876_v26 = vand.u32 4294901760, %v1875_v16 }
 0x279   : > { %1778 = vmatpush.msra.mxu2 %v6073_v40  ;;  %1476 = vmatmul.f32.vlgmr.msrb.gmra.mxu0 %v6223_v52 }
 0x27a   : > { %1737 = vmatpush.msra.mxu1 %v5953_v7  ;;  %1700 = vmatpush.msra.mxu0 %v8647_v60  ;;  %v8648_v7 = vand.u32 4294901760, %v5994_v28  ;;  %v6269_v28 = vand.u32 4294901760, %v1482_v53 }
 0x27b   : > { %1780 = vmatpush.msra.mxu2 %v6090_v0  ;;  %1859 = vmatpush.msra.mxu3 %v1858_v32 }
 0x27c   : > { %1565 = vmatmul.f32.vlgmr.msrb.gmra.mxu1 %v6087_v13  ;;  %1704 = vmatpush.msra.mxu0 %v8648_v7 }
 0x27d   : > { %1739 = vmatpush.msra.mxu1 %v5899_v47  ;;  %1782 = vmatpush.msra.mxu2 %v6114_v19  ;;  %v1881_v47 = vsub.f32 %v6241_v18, %v1880_v61 }
 0x27e   : > { %1865 = vmatpush.msra.mxu3 %v1864_v15  ;;  %1708 = vmatpush.msra.mxu0 %v8649_v45 }
 0x27f   : > { %1741 = vmatpush.msra.mxu1 %v5908_v46  ;;  %1784 = vmatpush.msra.mxu2 %v6141_v17  ;;  %v1882_v46 = vand.u32 4294901760, %v1881_v47 }
 0x280   : > { %1871 = vmatpush.msra.mxu3 %v1870_v37  ;;  %1712 = vmatpush.msra.mxu0 %v8650_v20 }
 0x281   : > { %1655 = vmatmul.f32.vlgmr.msrb.gmra.mxu3 %v6172_v11  ;;  %1743 = vmatpush.msra.mxu1 %v5915_v30  ;;  %v8652_v30 = vand.u32 4294901760, %v6008_v41 }
 0x282   : > { %1786 = vmatpush.msra.mxu2 %v6174_v12  ;;  %1877 = vmatpush.msra.mxu3 %v1876_v26 }
 0x283   : > { %1484 = vmatmul.f32.gmra.mxu0 %v6269_v28  ;;  %1745 = vmatpush.msra.mxu1 %v5951_v49  ;;  %v8653_v49 = vand.u32 4294901760, %v6027_v21 }
 0x284   : > { %1716 = vmatpush.msra.mxu0 %v8651_v50  ;;  %1788 = vmatpush.msra.mxu2 %v6188_v57 }
 0x285   : > { %1883 = vmatpush.msra.mxu3 %v1882_v46  ;;  %1569 = vmatmul.f32.gmra.mxu1 %v6186_v6 }
 0x286   : > { %1899 = vmatpush.msrb.mxu0 %v6008_v41  ;;  %1747 = vmatpush.msra.mxu1 %v5959_v10  ;;  %v8654_v10 = vand.u32 4294901760, %v6056_v39  ;;  %v8656_v41 = vand.u32 4294901760, %v6093_v8 }
 0x287   : > { %2051 = vmatpush.msrb.mxu3 %v5973_v4  ;;  %1790 = vmatpush.msra.mxu2 %v6214_v58 }
 0x288   : > { %1902 = vmatpush.msrb.mxu0 %v6027_v21  ;;  %1620 = vmatmul.f32.gmra.mxu2 %v6211_v9 }
 0x289   : > { %1992 = vmatpush.msrb.mxu2 %v8652_v30  ;;  %2053 = vmatpush.msrb.mxu3 %v5987_v63 }
 0x28a   : > { %1749 = vmatpush.msra.mxu1 %v6017_v44  ;;  %1905 = vmatpush.msrb.mxu0 %v6056_v39 }
 0x28b   : > { %1996 = vmatpush.msrb.mxu2 %v8653_v49  ;;  %2055 = vmatpush.msrb.mxu3 %v6023_v55 }
 0x28c   : > { %1661 = vmatmul.f32.gmra.mxu3 %v6237_v3  ;;  %1751 = vmatpush.msra.mxu1 %v6082_v35 }
 0x28d   : > { %1718 = vmatmul.f32.vlgmr.msra.gmra.mxu0 %v6087_v13  ;;  %2000 = vmatpush.msrb.mxu2 %v8654_v10 }
 0x28e   : > { %1908 = vmatpush.msrb.mxu0 %v6076_v56  ;;  %2057 = vmatpush.msrb.mxu3 %v6041_v36 }
 0x28f   : > { %1753 = vmatpush.msra.mxu1 %v5948_v48  ;;  %2004 = vmatpush.msrb.mxu2 %v8655_v2  ;;  %v8657_v48 = vand.u32 4294901760, %v6111_v22 }
 0x290   : > { %1755 = vmatmul.f32.vlgmr.msra.gmra.mxu1 %v6087_v13  ;;  %1911 = vmatpush.msrb.mxu0 %v6093_v8 }
 0x291   : > { %1949 = vmatpush.msrb.mxu1 %v5973_v4  ;;  %2059 = vmatpush.msrb.mxu3 %v6058_v59 }
 0x292   : > { %1914 = vmatpush.msrb.mxu0 %v6111_v22  ;;  %2008 = vmatpush.msrb.mxu2 %v8656_v41 }
 0x293   : > { %1951 = vmatpush.msrb.mxu1 %v5987_v63  ;;  %2061 = vmatpush.msrb.mxu3 %v6073_v40 }
 0x294   : > { %1796 = vmatmul.f32.vlgmr.msra.gmra.mxu2 %v6223_v52  ;;  %1917 = vmatpush.msrb.mxu0 %v6133_v34 }
 0x295   : > { %1953 = vmatpush.msrb.mxu1 %v6023_v55  ;;  %2012 = vmatpush.msrb.mxu2 %v8657_v48 }
 0x296   : > { %2063 = vmatpush.msrb.mxu3 %v6090_v0  ;;  %1722 = vmatmul.f32.gmra.mxu0 %v6186_v6 }
 0x297   : > { %1885 = vmatmul.f32.vlgmr.msra.gmra.mxu3 %v6087_v13  ;;  %1920 = vmatpush.msrb.mxu0 %v6163_v5 }
 0x298   : > { %1955 = vmatpush.msrb.mxu1 %v6041_v36  ;;  %2016 = vmatpush.msrb.mxu2 %v1850_v42 }
 0x299   : > { %2065 = vmatpush.msrb.mxu3 %v6114_v19  ;;  %1759 = vmatmul.f32.gmra.mxu1 %v6186_v6 }
 0x29a   : > { %1923 = vmatpush.msrb.mxu0 %v6182_v51  ;;  %1957 = vmatpush.msrb.mxu1 %v6058_v59 }
 0x29b   : > { %2020 = vmatpush.msrb.mxu2 %v1856_v1  ;;  %2067 = vmatpush.msrb.mxu3 %v6141_v17 }
 0x29c   : > { %1926 = vmatpush.msrb.mxu0 %v6200_v38  ;;  %1959 = vmatpush.msrb.mxu1 %v6073_v40 }
 0x29d   : > { %2024 = vmatpush.msrb.mxu2 %v1862_v33  ;;  %2069 = vmatpush.msrb.mxu3 %v6174_v12 }
 0x29e   : > { %1804 = vmatmul.f32.gmra.mxu2 %v6269_v28  ;;  %1929 = vmatpush.msrb.mxu0 %v6217_v25 }
 0x29f   : > { %1961 = vmatpush.msrb.mxu1 %v6090_v0  ;;  %2028 = vmatpush.msrb.mxu2 %v1868_v54 }
 0x2a0   : > { %2071 = vmatpush.msrb.mxu3 %v6188_v57  ;;  %1932 = vmatpush.msrb.mxu0 %v6241_v18 }
 0x2a1   : > { %1889 = vmatmul.f32.gmra.mxu3 %v6186_v6  ;;  %1963 = vmatpush.msrb.mxu1 %v6114_v19 }
 0x2a2   : > { %2032 = vmatpush.msrb.mxu2 %v1874_v27  ;;  %2073 = vmatpush.msrb.mxu3 %v6214_v58 }
 0x2a3   : > { %1965 = vmatpush.msrb.mxu1 %v6141_v17  ;;  %1935 = vmatmul.f32.vlgmr.msrb.gmra.mxu0 %v6129_v29 }
 0x2a4   : > { %2036 = vmatpush.msrb.mxu2 %v1880_v61 }
 0x2a5   : > { %1967 = vmatpush.msrb.mxu1 %v6174_v12 }
 0x2a6   : > { %2038 = vmatmul.f32.vlgmr.msrb.gmra.mxu2 %v6087_v13 }
 0x2a7   : > { %1969 = vmatpush.msrb.mxu1 %v6188_v57 }
 0x2a9   : > { %2075 = vmatmul.f32.vlgmr.msrb.gmra.mxu3 %v6087_v13  ;;  %1971 = vmatpush.msrb.mxu1 %v6214_v58 }
 0x2aa   : > { %1975 = vmatmul.f32.vlgmr.msrb.gmra.mxu1 %v6172_v11 }
 0x2ab   : > { %1940 = vmatmul.f32.gmra.mxu0 %v6211_v9 }
 0x2ae   : > { %2042 = vmatmul.f32.gmra.mxu2 %v6186_v6 }
 0x2b1   : > { %2079 = vmatmul.f32.gmra.mxu3 %v6186_v6 }
 0x2b2   : > { %1981 = vmatmul.f32.gmra.mxu1 %v6237_v3 }
 0x2bb   : > { %v2136_v19 = vpop.permute.xlu0 %2135 }
 0x2dd   : > { %v2138_v40 = vpop.permute.xlu1 %2137 }
 0x2de   : > { %v6369_v4 = vsel %vm199_vm6, %v2136_v19, %v2138_v40  ;;  %v6372_v56 = vsel %vm215_vm1, %v2138_v40, 0.0 }
 0x2df   : > { %8658 = vst [vmem:[#allocation8_spill] sm:$0xff] %v6372_v56  ;;  %v6375_v63 = vrot.slane %v6369_v4, 4  ;;  %2264 = vrot.lane.b32.xlu0 %v6372_v56, %s5243_s22  ;;  %2262 = vrot.lane.b32.xlu2 %v6369_v4, %s5243_s22  ;;  %v6390_v59 = vrot.slane %v6372_v56, 4 }
 0x2e1   : > { %2244 = vrot.lane.b32.xlu1 %v6375_v63, %s5247_s26 }
 0x2e7   : > { %2228 = vrot.lane.b32.xlu0 %v6372_v56, %s5246_s25  ;;  %2226 = vrot.lane.b32.xlu2 %v6369_v4, %s5246_s25 }
 0x2e9   : > { %2208 = vrot.lane.b32.xlu1 %v6375_v63, %s5249_s28 }
 0x2ef   : > { %2192 = vrot.lane.b32.xlu0 %v6372_v56, %s5248_s27  ;;  %2190 = vrot.lane.b32.xlu2 %v6369_v4, %s5248_s27 }
 0x2f1   : > { %2174 = vrot.lane.b32.xlu1 %v6390_v59, %s5250_s29  ;;  %v1616_v36 = vpop.f32.mrf.mxu2 }
 0x2f6   : > { %v1477_v44 = vpop.f32.mrf.mxu0 }
 0x2f7   : > { %2300 = vrot.lane.b32.xlu0 %v6372_v56, %s5244_s23  ;;  %2298 = vrot.lane.b32.xlu2 %v6369_v4, %s5244_s23 }
 0x2f9   : > { %v1566_v55 = vpop.f32.mrf.mxu1  ;;  %2280 = vrot.lane.b32.xlu1 %v6375_v63, %s5245_s24 }
 0x2fa   : > { %v1567_v21 = vadd.f32 %v1566_v55, %v1477_v44 }
 0x2fc   : > { %v1617_v22 = vadd.f32 %v1616_v36, %v1567_v21 }
 0x2ff   : > { %3005 = vrot.lane.b32.xlu0 %v6372_v56, %s5249_s28  ;;  %3003 = vrot.lane.b32.xlu2 %v6369_v4, %s5249_s28 }
 0x300   : > { %v1485_v13 = vpop.f32.mrf.mxu0 }
 0x301   : > { %2982 = vrot.lane.b32.xlu1 %v6375_v63, %s5254_s4 }
 0x302   : > { %v1570_v39 = vpop.f32.mrf.mxu1 }
 0x303   : > { %v1571_v8 = vadd.f32 %v1570_v39, %v1485_v13 }
 0x304   : > { %v1656_v35 = vpop.f32.mrf.mxu3 }
 0x305   : > { %v1657_v0 = vadd.f32 %v1656_v35, %v1617_v22 }
 0x307   : > { %2963 = vrot.lane.b32.xlu0 %v6372_v56, %s5253_s3  ;;  %2961 = vrot.lane.b32.xlu2 %v6369_v4, %s5253_s3 }
 0x30a   : > { %v1719_v14 = vpop.f32.mrf.mxu0 }
 0x30b   : > { %v1720_v17 = vadd.f32 %v1719_v14, %v1657_v0  ;;  %v1621_v29 = vpop.f32.mrf.mxu2 }
 0x30c   : > { %v1622_v57 = vadd.f32 %v1621_v29, %v1571_v8 }
 0x30d   : > { %v1756_v34 = vpop.f32.mrf.mxu1 }
 0x30e   : > { %v1757_v5 = vadd.f32 %v1756_v34, %v1720_v17 }
 0x30f   : > { %v1662_v11 = vpop.f32.mrf.mxu3  ;;  %2246 = vrot.lane.b32.xlu2 %v6390_v59, %s5247_s26  ;;  %2172 = vrot.lane.b32.xlu0 %v6375_v63, %s5250_s29 }
 0x310   : > { %v2104_v12 = vrot.slane %v1757_v5, 6  ;;  %v1663_v42 = vadd.f32 %v1662_v11, %v1622_v57 }
 0x312   : > { %2110 = vrot.lane.b32.xlu1 %v2104_v12, %s5257_s7 }
 0x313   : > { %v1723_v51 = vpop.f32.mrf.mxu0 }
 0x314   : > { %v1724_v6 = vadd.f32 %v1723_v51, %v1663_v42 }
 0x316   : > { %v1760_v1 = vpop.f32.mrf.mxu1 }
 0x317   : > { %v1761_v38 = vadd.f32 %v1760_v1, %v1724_v6  ;;  %v1797_v33 = vpop.f32.mrf.mxu2  ;;  %2210 = vrot.lane.b32.xlu2 %v6390_v59, %s5249_s28 }
 0x319   : > { %v2106_v9 = vrot.slane %v1761_v38, 6 }
 0x31a   : > { %v1886_v58 = vpop.f32.mrf.mxu3 }
 0x31b   : > { %v2107_v25 = vsel %vm1283_vm4, %v2104_v12, %v2106_v9  ;;  %v1887_v62 = vadd.f32 %v1886_v58, %v1797_v33  ;;  %v8663_v9 = vld [vmem:[#allocation6_spill] sm:$0xff] }
 0x31c   : > { %2114 = vrot.lane.b32.xlu0 %v2107_v25, %s5257_s7 }
 0x31f   : > { %2282 = vrot.lane.b32.xlu2 %v6390_v59, %s5245_s24 }
 0x320   : > { %v1936_v54 = vpop.f32.mrf.mxu0 }
 0x321   : > { %v1805_v52 = vpop.f32.mrf.mxu2  ;;  %v1937_v3 = vadd.f32 %v1936_v54, %v1887_v62 }
 0x324   : > { %v1890_v43 = vpop.f32.mrf.mxu3 }
 0x325   : > { %v1891_v60 = vadd.f32 %v1890_v43, %v1805_v52 }
 0x327   : > { %v1976_v18 = vpop.f32.mrf.mxu1  ;;  %2984 = vrot.lane.b32.xlu2 %v6390_v59, %s5254_s4 }
 0x328   : > { %v1977_v27 = vadd.f32 %v1976_v18, %v1937_v3  ;;  %v1941_v15 = vpop.f32.mrf.mxu0 }
 0x329   : > { %v2039_v32 = vpop.f32.mrf.mxu2  ;;  %v1942_v7 = vadd.f32 %v1941_v15, %v1891_v60 }
 0x32a   : > { %v2040_v31 = vadd.f32 %v2039_v32, %v1977_v27 }
 0x32c   : > { %v2076_v53 = vpop.f32.mrf.mxu3 }
 0x32d   : > { %v2077_v61 = vadd.f32 %v2076_v53, %v2040_v31 }
 0x32f   : > { %v2105_v16 = vrot.slane %v2077_v61, 6  ;;  %v1982_v45 = vpop.f32.mrf.mxu1 }
 0x330   : > { %v1983_v37 = vadd.f32 %v1982_v45, %v1942_v7 }
 0x331   : > { %v2043_v28 = vpop.f32.mrf.mxu2  ;;  %2112 = vrot.lane.b32.xlu2 %v2105_v16, %s5257_s7 }
 0x332   : > { %v2044_v47 = vadd.f32 %v2043_v28, %v1983_v37 }
 0x334   : > { %v2080_v20 = vpop.f32.mrf.mxu3 }
 0x335   : > { %v2081_v26 = vadd.f32 %v2080_v20, %v2044_v47 }
 0x337   : > { %v2108_v46 = vrot.slane %v2081_v26, 6 }
 0x339   : > { %v2109_v50 = vsel %vm1283_vm4, %v2105_v16, %v2108_v46  ;;  %v2263_v30 = vpop.permute.xlu2 %2262 }
 0x33a   : > { %2116 = vrot.lane.b32.xlu1 %v2109_v50, %s5257_s7 }
 0x341   : > { %v6430_v49 = vpop.permute.xlu2 %2226 }
 0x349   : > { %v6432_v10 = vpop.permute.xlu2 %2190 }
 0x351   : > { %v2265_v2 = vpop.permute.xlu0 %2264  ;;  %v6434_v41 = vpop.permute.xlu2 %2298 }
 0x352   : > { %v2274_v48 = vsel %vm215_vm1, %v2263_v30, %v2265_v2 }
 0x353   : > { %v6437_v19 = vand.u32 4294901760, %v2274_v48  ;;  %v6439_v40 = vpop.permute.xlu1 %2244 }
 0x355   : > { %v6442_v44 = vsub.f32 %v2274_v48, %v6437_v19  ;;  %2329 = vmatpush.msra.mxu0 %v6437_v19  ;;  %2525 = vmatpush.msra.mxu3 %v6437_v19 }
 0x357   : > { %v8547_v55 = vand.u32 4294901760, %v6442_v44  ;;  %2472 = vmatpush.msra.mxu2 %v6442_v44 }
 0x359   : > { %v2372_v21 = vsub.f32 %v6442_v44, %v8547_v55  ;;  %v6451_v13 = vpop.permute.xlu0 %2228  ;;  %v6453_v36 = vpop.permute.xlu2 %3003 }
 0x35a   : > { %8659 = vst [vmem:[#allocation9_spill] sm:$0xff] %v6451_v13 }
 0x35b   : > { %v2373_v39 = vand.u32 4294901760, %v2372_v21  ;;  %v6455_v22 = vpop.permute.xlu1 %2208 }
 0x35d   : > { %2374 = vmatpush.msra.mxu1 %v2373_v39 }
 0x361   : > { %v6457_v35 = vpop.permute.xlu0 %2192  ;;  %v6459_v0 = vpop.permute.xlu2 %2961 }
 0x362   : > { %8660 = vst [vmem:[#allocation10_spill] sm:$0xff] %v6459_v0 }
 0x363   : > { %v6461_v8 = vpop.permute.xlu1 %2174 }
 0x369   : > { %v6463_v14 = vpop.permute.xlu0 %2300  ;;  %v6465_v17 = vpop.permute.xlu2 %2246 }
 0x36b   : > { %v6467_v29 = vpop.permute.xlu1 %2280 }
 0x371   : > { %v6469_v34 = vpop.permute.xlu0 %3005  ;;  %v6471_v57 = vpop.permute.xlu2 %2210 }
 0x373   : > { %v6477_v12 = vpop.permute.xlu1 %2982 }
 0x379   : > { %v6473_v5 = vpop.permute.xlu0 %2963  ;;  %v6475_v11 = vpop.permute.xlu2 %2282 }
 0x37a   : > { %8661 = vst [vmem:[#allocation11_spill] sm:$0xff] %v6473_v5 }
 0x381   : > { %v6479_v42 = vpop.permute.xlu2 %2984  ;;  %v6481_v6 = vpop.permute.xlu0 %2172 }
 0x384   : > { %v2111_v51 = vpop.permute.xlu1 %2110 }
 0x385   : > { %v6485_v1 = vsel %vm1283_vm4, %v5868_v23, %v2111_v51 }
 0x386   : > { %8662 = vst [vmem:[#allocation12_spill] sm:$0xff] %v6485_v1  ;;  %2139 = vrot.lane.b32.xlu2 %v6485_v1, %s5246_s25 }
 0x38b   : > { %v2113_v38 = vpop.permute.xlu2 %2112 }
 0x38c   : > { %v2118_v33 = vsel %vm2096_vm8, %v2111_v51, %v2113_v38 }
 0x38d   : > { %v6492_v58 = vsel %vm1283_vm4, %v8663_v9, %v2118_v33 }
 0x38e   : > { %8664 = vst [vmem:[#allocation6_spill] sm:$0xff] %v6492_v58  ;;  %v6494_v25 = vpop.permute.xlu0 %2114  ;;  %2141 = vrot.lane.b32.xlu0 %v6492_v58, %s5246_s25 }
 0x38f   : > { %8665 = vst [vmem:[#allocation13_spill] sm:$0xff] %v6494_v25  ;;  %2143 = vrot.lane.b32.xlu1 %v6494_v25, %s5246_s25 }
 0x3ac   : > { %v2117_v23 = vpop.permute.xlu1 %2116 }
 0x3ad   : > { %v6502_v52 = vsel %vm2096_vm8, %v6494_v25, %v2117_v23  ;;  %vm8680_vm8 = vmmov %vm8678_vm2 }
 0x3ae   : > { %8666 = vst [vmem:[#allocation14_spill] sm:$0xff] %v6502_v52  ;;  %2145 = vrot.lane.b32.xlu2 %v6502_v52, %s5246_s25 }
 0x3e0   : > { %v2140_v54 = vpop.permute.xlu2 %2139 }
 0x400   : > { %v2142_v62 = vpop.permute.xlu0 %2141 }
 0x401   : > { %v6507_v43 = vsel %vm199_vm6, %v2140_v54, %v2142_v62  ;;  %v6510_v3 = vsel %vm215_vm1, %v2142_v62, 0.0  ;;  %v2144_v60 = vpop.permute.xlu1 %2143 }
 0x402   : > { %8667 = vst [vmem:[#allocation15_spill] sm:$0xff] %v6510_v3  ;;  %2232 = vrot.lane.b32.xlu1 %v6510_v3, %s5246_s25  ;;  %2230 = vrot.lane.b32.xlu0 %v6507_v43, %s5246_s25  ;;  %v2164_v18 = vrot.slane %v6507_v43, 4  ;;  %v2166_v53 = vrot.slane %v6510_v3, 4 }
 0x403   : > { %2304 = vrot.lane.b32.xlu2 %v6510_v3, %s5244_s23 }
 0x404   : > { %v6525_v27 = vsel %vm243_vm3, %v6375_v63, %v2164_v18  ;;  %v6556_v61 = vsel %vm243_vm3, %v6390_v59, %v2166_v53 }
 0x408   : > { %v2146_v32 = vpop.permute.xlu2 %2145 }
 0x409   : > { %v6530_v31 = vsel %vm199_vm6, %v2144_v60, %v2146_v32  ;;  %v6545_v15 = vsel %vm215_vm1, %v2146_v32, 0.0 }
 0x40a   : > { %2196 = vrot.lane.b32.xlu1 %v6510_v3, %s5248_s27  ;;  %2194 = vrot.lane.b32.xlu0 %v6507_v43, %s5248_s27  ;;  %8668 = vst [vmem:[#allocation16_spill] sm:$0xff] %v6530_v31  ;;  %v2170_v7 = vrot.slane %v6545_v15, 4  ;;  %v2168_v45 = vrot.slane %v6530_v31, 4 }
 0x40b   : > { %2176 = vrot.lane.b32.xlu2 %v6525_v27, %s5250_s29  ;;  %8669 = vst [vmem:[#allocation17_spill] sm:$0xff] %v6545_v15 }
 0x40c   : > { %v2171_v16 = vsel %vm243_vm3, %v2166_v53, %v2170_v7  ;;  %v6590_v37 = vsel %vm243_vm3, %v2164_v18, %v2168_v45 }
 0x412   : > { %2302 = vrot.lane.b32.xlu1 %v6507_v43, %s5244_s23  ;;  %2266 = vrot.lane.b32.xlu0 %v6507_v43, %s5243_s22 }
 0x413   : > { %2234 = vrot.lane.b32.xlu2 %v6530_v31, %s5246_s25 }
 0x41a   : > { %2268 = vrot.lane.b32.xlu1 %v6510_v3, %s5243_s22  ;;  %2965 = vrot.lane.b32.xlu0 %v6507_v43, %s5253_s3 }
 0x41b   : > { %2198 = vrot.lane.b32.xlu2 %v6530_v31, %s5248_s27 }
 0x422   : > { %2967 = vrot.lane.b32.xlu1 %v6510_v3, %s5253_s3  ;;  %2248 = vrot.lane.b32.xlu0 %v6525_v27, %s5247_s26 }
 0x423   : > { %2308 = vrot.lane.b32.xlu2 %v6545_v15, %s5244_s23 }
 0x42a   : > { %2250 = vrot.lane.b32.xlu1 %v6556_v61, %s5247_s26  ;;  %2212 = vrot.lane.b32.xlu0 %v6525_v27, %s5249_s28 }
 0x42b   : > { %2270 = vrot.lane.b32.xlu2 %v6530_v31, %s5243_s22 }
 0x432   : > { %2214 = vrot.lane.b32.xlu1 %v6556_v61, %s5249_s28  ;;  %2178 = vrot.lane.b32.xlu0 %v6556_v61, %s5250_s29 }
 0x433   : > { %2969 = vrot.lane.b32.xlu2 %v6530_v31, %s5253_s3 }
 0x43a   : > { %2286 = vrot.lane.b32.xlu1 %v6556_v61, %s5245_s24  ;;  %2284 = vrot.lane.b32.xlu0 %v6525_v27, %s5245_s24 }
 0x43b   : > { %2254 = vrot.lane.b32.xlu2 %v2171_v16, %s5247_s26 }
 0x442   : > { %2988 = vrot.lane.b32.xlu1 %v6556_v61, %s5254_s4  ;;  %2986 = vrot.lane.b32.xlu0 %v6525_v27, %s5254_s4 }
 0x443   : > { %2218 = vrot.lane.b32.xlu2 %v2171_v16, %s5249_s28 }
 0x44a   : > { %2236 = vrot.lane.b32.xlu0 %v6545_v15, %s5246_s25  ;;  %2306 = vrot.lane.b32.xlu1 %v6530_v31, %s5244_s23 }
 0x44b   : > { %2927 = vrot.lane.b32.xlu2 %v6530_v31, %s5250_s29 }
 0x452   : > { %2200 = vrot.lane.b32.xlu0 %v6545_v15, %s5248_s27  ;;  %2252 = vrot.lane.b32.xlu1 %v6590_v37, %s5247_s26 }
 0x453   : > { %2942 = vrot.lane.b32.xlu2 %v6390_v59, %s5255_s5 }
 0x45a   : > { %2272 = vrot.lane.b32.xlu0 %v6545_v15, %s5243_s22  ;;  %2216 = vrot.lane.b32.xlu1 %v6590_v37, %s5249_s28 }
 0x45b   : > { %2290 = vrot.lane.b32.xlu2 %v2171_v16, %s5245_s24 }
 0x45d   : > { %v2305_v20 = vpop.permute.xlu2 %2304 }
 0x462   : > { %2971 = vrot.lane.b32.xlu0 %v6545_v15, %s5253_s3  ;;  %2946 = vrot.lane.b32.xlu1 %v6556_v61, %s5255_s5 }
 0x463   : > { %2919 = vrot.lane.b32.xlu2 %v6369_v4, %s5250_s29 }
 0x465   : > { %v6634_v48 = vpop.permute.xlu2 %2176 }
 0x46a   : > { %2180 = vrot.lane.b32.xlu0 %v6590_v37, %s5250_s29  ;;  %2940 = vrot.lane.b32.xlu1 %v6375_v63, %s5255_s5 }
 0x46b   : > { %2898 = vrot.lane.b32.xlu2 %v6375_v63, %s5256_s6 }
 0x46d   : > { %v2235_v33 = vpop.permute.xlu2 %2234 }
 0x472   : > { %2944 = vrot.lane.b32.xlu0 %v6525_v27, %s5255_s5  ;;  %2925 = vrot.lane.b32.xlu1 %v6510_v3, %s5250_s29 }
 0x473   : > { %2992 = vrot.lane.b32.xlu2 %v2171_v16, %s5254_s4 }
 0x474   : > { %v2231_v28 = vpop.permute.xlu0 %2230  ;;  %v6620_v47 = vpop.permute.xlu1 %2232 }
 0x475   : > { %8670 = vst [vmem:[#allocation18_spill] sm:$0xff] %v6620_v47  ;;  %v2199_v62 = vpop.permute.xlu2 %2198 }
 0x47a   : > { %2929 = vrot.lane.b32.xlu0 %v6545_v15, %s5250_s29  ;;  %2182 = vrot.lane.b32.xlu1 %v2171_v16, %s5250_s29 }
 0x47b   : > { %2950 = vrot.lane.b32.xlu2 %v2171_v16, %s5255_s5 }
 0x47c   : > { %v2195_v26 = vpop.permute.xlu0 %2194  ;;  %v2197_v46 = vpop.permute.xlu1 %2196 }
 0x47d   : > { %v6627_v50 = vsel %vm8671_vm7, %v2195_v26, %v2197_v46  ;;  %v6669_v60 = vpop.permute.xlu2 %2308  ;;  %vm8681_vm7 = vmmov %vm8678_vm2 }
 0x482   : > { %2923 = vrot.lane.b32.xlu0 %v6507_v43, %s5250_s29  ;;  %2288 = vrot.lane.b32.xlu1 %v6590_v37, %s5245_s24 }
 0x483   : > { %2908 = vrot.lane.b32.xlu2 %v2171_v16, %s5256_s6 }
 0x484   : > { %v2267_v30 = vpop.permute.xlu0 %2266  ;;  %v2303_v2 = vpop.permute.xlu1 %2302 }
 0x485   : > { %v6637_v21 = vsel %vm8672_vm5, %v2303_v2, %v2305_v20  ;;  %vm8682_vm5 = vcmask 1014784  }
 0x48a   : > { %2921 = vrot.lane.b32.xlu0 %v6372_v56, %s5250_s29  ;;  %2904 = vrot.lane.b32.xlu1 %v6556_v61, %s5256_s6 }
 0x48b   : > { %3011 = vrot.lane.b32.xlu2 %v6530_v31, %s5249_s28 }
 0x48c   : > { %v2966_v39 = vpop.permute.xlu0 %2965  ;;  %v2269_v51 = vpop.permute.xlu1 %2268 }
 0x48d   : > { %v6646_v38 = vsel %vm215_vm1, %v2267_v30, %v2269_v51  ;;  %v2256_v51 = vsel %vm8680_vm8, %v6439_v40, %v6465_v17  ;;  %vm8697_vm8 = vcmask 1044480  }
 0x492   : > { %2902 = vrot.lane.b32.xlu0 %v6525_v27, %s5256_s6  ;;  %2990 = vrot.lane.b32.xlu1 %v6590_v37, %s5254_s4 }
 0x493   : > { %3034 = vrot.lane.b32.xlu2 %v2171_v16, %s5252_s30  ;;  %v6677_v16 = vpop.permute.xlu2 %2270 }
 0x494   : > { %v2249_v9 = vpop.permute.xlu0 %2248  ;;  %v6653_v23 = vpop.permute.xlu1 %2967 }
 0x495   : > { %8673 = vst [vmem:[#allocation19_spill] sm:$0xff] %v6653_v23  ;;  %v6657_v54 = vsel %vm698_vm12, %v2966_v39, %v6653_v23 }
 0x496   : > { %8674 = vst [vmem:[#allocation20_spill] sm:$0xff] %v6657_v54 }
 0x49a   : > { %2900 = vrot.lane.b32.xlu0 %v6390_v59, %s5256_s6  ;;  %3030 = vrot.lane.b32.xlu1 %v6556_v61, %s5252_s30 }
 0x49b   : > { %3026 = vrot.lane.b32.xlu2 %v6390_v59, %s5252_s30  ;;  %v6692_v46 = vpop.permute.xlu2 %2969 }
 0x49c   : > { %v2213_v18 = vpop.permute.xlu0 %2212  ;;  %v2251_v32 = vpop.permute.xlu1 %2250 }
 0x49d   : > { %v2257_v39 = vsel %vm8678_vm2, %v2249_v9, %v2251_v32  ;;  %v2238_v9 = vsel %vm199_vm6, %v6430_v49, %v6451_v13  ;;  %vm8694_vm2 = vcmask 490496  }
 0x49e   : > { %v6726_v55 = vand.u32 4294901760, %v2238_v9 }
 0x4a2   : > { %3028 = vrot.lane.b32.xlu0 %v6525_v27, %s5252_s30  ;;  %2948 = vrot.lane.b32.xlu1 %v6590_v37, %s5255_s5 }
 0x4a4   : > { %v6671_v53 = vpop.permute.xlu0 %2178  ;;  %v2215_v7 = vpop.permute.xlu1 %2214 }
 0x4a5   : > { %v2221_v58 = vsel %vm191_vm9, %v2213_v18, %v2215_v7 }
 0x4a6   : > { %v6752_v7 = vand.u32 4294901760, %v2221_v58 }
 0x4a8   : > { %v6786_v13 = vsub.f32 %v2221_v58, %v6752_v7 }
 0x4aa   : > { %3013 = vrot.lane.b32.xlu0 %v6545_v15, %s5249_s28  ;;  %2906 = vrot.lane.b32.xlu1 %v6590_v37, %s5256_s6 }
 0x4ac   : > { %v2285_v59 = vpop.permute.xlu0 %2284  ;;  %v2287_v61 = vpop.permute.xlu1 %2286 }
 0x4ad   : > { %v6680_v27 = vsel %vm8675_vm0, %v2285_v59, %v2287_v61  ;;  %v6710_v61 = vand.u32 4294901760, %v2257_v39  ;;  %vm8685_vm0 = vmmov %vm8682_vm5 }
 0x4af   : > { %v6724_v40 = vsub.f32 %v2257_v39, %v6710_v61  ;;  %v2220_v39 = vsel %vm191_vm9, %v6455_v22, %v6471_v57 }
 0x4b2   : > { %3007 = vrot.lane.b32.xlu0 %v6507_v43, %s5249_s28  ;;  %3024 = vrot.lane.b32.xlu1 %v6375_v63, %s5252_s30 }
 0x4b4   : > { %v2987_v45 = vpop.permute.xlu0 %2986  ;;  %v6686_v20 = vpop.permute.xlu1 %2988 }
 0x4b5   : > { %8676 = vst [vmem:[#allocation21_spill] sm:$0xff] %v6686_v20  ;;  %v6690_v26 = vsel %vm706_vm13, %v2987_v45, %v6686_v20  ;;  %v2255_v45 = vpop.permute.xlu2 %2254 }
 0x4ba   : > { %3032 = vrot.lane.b32.xlu1 %v6590_v37, %s5252_s30  ;;  %v2239_v37 = vsel %vm199_vm6, %v2231_v28, %v6620_v47 }
 0x4bc   : > { %v6696_v30 = vpop.permute.xlu0 %2236  ;;  %v6698_v2 = vpop.permute.xlu1 %2306 }
 0x4bd   : > { %8677 = vst [vmem:[#allocation22_spill] sm:$0xff] %v6696_v30  ;;  %v6703_v63 = vsel %vm199_vm6, %v2235_v33, %v6696_v30  ;;  %v6721_v33 = vand.u32 4294901760, %v2239_v37 }
 0x4be   : > { %8679 = vst [vmem:[#allocation23_spill] sm:$0xff] %v6703_v63  ;;  %v2318_v59 = vsel %vm243_vm3, %v6703_v63, %v2256_v51 }
 0x4bf   : > { %v6717_v32 = vand.u32 4294901760, %v2318_v59  ;;  %v6740_v25 = vsub.f32 %v2239_v37, %v6721_v33  ;;  %v2202_v37 = vsel %vm8685_vm0, %v6432_v10, %v6457_v35 }
 0x4c0   : > { %v6795_v56 = vand.u32 4294901760, %v2202_v37 }
 0x4c1   : > { %v6733_v49 = vsub.f32 %v2318_v59, %v6717_v32  ;;  %8683 = vst [vmem:[#allocation24_spill] sm:$0xff] %v6740_v25  ;;  %v6749_v59 = vsub.f32 %v2238_v9, %v6726_v55  ;;  %v6775_v35 = vand.u32 4294901760, %v6740_v25 }
 0x4c2   : > { %3009 = vrot.lane.b32.xlu1 %v6510_v3, %s5249_s28  ;;  %8688 = vst [vmem:[#allocation27_spill] sm:$0xff] %v6795_v56  ;;  %v6821_v3 = vsub.f32 %v2202_v37, %v6795_v56 }
 0x4c3   : > { %8684 = vst [vmem:[#allocation25_spill] sm:$0xff] %v6749_v59  ;;  %v6783_v57 = vand.u32 4294901760, %v6749_v59  ;;  %v8687_v47 = vand.u32 4294901760, %v6733_v49 }
 0x4c4   : > { %v2201_v17 = vpop.permute.xlu0 %2200  ;;  %v2253_v51 = vpop.permute.xlu1 %2252 }
 0x4c5   : > { %v2258_v28 = vsel %vm8681_vm7, %v2253_v51, %v2255_v45  ;;  %v2204_v24 = vsel %vm8682_vm5, %v2199_v62, %v2201_v17  ;;  %v8559_v62 = vand.u32 4294901760, %v6724_v40  ;;  %v2219_v45 = vpop.permute.xlu2 %2218  ;;  %8686 = vst [vmem:[#allocation26_spill] sm:$0xff] %v6783_v57  ;;  %v2390_v30 = vsub.f32 %v6733_v49, %v8687_v47  ;;  %vm8698_vm7 = vmmov %vm8694_vm2 }
 0x4c6   : > { %v6730_v52 = vand.u32 4294901760, %v2258_v28  ;;  %v2317_v18 = vsel %vm243_vm3, %v2204_v24, %v2220_v39  ;;  %v2402_v47 = vsub.f32 %v6749_v59, %v6783_v57  ;;  %vm8706_vm5 = vcmask 506880  }
 0x4c7   : > { %v6762_v9 = vand.u32 4294901760, %v2317_v18  ;;  %v2384_v10 = vsub.f32 %v6724_v40, %v8559_v62  ;;  %vm8708_vm0 = vmmov %vm8706_vm5 }
 0x4c8   : > { %v6743_v1 = vsub.f32 %v2258_v28, %v6730_v52  ;;  %2331 = vmatpush.msra.mxu0 %v6730_v52  ;;  %2527 = vmatpush.msra.mxu3 %v6730_v52  ;;  %v6778_v28 = vand.u32 4294901760, %v6627_v50  ;;  %v6838_v37 = vand.u32 4294901760, %v2402_v47 }
 0x4c9   : > { %v2385_v58 = vand.u32 4294901760, %v2384_v10 }
 0x4ca   : > { %2333 = vmatpush.msra.mxu0 %v6710_v61  ;;  %2475 = vmatpush.msra.mxu2 %v6743_v1  ;;  %v8558_v22 = vand.u32 4294901760, %v6743_v1  ;;  %8691 = vst [vmem:[#allocation30_spill] sm:$0xff] %v6838_v37 }
 0x4cb   : > { %2529 = vmatpush.msra.mxu3 %v6710_v61 }
 0x4cc   : > { %v6764_v24 = vpop.permute.xlu0 %2272  ;;  %2335 = vmatpush.msra.mxu0 %v6717_v32  ;;  %2478 = vmatpush.msra.mxu2 %v6724_v40  ;;  %v2217_v17 = vpop.permute.xlu1 %2216  ;;  %v2378_v51 = vsub.f32 %v6743_v1, %v8558_v22 }
 0x4cd   : > { %2531 = vmatpush.msra.mxu3 %v6717_v32  ;;  %v2222_v39 = vsel %vm191_vm9, %v2217_v17, %v2219_v45  ;;  %v2396_v17 = vsub.f32 %v6740_v25, %v6775_v35  ;;  %v2928_v20 = vpop.permute.xlu2 %2927 }
 0x4ce   : > { %v6788_v22 = vand.u32 4294901760, %v2222_v39  ;;  %2337 = vmatpush.msra.mxu0 %v6721_v33  ;;  %2481 = vmatpush.msra.mxu2 %v6733_v49  ;;  %v2379_v62 = vand.u32 4294901760, %v2378_v51  ;;  %v6805_v51 = vsub.f32 %v2317_v18, %v6762_v9 }
 0x4cf   : > { %2533 = vmatpush.msra.mxu3 %v6721_v33 }
 0x4d0   : > { %v6799_v45 = vsub.f32 %v2222_v39, %v6788_v22  ;;  %2339 = vmatpush.msra.mxu0 %v6726_v55  ;;  %2380 = vmatpush.msra.mxu1 %v2379_v62  ;;  %v6813_v39 = vsub.f32 %v6627_v50, %v6778_v28  ;;  %v2391_v62 = vand.u32 4294901760, %v2390_v30  ;;  %v8575_v18 = vand.u32 4294901760, %v6805_v51 }
 0x4d1   : > { %2484 = vmatpush.msra.mxu2 %v6740_v25  ;;  %2535 = vmatpush.msra.mxu3 %v6726_v55 }
 0x4d2   : > { %2341 = vmatpush.msra.mxu0 %v6788_v22  ;;  %2386 = vmatpush.msra.mxu1 %v2385_v58  ;;  %v8570_v10 = vand.u32 4294901760, %v6799_v45  ;;  %v6828_v58 = vand.u32 4294901760, %v2396_v17  ;;  %v8578_v23 = vand.u32 4294901760, %v6813_v39  ;;  %v2420_v47 = vsub.f32 %v6805_v51, %v8575_v18 }
 0x4d3   : > { %2487 = vmatpush.msra.mxu2 %v6749_v59  ;;  %2537 = vmatpush.msra.mxu3 %v6788_v22 }
 0x4d4   : > { %v6823_v15 = vpop.permute.xlu0 %2971  ;;  %2343 = vmatpush.msra.mxu0 %v6752_v7  ;;  %2392 = vmatpush.msra.mxu1 %v2391_v62  ;;  %v6826_v50 = vpop.permute.xlu1 %2946  ;;  %8690 = vst [vmem:[#allocation29_spill] sm:$0xff] %v6828_v58  ;;  %v2408_v30 = vsub.f32 %v6799_v45, %v8570_v10  ;;  %v8692_v62 = vand.u32 4294901760, %v6786_v13  ;;  %v2426_v25 = vsub.f32 %v6813_v39, %v8578_v23  ;;  %v2421_v59 = vand.u32 4294901760, %v2420_v47 }
 0x4d5   : > { %8689 = vst [vmem:[#allocation28_spill] sm:$0xff] %v6826_v50  ;;  %2490 = vmatpush.msra.mxu2 %v6799_v45  ;;  %2539 = vmatpush.msra.mxu3 %v6752_v7 }
 0x4d6   : > { %2345 = vmatpush.msra.mxu0 %v6762_v9  ;;  %2398 = vmatpush.msra.mxu1 %v6828_v58  ;;  %v2414_v17 = vsub.f32 %v6786_v13, %v8692_v62  ;;  %v2409_v10 = vand.u32 4294901760, %v2408_v30 }
 0x4d7   : > { %2493 = vmatpush.msra.mxu2 %v6786_v13  ;;  %2541 = vmatpush.msra.mxu3 %v6762_v9 }
 0x4d8   : > { %2347 = vmatpush.msra.mxu0 %v6778_v28  ;;  %2404 = vmatpush.msra.mxu1 %v6838_v37  ;;  %v2415_v62 = vand.u32 4294901760, %v2414_v17  ;;  %v8693_v37 = vand.u32 4294901760, %v6821_v3  ;;  %v2312_v17 = vsel %vm8694_vm2, %v6698_v2, %v6669_v60  ;;  %v2184_v60 = vsel %vm175_vm10, %v6481_v6, %v6461_v8 }
 0x4d9   : > { %2496 = vmatpush.msra.mxu2 %v6805_v51  ;;  %2543 = vmatpush.msra.mxu3 %v6778_v28  ;;  %v2320_v63 = vsel %vm243_vm3, %v2312_v17, 1.0  ;;  %v2310_v2 = vsel %vm8698_vm7, %v6434_v41, %v6463_v14  ;;  %v2276_v41 = vsel %vm215_vm1, %v6677_v16, %v6764_v24  ;;  %v6905_v17 = vand.u32 4294901760, %v6507_v43  ;;  %vm8797_vm7 = vmmov %vm8697_vm8 }
 0x4da   : > { %2349 = vmatpush.msra.mxu0 %v6795_v56  ;;  %2410 = vmatpush.msra.mxu1 %v2409_v10  ;;  %v2432_v58 = vsub.f32 %v6821_v3, %v8693_v37  ;;  %v2427_v10 = vand.u32 4294901760, %v2426_v25  ;;  %v2185_v37 = vsel %vm175_vm10, %v6634_v48, %v6671_v53  ;;  %v2326_v25 = vsel %vm8697_vm8, %v2320_v63, 0 }
 0x4db   : > { %2499 = vmatpush.msra.mxu2 %v6813_v39  ;;  %2545 = vmatpush.msra.mxu3 %v6795_v56  ;;  %v6891_v48 = vand.u32 4294901760, %v6637_v21  ;;  %8701 = vst [vmem:[#allocation35_spill] sm:$0xff] %v6905_v17  ;;  %v6919_v16 = vand.u32 4294901760, %v6369_v4  ;;  %vm2321_vm2 = vcmask 433152  }
 0x4dc   : > { %v2181_v30 = vpop.permute.xlu0 %2180  ;;  %2416 = vmatpush.msra.mxu1 %v2415_v62  ;;  %v2941_v18 = vpop.permute.xlu1 %2940  ;;  %v2433_v23 = vand.u32 4294901760, %v2432_v58  ;;  %v2316_v58 = vsel %vm243_vm3, %v6530_v31, %v2184_v60 }
 0x4dd   : > { %2502 = vmatpush.msra.mxu2 %v6821_v3  ;;  %v2943_v62 = vpop.permute.xlu2 %2942  ;;  %v6893_v53 = vand.u32 4294901760, %v2316_v58  ;;  %8705 = vst [vmem:[#allocation39_spill] sm:$0xff] %v6919_v16 }
 0x4de   : > { %2422 = vmatpush.msra.mxu1 %v2421_v59  ;;  %v6884_v59 = vand.u32 4294901760, %v2326_v25  ;;  %v2952_v31 = vsel %vm690_vm14, %v2941_v18, %v2943_v62  ;;  %v6929_v18 = vsub.f32 %v6637_v21, %v6891_v48 }
 0x4df   : > { %8700 = vst [vmem:[#allocation34_spill] sm:$0xff] %v6893_v53 }
 0x4e0   : > { %2428 = vmatpush.msra.mxu1 %v2427_v10  ;;  %v6888_v10 = vand.u32 4294901760, %v2310_v2  ;;  %v6899_v6 = vsub.f32 %v2326_v25, %v6884_v59 }
 0x4e2   : > { %2434 = vmatpush.msra.mxu1 %v2433_v23  ;;  %v6882_v23 = vand.u32 4294901760, %v2185_v37  ;;  %v6922_v24 = vsub.f32 %v2310_v2, %v6888_v10 }
 0x4e4   : > { %v6868_v50 = vpop.permute.xlu0 %2944  ;;  %v6870_v47 = vpop.permute.xlu1 %2925  ;;  %8699 = vst [vmem:[#allocation33_spill] sm:$0xff] %v6882_v23  ;;  %v6896_v8 = vsub.f32 %v2185_v37, %v6882_v23 }
 0x4e5   : > { %8695 = vst [vmem:[#allocation31_spill] sm:$0xff] %v6868_v50  ;;  %v2291_v60 = vpop.permute.xlu2 %2290 }
 0x4e6   : > { %8696 = vst [vmem:[#allocation32_spill] sm:$0xff] %v6870_v47 }
 0x4ec   : > { %v2930_v14 = vpop.permute.xlu0 %2929  ;;  %v2183_v63 = vpop.permute.xlu1 %2182 }
 0x4ed   : > { %v2933_v47 = vsel %vm175_vm10, %v2928_v20, %v2930_v14  ;;  %v6910_v37 = vsel %vm243_vm3, %v2930_v14, %v2943_v62  ;;  %v2186_v25 = vsel %vm175_vm10, %v2181_v30, %v2183_v63  ;;  %v2292_v20 = vsel %vm8706_vm5, %v6467_v29, %v6475_v11 }
 0x4ee   : > { %8702 = vst [vmem:[#allocation36_spill] sm:$0xff] %v6910_v37  ;;  %v6914_v50 = vsel %vm243_vm3, %v2933_v47, %v2952_v31  ;;  %v6916_v54 = vand.u32 4294901760, %v2186_v25  ;;  %v6932_v30 = vsub.f32 %v2316_v58, %v6893_v53  ;;  %v8586_v31 = vand.u32 4294901760, %v6899_v6 }
 0x4ef   : > { %8703 = vst [vmem:[#allocation37_spill] sm:$0xff] %v6914_v50  ;;  %v2319_v62 = vsel %vm243_vm3, %v2276_v41, %v2292_v20  ;;  %v6943_v29 = vsub.f32 %v6507_v43, %v6905_v17  ;;  %v6946_v11 = vand.u32 4294901760, %v6680_v27  ;;  %v6954_v58 = vsub.f32 %v6369_v4, %v6919_v16 }
 0x4f0   : > { %8704 = vst [vmem:[#allocation38_spill] sm:$0xff] %v6916_v54  ;;  %v6937_v47 = vsub.f32 %v2186_v25, %v6916_v54  ;;  %2351 = vmatpush.msra.mxu0 %v6916_v54  ;;  %2547 = vmatpush.msra.mxu3 %v6916_v54  ;;  %v6956_v41 = vand.u32 4294901760, %v2319_v62  ;;  %v2713_v4 = vsub.f32 %v6899_v6, %v8586_v31  ;;  %v6974_v14 = vand.u32 4294901760, %v6646_v38 }
 0x4f1   : > { %8707 = vst [vmem:[#allocation40_spill] sm:$0xff] %v6954_v58  ;;  %v6971_v21 = vand.u32 4294901760, %v6943_v29  ;;  %v6978_v43 = vsub.f32 %v6680_v27, %v6946_v11  ;;  %v8709_v37 = vand.u32 4294901760, %v6896_v8  ;;  %v6992_v27 = vpop.permute.xlu2 %2919 }
 0x4f2   : > { %2353 = vmatpush.msra.mxu0 %v6882_v23  ;;  %2505 = vmatpush.msra.mxu2 %v6937_v47  ;;  %v8584_v2 = vand.u32 4294901760, %v6937_v47  ;;  %8710 = vst [vmem:[#allocation41_spill] sm:$0xff] %v6992_v27  ;;  %v2714_v27 = vand.u32 4294901760, %v2713_v4  ;;  %v7013_v54 = vsub.f32 %v6646_v38, %v6974_v14  ;;  %v8714_v4 = vand.u32 4294901760, %v6442_v44 }
 0x4f3   : > { %2549 = vmatpush.msra.mxu3 %v6882_v23  ;;  %v2444_v31 = vsub.f32 %v6896_v8, %v8709_v37  ;;  %v6990_v23 = vand.u32 4294901760, %v6954_v58 }
 0x4f4   : > { %2355 = vmatpush.msra.mxu0 %v6893_v53  ;;  %2508 = vmatpush.msra.mxu2 %v6896_v8  ;;  %v2289_v63 = vpop.permute.xlu1 %2288  ;;  %v2438_v25 = vsub.f32 %v6937_v47, %v8584_v2 }
 0x4f5   : > { %2551 = vmatpush.msra.mxu3 %v6893_v53  ;;  %v2294_v2 = vsel %vm8708_vm0, %v2289_v63, %v2291_v60  ;;  %v6995_v53 = vsub.f32 %v2319_v62, %v6956_v41  ;;  %v8711_v60 = vand.u32 4294901760, %v6929_v18  ;;  %v8712_v63 = vand.u32 4294901760, %v6932_v30 }
 0x4f6   : > { %v6985_v50 = vand.u32 4294901760, %v2294_v2  ;;  %2357 = vmatpush.msra.mxu0 %v6905_v17  ;;  %2511 = vmatpush.msra.mxu2 %v6932_v30  ;;  %v2439_v20 = vand.u32 4294901760, %v2438_v25  ;;  %v8713_v62 = vand.u32 4294901760, %v6922_v24 }
 0x4f7   : > { %2553 = vmatpush.msra.mxu3 %v6905_v17  ;;  %v2719_v37 = vsub.f32 %v6929_v18, %v8711_v60  ;;  %v2450_v0 = vsub.f32 %v6932_v30, %v8712_v63  ;;  %v2129_v17 = vld [vmem:[#allocation2 + $0x60] sm:$0xff]  ;;  %v2445_v60 = vand.u32 4294901760, %v2444_v31  ;;  %v2462_v63 = vsub.f32 %v6954_v58, %v6990_v23 }
 0x4f8   : > { %v7005_v25 = vsub.f32 %v2294_v2, %v6985_v50  ;;  %2359 = vmatpush.msra.mxu0 %v6919_v16  ;;  %2440 = vmatpush.msra.mxu1 %v2439_v20  ;;  %v2725_v5 = vsub.f32 %v6922_v24, %v8713_v62  ;;  %v2456_v2 = vsub.f32 %v6943_v29, %v6971_v21  ;;  %v7027_v56 = vand.u32 4294901760, %v2129_v17 }
 0x4f9   : > { %2514 = vmatpush.msra.mxu2 %v6943_v29  ;;  %2555 = vmatpush.msra.mxu3 %v6919_v16  ;;  %v2720_v62 = vand.u32 4294901760, %v2719_v37  ;;  %v2451_v16 = vand.u32 4294901760, %v2450_v0  ;;  %v8715_v20 = vand.u32 4294901760, %v6743_v1  ;;  %v8717_v0 = vand.u32 4294901760, %v6978_v43 }
 0x4fa   : > { %2566 = vmatpush.msrb.mxu0 %v8714_v4  ;;  %v2730_v38 = vand.u32 4294901760, %v7005_v25  ;;  %2446 = vmatpush.msra.mxu1 %v2445_v60  ;;  %v2726_v60 = vand.u32 4294901760, %v2725_v5  ;;  %v7037_v37 = vand.u32 4294901760, %v2456_v2  ;;  %v2748_v1 = vand.u32 4294901760, %v7013_v54 }
 0x4fb   : > { %2715 = vmatpush.msrb.mxu3 %v2714_v27  ;;  %2517 = vmatpush.msra.mxu2 %v6954_v58  ;;  %v2737_v4 = vsub.f32 %v6978_v43, %v8717_v0  ;;  %v2130_v58 = vld [vmem:[#allocation2 + $0x68] sm:$0xff]  ;;  %v7047_v5 = vand.u32 4294901760, %v2462_v63  ;;  %v8720_v0 = vand.u32 4294901760, %v6733_v49 }
 0x4fc   : > { %2570 = vmatpush.msrb.mxu0 %v8715_v20  ;;  %v7032_v44 = vpop.permute.xlu1 %2904  ;;  %v2731_v27 = vsub.f32 %v7005_v25, %v2730_v38  ;;  %2452 = vmatpush.msra.mxu1 %v2451_v16  ;;  %v8718_v20 = vand.u32 4294901760, %v6724_v40  ;;  %v8719_v16 = vand.u32 4294901760, %v6995_v53  ;;  %v7056_v40 = vpop.permute.xlu2 %2898  ;;  %v2749_v63 = vsub.f32 %v7013_v54, %v2748_v1 }
 0x4fd   : > { %2679 = vmatpush.msrb.mxu2 %v6884_v59  ;;  %8716 = vst [vmem:[#allocation42_spill] sm:$0xff] %v7032_v44  ;;  %2721 = vmatpush.msrb.mxu3 %v2720_v62  ;;  %v2361_v62 = vsub.f32 %v2129_v17, %v7027_v56 }
 0x4fe   : > { %2574 = vmatpush.msrb.mxu0 %v8718_v20  ;;  %v2732_v31 = vand.u32 4294901760, %v2731_v27  ;;  %2458 = vmatpush.msra.mxu1 %v7037_v37  ;;  %v2743_v2 = vsub.f32 %v6995_v53, %v8719_v16  ;;  %v2738_v27 = vand.u32 4294901760, %v2737_v4  ;;  %v8721_v20 = vand.u32 4294901760, %v6799_v45 }
 0x4ff   : > { %2681 = vmatpush.msrb.mxu2 %v6891_v48  ;;  %2727 = vmatpush.msrb.mxu3 %v2726_v60  ;;  %v2323_v60 = vsel %vm2321_vm2, %v2130_v58, 0  ;;  %v2362_v17 = vand.u32 4294901760, %v2361_v62  ;;  %v2750_v58 = vand.u32 4294901760, %v2749_v63  ;;  %v8723_v45 = vand.u32 4294901760, %v6805_v51 }
 0x500   : > { %2578 = vmatpush.msrb.mxu0 %v8720_v0  ;;  %2464 = vmatpush.msra.mxu1 %v7047_v5  ;;  %v2744_v49 = vand.u32 4294901760, %v2743_v2  ;;  %v8728_v63 = vand.u32 4294901760, %v6937_v47 }
 0x501   : > { %2683 = vmatpush.msrb.mxu2 %v6888_v10  ;;  %2733 = vmatpush.msrb.mxu3 %v2732_v31  ;;  %v7068_v31 = vand.u32 4294901760, %v2323_v60  ;;  %v2363_v16 = vsub.f32 %v2361_v62, %v2362_v17 }
 0x502   : > { %2582 = vmatpush.msrb.mxu0 %v6775_v35  ;;  %2633 = vmatpush.msrb.mxu1 %v6437_v19  ;;  %v7074_v19 = vpop.permute.xlu0 %2923 }
 0x503   : > { %2685 = vmatpush.msrb.mxu2 %v6985_v50  ;;  %2739 = vmatpush.msrb.mxu3 %v2738_v27  ;;  %v7080_v2 = vsub.f32 %v2323_v60, %v7068_v31  ;;  %v2364_v0 = vand.u32 4294901760, %v2363_v16  ;;  %v8729_v60 = vand.u32 4294901760, %v6896_v8  ;;  %v2975_v8 = vsel %vm698_vm12, %v6692_v46, %v6823_v15  ;;  %v8733_v16 = vld [vmem:[#allocation38_spill] sm:$0xff] }
 0x504   : > { %2586 = vmatpush.msrb.mxu0 %v6783_v57  ;;  %2635 = vmatpush.msrb.mxu1 %v6730_v52  ;;  %v2991_v4 = vpop.permute.xlu1 %2990  ;;  %v8722_v52 = vand.u32 4294901760, %v6786_v13 }
 0x505   : > { %2687 = vmatpush.msrb.mxu2 %v6946_v11  ;;  %2745 = vmatpush.msrb.mxu3 %v2744_v49  ;;  %v2694_v13 = vand.u32 4294901760, %v7080_v2 }
 0x506   : > { %2590 = vmatpush.msrb.mxu0 %v8721_v20  ;;  %2637 = vmatpush.msrb.mxu1 %v6710_v61  ;;  %v7085_v61 = vpop.permute.xlu2 %2992 }
 0x507   : > { %2689 = vmatpush.msrb.mxu2 %v6956_v41  ;;  %2751 = vmatpush.msrb.mxu3 %v2750_v58  ;;  %v2695_v27 = vsub.f32 %v7080_v2, %v2694_v13  ;;  %v2996_v47 = vsel %vm706_vm13, %v2991_v4, %v7085_v61  ;;  %v8731_v58 = vld [vmem:[#allocation27_spill] sm:$0xff] }
 0x508   : > { %2559 = vmatmul.f32.vlgmr.msra.gmra.mxu3 %v2362_v17  ;;  %2594 = vmatpush.msrb.mxu0 %v8722_v52  ;;  %v7138_v17 = vand.u32 4294901760, %v2996_v47  ;;  %v8734_v52 = vld [vmem:[#allocation11_spill] sm:$0xff] }
 0x509   : > { %2639 = vmatpush.msrb.mxu1 %v6717_v32  ;;  %2691 = vmatpush.msrb.mxu2 %v6974_v14  ;;  %v8724_v32 = vand.u32 4294901760, %v6813_v39 }
 0x50a   : > { %2803 = vmatpush.msra.mxu3 %v6884_v59  ;;  %2520 = vmatmul.f32.vlgmr.msra.gmra.mxu2 %v2361_v62  ;;  %v8726_v62 = vand.u32 4294901760, %v6821_v3  ;;  %v7107_v39 = vpop.permute.xlu0 %2921  ;;  %v3015_v3 = vsel %vm191_vm9, %v6453_v36, %v6469_v34 }
 0x50b   : > { %2768 = vmatpush.msra.mxu2 %v6899_v6  ;;  %2598 = vmatpush.msrb.mxu0 %v8723_v45  ;;  %8727 = vst [vmem:[#allocation44_spill] sm:$0xff] %v7107_v39  ;;  %v7128_v36 = vand.u32 4294901760, %v3015_v3  ;;  %v8735_v45 = vld [vmem:[#allocation10_spill] sm:$0xff] }
 0x50c   : > { %2641 = vmatpush.msrb.mxu1 %v6721_v33  ;;  %2805 = vmatpush.msra.mxu3 %v6891_v48  ;;  %v7099_v51 = vpop.permute.xlu1 %3030 }
 0x50d   : > { %2771 = vmatpush.msra.mxu2 %v6929_v18  ;;  %2602 = vmatpush.msrb.mxu0 %v8724_v32  ;;  %8725 = vst [vmem:[#allocation43_spill] sm:$0xff] %v7099_v51  ;;  %v7147_v46 = vsub.f32 %v3015_v3, %v7128_v36 }
 0x50e   : > { %2643 = vmatpush.msrb.mxu1 %v6726_v55  ;;  %2807 = vmatpush.msra.mxu3 %v6888_v10  ;;  %v7122_v49 = vpop.permute.xlu2 %2950 }
 0x50f   : > { %2365 = vmatmul.f32.vlgmr.msra.gmra.mxu0 %v2364_v0  ;;  %2466 = vmatmul.f32.vlgmr.msra.gmra.mxu1 %v7027_v56  ;;  %v2973_v0 = vsel %vm698_vm12, %v8735_v45, %v8734_v52 }
 0x510   : > { %2774 = vmatpush.msra.mxu2 %v6922_v24  ;;  %2606 = vmatpush.msrb.mxu0 %v8726_v62  ;;  %v8736_v62 = vand.u32 4294901760, %v6929_v18  ;;  %v8740_v18 = vand.u32 4294901760, %v6922_v24 }
 0x511   : > { %2645 = vmatpush.msrb.mxu1 %v6788_v22  ;;  %2809 = vmatpush.msra.mxu3 %v6985_v50  ;;  %v2696_v22 = vand.u32 4294901760, %v2695_v27 }
 0x512   : > { %2777 = vmatpush.msra.mxu2 %v7005_v25  ;;  %2610 = vmatpush.msrb.mxu0 %v8728_v63  ;;  %v7155_v20 = vpop.permute.xlu0 %2902  ;;  %v8602_v63 = vand.u32 4294901760, %v7147_v46 }
 0x513   : > { %2647 = vmatpush.msrb.mxu1 %v6752_v7  ;;  %2811 = vmatpush.msra.mxu3 %v6946_v11  ;;  %v8730_v7 = vand.u32 4294901760, %v6932_v30 }
 0x514   : > { %2780 = vmatpush.msra.mxu2 %v6978_v43  ;;  %2614 = vmatpush.msrb.mxu0 %v8729_v60  ;;  %v2949_v30 = vpop.permute.xlu1 %2948  ;;  %v8739_v60 = vld [vmem:[#allocation33_spill] sm:$0xff] }
 0x515   : > { %2649 = vmatpush.msrb.mxu1 %v6762_v9  ;;  %2813 = vmatpush.msra.mxu3 %v6956_v41  ;;  %v2994_v9 = vsel %vm706_vm13, %v6477_v12, %v6479_v42  ;;  %v8732_v12 = vand.u32 4294901760, %v6899_v6  ;;  %v8737_v6 = vld [vmem:[#allocation20_spill] sm:$0xff] }
 0x516   : > { %2783 = vmatpush.msra.mxu2 %v6995_v53  ;;  %2618 = vmatpush.msrb.mxu0 %v8730_v7  ;;  %v3052_v4 = vsel %vm243_vm3, %v2975_v8, %v2994_v9  ;;  %v7183_v3 = vpop.permute.xlu2 %2908  ;;  %v8741_v7 = vld [vmem:[#allocation34_spill] sm:$0xff]  ;;  %v8742_v8 = vld [vmem:[#allocation28_spill] sm:$0xff]  ;;  %v8743_v9 = vld [vmem:[#allocation31_spill] sm:$0xff] }
 0x517   : > { %2651 = vmatpush.msrb.mxu1 %v6778_v28  ;;  %2815 = vmatpush.msra.mxu3 %v6974_v14  ;;  %v7150_v28 = vand.u32 4294901760, %v6690_v26  ;;  %v7168_v32 = vand.u32 4294901760, %v3052_v4  ;;  %8738 = vst [vmem:[#allocation27_spill] sm:$0xff] %v7183_v3 }
 0x518   : > { %2697 = vmatmul.f32.vlgmr.msrb.gmra.mxu2 %v2696_v22  ;;  %2753 = vmatmul.f32.vlgmr.msrb.gmra.mxu3 %v7068_v31  ;;  %v7188_v22 = vand.u32 4294901760, %v2973_v0 }
 0x519   : > { %2786 = vmatpush.msra.mxu2 %v7013_v54  ;;  %2875 = vmatpush.msrb.mxu3 %v6884_v59  ;;  %v7161_v59 = vsub.f32 %v2996_v47, %v7138_v17  ;;  %v7178_v27 = vsub.f32 %v6690_v26, %v7150_v28  ;;  %v2954_v47 = vsel %vm690_vm14, %v2949_v30, %v7122_v49 }
 0x51a   : > { %2622 = vmatpush.msrb.mxu0 %v6971_v21  ;;  %2653 = vmatpush.msrb.mxu1 %v8731_v58  ;;  %v3122_v30 = vsub.f32 %v7147_v46, %v8602_v63  ;;  %v7214_v25 = vand.u32 4294901760, %v2954_v47  ;;  %v8744_v58 = vld [vmem:[#allocation35_spill] sm:$0xff] }
 0x51b   : > { %2835 = vmatpush.msrb.mxu2 %v8732_v12  ;;  %2877 = vmatpush.msrb.mxu3 %v6891_v48  ;;  %v7174_v48 = vand.u32 4294901760, %v8737_v6  ;;  %v8599_v26 = vand.u32 4294901760, %v7161_v59  ;;  %v7219_v12 = vsub.f32 %v2973_v0, %v7188_v22 }
 0x51c   : > { %2626 = vmatpush.msrb.mxu0 %v6990_v23  ;;  %2655 = vmatpush.msrb.mxu1 %v8733_v16  ;;  %v8745_v16 = vand.u32 4294901760, %v6978_v43 }
 0x51d   : > { %2839 = vmatpush.msrb.mxu2 %v8736_v62  ;;  %2628 = vmatmul.f32.vlgmr.msrb.gmra.mxu0 %v7027_v56  ;;  %v7203_v24 = vsub.f32 %v8737_v6, %v7174_v48  ;;  %v7230_v62 = vpop.permute.xlu0 %2900  ;;  %v8747_v6 = vld [vmem:[#allocation32_spill] sm:$0xff] }
 0x51e   : > { %2879 = vmatpush.msrb.mxu3 %v6888_v10  ;;  %3071 = vmatpush.msra.mxu0 %v7128_v36  ;;  %v7196_v10 = vsub.f32 %v3052_v4, %v7168_v32  ;;  %v8598_v4 = vand.u32 4294901760, %v7178_v27  ;;  %8746 = vst [vmem:[#allocation38_spill] sm:$0xff] %v7230_v62  ;;  %v2932_v43 = vsel %vm175_vm10, %v7074_v19, %v8747_v6 }
 0x51f   : > { %2657 = vmatpush.msrb.mxu1 %v8739_v60  ;;  %2843 = vmatpush.msrb.mxu2 %v8740_v18  ;;  %v3123_v60 = vand.u32 4294901760, %v3122_v30 }
 0x520   : > { %2881 = vmatpush.msrb.mxu3 %v6985_v50  ;;  %3073 = vmatpush.msra.mxu0 %v7138_v17  ;;  %v2953_v50 = vsel %vm690_vm14, %v8743_v9, %v8742_v8  ;;  %v8601_v0 = vand.u32 4294901760, %v7196_v10  ;;  %v3134_v18 = vsub.f32 %v7178_v27, %v8598_v4  ;;  %v7258_v4 = vpop.permute.xlu2 %3011 }
 0x521   : > { %2659 = vmatpush.msrb.mxu1 %v8741_v7  ;;  %2847 = vmatpush.msrb.mxu2 %v2730_v38  ;;  %v2907_v38 = vpop.permute.xlu1 %2906  ;;  %v7228_v45 = vand.u32 4294901760, %v2953_v50  ;;  %v8750_v7 = vld [vmem:[#allocation37_spill] sm:$0xff] }
 0x522   : > { %2789 = vmatmul.f32.vlgmr.msra.gmra.mxu2 %v7080_v2  ;;  %2883 = vmatpush.msrb.mxu3 %v6946_v11  ;;  %v3128_v11 = vsub.f32 %v7161_v59, %v8599_v26  ;;  %v8748_v2 = vld [vmem:[#allocation39_spill] sm:$0xff]  ;;  %v7246_v9 = vand.u32 4294901760, %v8750_v7 }
 0x523   : > { %3075 = vmatpush.msra.mxu0 %v7150_v28  ;;  %2661 = vmatpush.msrb.mxu1 %v8744_v58  ;;  %v7261_v26 = vsub.f32 %v2953_v50, %v7228_v45 }
 0x524   : > { %2851 = vmatpush.msrb.mxu2 %v8745_v16  ;;  %2819 = vmatmul.f32.vlgmr.msra.gmra.mxu3 %v2694_v13  ;;  %v8749_v13 = vand.u32 4294901760, %v6995_v53  ;;  %v7249_v16 = vsub.f32 %v2954_v47, %v7214_v25  ;;  %v8751_v53 = vld [vmem:[#allocation41_spill] sm:$0xff]  ;;  %v3129_v30 = vand.u32 4294901760, %v3128_v11  ;;  %v7263_v47 = vand.u32 4294901760, %v2932_v43 }
 0x525   : > { %2885 = vmatpush.msrb.mxu3 %v6956_v41  ;;  %3077 = vmatpush.msra.mxu0 %v7168_v32  ;;  %v8600_v41 = vand.u32 4294901760, %v7203_v24  ;;  %v2931_v19 = vsel %vm175_vm10, %v8751_v53, %v7107_v39  ;;  %v3135_v11 = vand.u32 4294901760, %v3134_v18  ;;  %v7279_v54 = vsub.f32 %v8750_v7, %v7246_v9 }
 0x526   : > { %2663 = vmatpush.msrb.mxu1 %v8748_v2  ;;  %2855 = vmatpush.msrb.mxu2 %v8749_v13  ;;  %v8603_v13 = vand.u32 4294901760, %v7219_v12  ;;  %v2911_v18 = vsel %vm675_vm15, %v7155_v20, %v7032_v44 }
 0x527   : > { %2665 = vmatmul.f32.vlgmr.msrb.gmra.mxu1 %v7027_v56  ;;  %2887 = vmatpush.msrb.mxu3 %v6974_v14  ;;  %v3140_v56 = vsub.f32 %v7196_v10, %v8601_v0  ;;  %v2912_v14 = vsel %vm675_vm15, %v2907_v38, %v7183_v3  ;;  %v3146_v50 = vsub.f32 %v7203_v24, %v8600_v41  ;;  %v8752_v0 = vld [vmem:[#allocation16_spill] sm:$0xff]  ;;  %v7313_v38 = vand.u32 4294901760, %v2911_v18 }
 0x528   : > { %3079 = vmatpush.msra.mxu0 %v7174_v48  ;;  %3124 = vmatpush.msra.mxu1 %v3123_v60  ;;  %v2910_v60 = vsel %vm675_vm15, %v7056_v40, %v7230_v62  ;;  %v3152_v7 = vsub.f32 %v7219_v12, %v8603_v13  ;;  %v7298_v40 = vsub.f32 %v2932_v43, %v7263_v47  ;;  %v7300_v53 = vand.u32 4294901760, %v2912_v14 }
 0x529   : > { %2859 = vmatpush.msrb.mxu2 %v2748_v1  ;;  %3284 = vmatpush.msra.mxu3 %v7128_v36  ;;  %v7281_v1 = vand.u32 4294901760, %v2931_v19  ;;  %v3141_v41 = vand.u32 4294901760, %v3140_v56  ;;  %v3048_v63 = vsel %vm243_vm3, %v8752_v0, %v2910_v60  ;;  %v3147_v13 = vand.u32 4294901760, %v3146_v50  ;;  %v8754_v60 = vld [vmem:[#allocation23_spill] sm:$0xff] }
 0x52a   : > { %3081 = vmatpush.msra.mxu0 %v7188_v22  ;;  %3130 = vmatpush.msra.mxu1 %v3129_v30  ;;  %v7303_v30 = vpop.permute.xlu1 %3024  ;;  %v8753_v56 = vand.u32 4294901760, %v7249_v16  ;;  %v8609_v0 = vand.u32 4294901760, %v7279_v54  ;;  %v3056_v62 = vsel %vm243_vm3, %v8754_v60, 1.0  ;;  %v7326_v50 = vand.u32 4294901760, %v3048_v63  ;;  %v7338_v60 = vpop.permute.xlu2 %3034 }
 0x52b   : > { %3226 = vmatpush.msra.mxu2 %v7147_v46  ;;  %3286 = vmatpush.msra.mxu3 %v7138_v17  ;;  %v7311_v43 = vsub.f32 %v2931_v19, %v7281_v1  ;;  %v3153_v19 = vand.u32 4294901760, %v3152_v7  ;;  %v7329_v44 = vsub.f32 %v2912_v14, %v7300_v53  ;;  %8756 = vst [vmem:[#allocation11_spill] sm:$0xff] %v7338_v60 }
 0x52c   : > { %2861 = vmatmul.f32.vlgmr.msrb.gmra.mxu2 %v7068_v31  ;;  %3083 = vmatpush.msra.mxu0 %v7214_v25  ;;  %v3158_v20 = vsub.f32 %v7249_v16, %v8753_v56  ;;  %v7341_v7 = vsub.f32 %v2911_v18, %v7313_v38  ;;  %v3065_v56 = vsel %vm8697_vm8, %v3056_v62, 0  ;;  %v7352_v3 = vsub.f32 %v3048_v63, %v7326_v50 }
 0x52d   : > { %3136 = vmatpush.msra.mxu1 %v3135_v11  ;;  %3229 = vmatpush.msra.mxu2 %v7161_v59  ;;  %v7315_v11 = vpop.permute.xlu0 %3028  ;;  %v7366_v39 = vand.u32 4294901760, %v3065_v56 }
 0x52e   : > { %3288 = vmatpush.msra.mxu3 %v7150_v28  ;;  %3085 = vmatpush.msra.mxu0 %v7228_v45  ;;  %v3159_v14 = vand.u32 4294901760, %v3158_v20  ;;  %v8757_v20 = vand.u32 4294901760, %v7298_v40  ;;  %v8759_v57 = vand.u32 4294901760, %v7341_v7 }
 0x52f   : > { %2889 = vmatmul.f32.vlgmr.msrb.gmra.mxu3 %v7068_v31  ;;  %3142 = vmatpush.msra.mxu1 %v3141_v41  ;;  %v8755_v31 = vand.u32 4294901760, %v7261_v26 }
 0x530   : > { %3232 = vmatpush.msra.mxu2 %v7178_v27  ;;  %3290 = vmatpush.msra.mxu3 %v7168_v32 }
 0x531   : > { %3087 = vmatpush.msra.mxu0 %v7246_v9  ;;  %3148 = vmatpush.msra.mxu1 %v3147_v13  ;;  %v3164_v41 = vsub.f32 %v7261_v26, %v8755_v31  ;;  %v3170_v13 = vsub.f32 %v7279_v54, %v8609_v0  ;;  %v8612_v31 = vand.u32 4294901760, %v7311_v43 }
 0x532   : > { %3235 = vmatpush.msra.mxu2 %v7196_v10  ;;  %3292 = vmatpush.msra.mxu3 %v7174_v48  ;;  %v3033_v62 = vpop.permute.xlu1 %3032 }
 0x533   : > { %3089 = vmatpush.msra.mxu0 %v7263_v47  ;;  %3154 = vmatpush.msra.mxu1 %v3153_v19  ;;  %v3165_v18 = vand.u32 4294901760, %v3164_v41  ;;  %v3176_v19 = vsub.f32 %v7298_v40, %v8757_v20  ;;  %v3171_v63 = vand.u32 4294901760, %v3170_v13  ;;  %v8758_v13 = vand.u32 4294901760, %v7329_v44  ;;  %v2894_v41 = vld [vmem:[#allocation2 + $0x80] sm:$0xff] }
 0x534   : > { %3238 = vmatpush.msra.mxu2 %v7203_v24  ;;  %3294 = vmatpush.msra.mxu3 %v7188_v22  ;;  %v7396_v8 = vand.u32 4294901760, %v2894_v41 }
 0x535   : > { %3091 = vmatpush.msra.mxu0 %v7281_v1  ;;  %3160 = vmatpush.msra.mxu1 %v3159_v14  ;;  %v3182_v14 = vsub.f32 %v7311_v43, %v8612_v31  ;;  %v7370_v20 = vpop.permute.xlu0 %3013  ;;  %v3177_v0 = vand.u32 4294901760, %v3176_v19  ;;  %v7384_v19 = vsub.f32 %v3065_v56, %v7366_v39  ;;  %v3038_v31 = vsel %vm723_vm11, %v3033_v62, %v7338_v60 }
 0x536   : > { %3241 = vmatpush.msra.mxu2 %v7219_v12  ;;  %3296 = vmatpush.msra.mxu3 %v7214_v25  ;;  %v3037_v62 = vsel %vm723_vm11, %v7315_v11, %v7099_v51  ;;  %v7411_v60 = vand.u32 4294901760, %v3038_v31  ;;  %v8762_v11 = vand.u32 4294901760, %v7147_v46  ;;  %v8763_v51 = vand.u32 4294901760, %v7161_v59 }
 0x537   : > { %3093 = vmatpush.msra.mxu0 %v7300_v53  ;;  %3166 = vmatpush.msra.mxu1 %v3165_v18  ;;  %v3188_v18 = vsub.f32 %v7329_v44, %v8758_v13  ;;  %v3183_v6 = vand.u32 4294901760, %v3182_v14  ;;  %v7388_v13 = vpop.permute.xlu2 %3026  ;;  %v8761_v14 = vand.u32 4294901760, %v7352_v3 }
 0x538   : > { %3244 = vmatpush.msra.mxu2 %v7249_v16  ;;  %3298 = vmatpush.msra.mxu3 %v7228_v45  ;;  %8760 = vst [vmem:[#allocation10_spill] sm:$0xff] %v7388_v13  ;;  %v3036_v56 = vsel %vm723_vm11, %v7303_v30, %v7388_v13  ;;  %v7432_v46 = vsub.f32 %v3038_v31, %v7411_v60 }
 0x539   : > { %3095 = vmatpush.msra.mxu0 %v7313_v38  ;;  %3172 = vmatpush.msra.mxu1 %v3171_v63  ;;  %v3194_v63 = vsub.f32 %v7341_v7, %v8759_v57  ;;  %v3200_v57 = vsub.f32 %v7352_v3, %v8761_v14  ;;  %v3017_v14 = vsel %vm191_vm9, %v7258_v4, %v7370_v20 }
 0x53a   : > { %3247 = vmatpush.msra.mxu2 %v7261_v26  ;;  %3300 = vmatpush.msra.mxu3 %v7246_v9  ;;  %v3054_v30 = vsel %vm243_vm3, %v3017_v14, %v3036_v56  ;;  %v7416_v13 = vpop.permute.xlu1 %3009  ;;  %v2896_v14 = vld [vmem:[#allocation2 + $0x90] sm:$0xf] }
 0x53b   : > { %3097 = vmatpush.msra.mxu0 %v7326_v50  ;;  %3178 = vmatpush.msra.mxu1 %v3177_v0  ;;  %v3189_v0 = vand.u32 4294901760, %v3188_v18  ;;  %v7423_v18 = vand.u32 4294901760, %v3037_v62  ;;  %v7429_v56 = vand.u32 4294901760, %v3054_v30 }
 0x53c   : > { %3250 = vmatpush.msra.mxu2 %v7279_v54  ;;  %3302 = vmatpush.msra.mxu3 %v7263_v47 }
 0x53d   : > { %3099 = vmatpush.msra.mxu0 %v8744_v58  ;;  %3184 = vmatpush.msra.mxu1 %v3183_v6  ;;  %v3195_v6 = vand.u32 4294901760, %v3194_v63  ;;  %v3201_v63 = vand.u32 4294901760, %v3200_v57  ;;  %v3008_v4 = vpop.permute.xlu0 %3007  ;;  %v8764_v57 = vand.u32 4294901760, %v7384_v19  ;;  %v7448_v31 = vsub.f32 %v3037_v62, %v7423_v18 }
 0x53e   : > { %3253 = vmatpush.msra.mxu2 %v7298_v40  ;;  %3304 = vmatpush.msra.mxu3 %v7281_v1 }
 0x53f   : > { %3101 = vmatpush.msra.mxu0 %v8748_v2  ;;  %3190 = vmatpush.msra.mxu1 %v3189_v0  ;;  %v7421_v0 = vsub.f32 %v2894_v41, %v7396_v8  ;;  %v3016_v41 = vsel %vm191_vm9, %v3008_v4, %v7416_v13  ;;  %v8766_v4 = vand.u32 4294901760, %v7196_v10 }
 0x540   : > { %3256 = vmatpush.msra.mxu2 %v7311_v43  ;;  %3306 = vmatpush.msra.mxu3 %v7300_v53 }
 0x541   : > { %3331 = vmatpush.msrb.mxu0 %v8762_v11  ;;  %3196 = vmatpush.msra.mxu1 %v3195_v6  ;;  %v3494_v6 = vsub.f32 %v7384_v19, %v8764_v57  ;;  %v7445_v59 = vand.u32 4294901760, %v7421_v0  ;;  %v2895_v11 = vld [vmem:[#allocation2 + $0x88] sm:$0xff]  ;;  %v3511_v57 = vand.u32 4294901760, %v7432_v46 }
 0x542   : > { %3259 = vmatpush.msra.mxu2 %v7329_v44  ;;  %3308 = vmatpush.msra.mxu3 %v7313_v38  ;;  %v3059_v10 = vsel %vm2321_vm2, %v2895_v11, 0 }
 0x543   : > { %3335 = vmatpush.msrb.mxu0 %v8763_v51  ;;  %3202 = vmatpush.msra.mxu1 %v3201_v63  ;;  %v8765_v51 = vand.u32 4294901760, %v7178_v27  ;;  %v7452_v63 = vand.u32 4294901760, %v3016_v41  ;;  %v7457_v27 = vand.u32 4294901760, %v2896_v14  ;;  %v3495_v62 = vand.u32 4294901760, %v3494_v6 }
 0x544   : > { %3262 = vmatpush.msra.mxu2 %v7341_v7  ;;  %3310 = vmatpush.msra.mxu3 %v7326_v50  ;;  %v3512_v6 = vsub.f32 %v7432_v46, %v3511_v57 }
 0x545   : > { %3339 = vmatpush.msrb.mxu0 %v8765_v51  ;;  %3208 = vmatpush.msra.mxu1 %v7037_v37  ;;  %v7460_v37 = vsub.f32 %v3054_v30, %v7429_v56  ;;  %v8767_v51 = vand.u32 4294901760, %v7203_v24  ;;  %v7474_v30 = vsub.f32 %v3016_v41, %v7452_v63  ;;  %v8769_v24 = vand.u32 4294901760, %v7219_v12 }
 0x546   : > { %3265 = vmatpush.msra.mxu2 %v7352_v3  ;;  %3312 = vmatpush.msra.mxu3 %v8744_v58  ;;  %v7488_v41 = vand.u32 4294901760, %v3059_v10  ;;  %v8771_v12 = vand.u32 4294901760, %v7249_v16 }
 0x547   : > { %3343 = vmatpush.msrb.mxu0 %v8766_v4  ;;  %3214 = vmatpush.msra.mxu1 %v7047_v5  ;;  %v3105_v5 = vsub.f32 %v7421_v0, %v7445_v59  ;;  %v8768_v4 = vld [vmem:[#allocation40_spill] sm:$0xff]  ;;  %v3523_v11 = vand.u32 4294901760, %v7460_v37  ;;  %v3529_v16 = vand.u32 4294901760, %v7474_v30 }
 0x548   : > { %3268 = vmatpush.msra.mxu2 %v6943_v29  ;;  %3314 = vmatpush.msra.mxu3 %v8748_v2  ;;  %v3517_v29 = vand.u32 4294901760, %v7448_v31 }
 0x549   : > { %3347 = vmatpush.msrb.mxu0 %v8767_v51  ;;  %3402 = vmatpush.msrb.mxu1 %v7128_v36  ;;  %v7480_v36 = vsub.f32 %v2896_v14, %v7457_v27  ;;  %v7493_v51 = vand.u32 4294901760, %v3105_v5  ;;  %v8772_v14 = vld [vmem:[#allocation30_spill] sm:$0xff]  ;;  %v8773_v5 = vand.u32 4294901760, %v7261_v26 }
 0x54a   : > { %3271 = vmatpush.msra.mxu2 %v8768_v4  ;;  %3496 = vmatpush.msrb.mxu3 %v3495_v62  ;;  %v8770_v62 = vld [vmem:[#allocation29_spill] sm:$0xff] }
 0x54b   : > { %3274 = vmatmul.f32.vlgmr.msra.gmra.mxu2 %v7421_v0  ;;  %3351 = vmatpush.msrb.mxu0 %v8769_v24  ;;  %v7503_v4 = vand.u32 4294901760, %v7480_v36  ;;  %v3513_v24 = vand.u32 4294901760, %v3512_v6 }
 0x54c   : > { %3404 = vmatpush.msrb.mxu1 %v7138_v17  ;;  %3452 = vmatpush.msrb.mxu2 %v7366_v39  ;;  %v3518_v17 = vsub.f32 %v7448_v31, %v3517_v29 }
 0x54d   : > { %3502 = vmatpush.msrb.mxu3 %v8770_v62  ;;  %3355 = vmatpush.msrb.mxu0 %v8771_v12  ;;  %v7513_v62 = vsub.f32 %v3059_v10, %v7488_v41  ;;  %v2897_v12 = vld [vmem:[#allocation2 + $0x98] sm:$0xf]  ;;  %v3113_v10 = vsub.f32 %v7480_v36, %v7503_v4 }
 0x54e   : > { %3318 = vmatmul.f32.vlgmr.msra.gmra.mxu3 %v7445_v59  ;;  %3406 = vmatpush.msrb.mxu1 %v7150_v28  ;;  %v3524_v28 = vsub.f32 %v7460_v37, %v3523_v11  ;;  %v3519_v26 = vand.u32 4294901760, %v3518_v17  ;;  %v3062_v6 = vsel %vm2321_vm2, %v2897_v12, 0 }
 0x54f   : > { %3454 = vmatpush.msrb.mxu2 %v6721_v33  ;;  %3508 = vmatpush.msrb.mxu3 %v8772_v14  ;;  %v8774_v14 = vand.u32 4294901760, %v7279_v54  ;;  %v7529_v54 = vand.u32 4294901760, %v7513_v62  ;;  %v7535_v17 = vand.u32 4294901760, %v3062_v6 }
 0x550   : > { %3359 = vmatpush.msrb.mxu0 %v8773_v5  ;;  %3408 = vmatpush.msrb.mxu1 %v7168_v32  ;;  %v3530_v32 = vsub.f32 %v7474_v30, %v3529_v16  ;;  %v3525_v5 = vand.u32 4294901760, %v3524_v28  ;;  %v7540_v28 = vand.u32 4294901760, %v3113_v10 }
 0x551   : > { %3456 = vmatpush.msrb.mxu2 %v6726_v55  ;;  %3107 = vmatmul.f32.vlgmr.msra.gmra.mxu0 %v7493_v51 }
 0x552   : > { %3514 = vmatpush.msrb.mxu3 %v3513_v24  ;;  %3363 = vmatpush.msrb.mxu0 %v8774_v14  ;;  %v8776_v24 = vand.u32 4294901760, %v7311_v43  ;;  %v3531_v12 = vand.u32 4294901760, %v3530_v32  ;;  %v7549_v14 = vand.u32 4294901760, %v6469_v34  ;;  %v7554_v43 = vsub.f32 %v3062_v6, %v7535_v17  ;;  %v8779_v32 = vld [vmem:[#allocation24_spill] sm:$0xff] }
 0x553   : > { %3410 = vmatpush.msrb.mxu1 %v7174_v48  ;;  %3458 = vmatpush.msrb.mxu2 %v7411_v60  ;;  %v8775_v48 = vand.u32 4294901760, %v7298_v40  ;;  %v8777_v40 = vand.u32 4294901760, %v7329_v44  ;;  %v3053_v6 = vsel %vm243_vm3, %v6823_v15, %v6479_v42 }
 0x554   : > { %3520 = vmatpush.msrb.mxu3 %v3519_v26  ;;  %3279 = vmatmul.f32.gmra.mxu2 %v7480_v36  ;;  %v7570_v26 = vsub.f32 %v6469_v34, %v7549_v14  ;;  %v7575_v10 = vand.u32 4294901760, %v7554_v43  ;;  %v7594_v42 = vand.u32 4294901760, %v3053_v6 }
 0x555   : > { %3367 = vmatpush.msrb.mxu0 %v8775_v48  ;;  %3412 = vmatpush.msrb.mxu1 %v7188_v22  ;;  %v3468_v22 = vsub.f32 %v7513_v62, %v7529_v54  ;;  %v8782_v48 = vld [vmem:[#allocation25_spill] sm:$0xff] }
 0x556   : > { %3460 = vmatpush.msrb.mxu2 %v7423_v18  ;;  %3526 = vmatpush.msrb.mxu3 %v3525_v5  ;;  %v3476_v15 = vsub.f32 %v7554_v43, %v7575_v10 }
 0x557   : > { %3324 = vmatmul.f32.gmra.mxu3 %v7503_v4  ;;  %3371 = vmatpush.msrb.mxu0 %v8776_v24  ;;  %v7563_v44 = vand.u32 4294901760, %v3468_v22  ;;  %v7616_v24 = vand.u32 4294901760, %v8734_v52 }
 0x558   : > { %3414 = vmatpush.msrb.mxu1 %v7214_v25  ;;  %3462 = vmatpush.msrb.mxu2 %v7429_v56  ;;  %v7559_v25 = vand.u32 4294901760, %v7085_v61  ;;  %v7623_v22 = vand.u32 4294901760, %v3476_v15  ;;  %v8786_v15 = vld [vmem:[#allocation26_spill] sm:$0xff] }
 0x559   : > { %3532 = vmatpush.msrb.mxu3 %v3531_v12  ;;  %3375 = vmatpush.msrb.mxu0 %v8777_v40  ;;  %v7619_v12 = vsub.f32 %v3053_v6, %v7594_v42  ;;  %v7642_v6 = vand.u32 4294901760, %v7122_v49 }
 0x55a   : > { %3416 = vmatpush.msrb.mxu1 %v7228_v45  ;;  %3464 = vmatpush.msrb.mxu2 %v7452_v63  ;;  %v8778_v45 = vand.u32 4294901760, %v7341_v7  ;;  %v8780_v7 = vand.u32 4294901760, %v7352_v3  ;;  %v7588_v34 = vsub.f32 %v7085_v61, %v7559_v25  ;;  %v3748_v61 = vand.u32 4294901760, %v7570_v26  ;;  %v8783_v3 = vld [vmem:[#allocation19_spill] sm:$0xff] }
 0x55b   : > { %3593 = vmatpush.msra.mxu3 %v7366_v39  ;;  %3115 = vmatmul.f32.gmra.mxu0 %v7540_v28 }
 0x55c   : > { %3216 = vmatmul.f32.vlgmr.msra.gmra.mxu1 %v7396_v8  ;;  %3553 = vmatpush.msra.mxu2 %v7384_v19 }
 0x55d   : > { %3379 = vmatpush.msrb.mxu0 %v8778_v45  ;;  %3418 = vmatpush.msrb.mxu1 %v7246_v9  ;;  %v8781_v9 = vld [vmem:[#allocation21_spill] sm:$0xff] }
 0x55e   : > { %3595 = vmatpush.msra.mxu3 %v6721_v33  ;;  %3556 = vmatpush.msra.mxu2 %v8779_v32  ;;  %v7584_v5 = vand.u32 4294901760, %v8781_v9 }
 0x55f   : > { %3383 = vmatpush.msrb.mxu0 %v8780_v7  ;;  %3420 = vmatpush.msrb.mxu1 %v7263_v47  ;;  %v7604_v47 = vand.u32 4294901760, %v8783_v3  ;;  %v8620_v7 = vand.u32 4294901760, %v7619_v12 }
 0x560   : > { %3470 = vmatmul.f32.vlgmr.msrb.gmra.mxu2 %v7563_v44  ;;  %3597 = vmatpush.msra.mxu3 %v6726_v55 }
 0x561   : > { %3559 = vmatpush.msra.mxu2 %v8782_v48  ;;  %3387 = vmatpush.msrb.mxu0 %v6971_v21  ;;  %v7608_v21 = vsub.f32 %v8781_v9, %v7584_v5  ;;  %v7633_v40 = vsub.f32 %v8783_v3, %v7604_v47  ;;  %v8785_v9 = vld [vmem:[#allocation28_spill] sm:$0xff]  ;;  %v7665_v3 = vsub.f32 %v7122_v49, %v7642_v6 }
 0x562   : > { %3422 = vmatpush.msrb.mxu1 %v7281_v1  ;;  %3534 = vmatmul.f32.vlgmr.msrb.gmra.mxu3 %v7488_v41  ;;  %v3754_v1 = vand.u32 4294901760, %v7588_v34  ;;  %v7654_v48 = vand.u32 4294901760, %v8785_v9 }
 0x563   : > { %3599 = vmatpush.msra.mxu3 %v7411_v60  ;;  %3562 = vmatpush.msra.mxu2 %v7432_v46  ;;  %v8632_v32 = vand.u32 4294901760, %v7608_v21 }
 0x564   : > { %3391 = vmatpush.msrb.mxu0 %v6990_v23  ;;  %3424 = vmatpush.msrb.mxu1 %v7300_v53  ;;  %v3749_v23 = vsub.f32 %v7570_v26, %v3748_v61  ;;  %v8784_v53 = vand.u32 4294901760, %v7384_v19  ;;  %v3755_v45 = vsub.f32 %v7588_v34, %v3754_v1  ;;  %v7680_v49 = vsub.f32 %v8785_v9, %v7654_v48 }
 0x565   : > { %3601 = vmatpush.msra.mxu3 %v7423_v18  ;;  %3220 = vmatmul.f32.gmra.mxu1 %v7457_v27 }
 0x566   : > { %3393 = vmatmul.f32.vlgmr.msrb.gmra.mxu0 %v7396_v8  ;;  %3565 = vmatpush.msra.mxu2 %v7448_v31  ;;  %v3750_v19 = vand.u32 4294901760, %v3749_v23  ;;  %v8787_v23 = vld [vmem:[#allocation36_spill] sm:$0xff] }
 0x567   : > { %3631 = vmatpush.msra.mxu0 %v8784_v53  ;;  %3426 = vmatpush.msrb.mxu1 %v7313_v38  ;;  %v7648_v38 = vsub.f32 %v8734_v52, %v7616_v24  ;;  %v3761_v52 = vsub.f32 %v7608_v21, %v8632_v32  ;;  %v7670_v53 = vand.u32 4294901760, %v8787_v23 }
 0x568   : > { %3603 = vmatpush.msra.mxu3 %v7429_v56  ;;  %3568 = vmatpush.msra.mxu2 %v7460_v37 }
 0x569   : > { %3635 = vmatpush.msra.mxu0 %v6775_v35  ;;  %3428 = vmatpush.msrb.mxu1 %v7326_v50  ;;  %v3756_v35 = vand.u32 4294901760, %v3755_v45  ;;  %v8619_v50 = vand.u32 4294901760, %v7633_v40  ;;  %v8630_v45 = vand.u32 4294901760, %v7648_v38  ;;  %v3762_v46 = vand.u32 4294901760, %v3761_v52 }
 0x56a   : > { %3478 = vmatmul.f32.gmra.mxu2 %v7623_v22  ;;  %3605 = vmatpush.msra.mxu3 %v7452_v63  ;;  %v7698_v9 = vsub.f32 %v8787_v23, %v7670_v53 }
 0x56b   : > { %3571 = vmatpush.msra.mxu2 %v7474_v30  ;;  %3639 = vmatpush.msra.mxu0 %v8786_v15  ;;  %v3779_v52 = vsub.f32 %v7648_v38, %v8630_v45  ;;  %v8793_v30 = vld [vmem:[#allocation17_spill] sm:$0xff] }
 0x56c   : > { %3751 = vmatpush.msrb.mxu3 %v3750_v19  ;;  %3430 = vmatpush.msrb.mxu1 %v8744_v58  ;;  %v3767_v58 = vsub.f32 %v7619_v12, %v8620_v7  ;;  %v8788_v19 = vld [vmem:[#allocation32_spill] sm:$0xff] }
 0x56d   : > { %3538 = vmatmul.f32.gmra.mxu3 %v7535_v17  ;;  %3698 = vmatpush.msrb.mxu2 %v7549_v14  ;;  %v7690_v15 = vand.u32 4294901760, %v8788_v19  ;;  %v3780_v37 = vand.u32 4294901760, %v3779_v52 }
 0x56e   : > { %3643 = vmatpush.msra.mxu0 %v3511_v57  ;;  %3757 = vmatpush.msrb.mxu3 %v3756_v35  ;;  %v3773_v57 = vsub.f32 %v7633_v40, %v8619_v50  ;;  %v3768_v35 = vand.u32 4294901760, %v3767_v58  ;;  %v8789_v50 = vld [vmem:[#allocation44_spill] sm:$0xff] }
 0x56f   : > { %3432 = vmatpush.msrb.mxu1 %v8748_v2  ;;  %3700 = vmatpush.msrb.mxu2 %v7559_v25  ;;  %v8623_v2 = vand.u32 4294901760, %v7665_v3  ;;  %v7705_v7 = vand.u32 4294901760, %v8789_v50  ;;  %v7717_v58 = vsub.f32 %v8788_v19, %v7690_v15 }
 0x570   : > { %3397 = vmatmul.f32.gmra.mxu0 %v7457_v27  ;;  %3434 = vmatmul.f32.vlgmr.msrb.gmra.mxu1 %v7396_v8  ;;  %v3774_v31 = vand.u32 4294901760, %v3773_v57  ;;  %v8791_v57 = vld [vmem:[#allocation42_spill] sm:$0xff] }
 0x571   : > { %3647 = vmatpush.msra.mxu0 %v3517_v29  ;;  %3675 = vmatpush.msra.mxu1 %v7366_v39  ;;  %v8621_v39 = vand.u32 4294901760, %v7680_v49  ;;  %v8790_v29 = vld [vmem:[#allocation27_spill] sm:$0xff]  ;;  %v7732_v19 = vand.u32 4294901760, %v8791_v57 }
 0x572   : > { %3763 = vmatpush.msrb.mxu3 %v3762_v46  ;;  %3702 = vmatpush.msrb.mxu2 %v7584_v5  ;;  %v7713_v23 = vand.u32 4294901760, %v8790_v29  ;;  %v7729_v46 = vsub.f32 %v8789_v50, %v7705_v7 }
 0x573   : > { %3651 = vmatpush.msra.mxu0 %v3523_v11  ;;  %3677 = vmatpush.msra.mxu1 %v6721_v33  ;;  %v3785_v33 = vsub.f32 %v7665_v3, %v8623_v2  ;;  %v8622_v11 = vand.u32 4294901760, %v7698_v9 }
 0x574   : > { %3769 = vmatpush.msrb.mxu3 %v3768_v35  ;;  %3574 = vmatmul.f32.vlgmr.msra.gmra.mxu2 %v7513_v62  ;;  %v8792_v35 = vld [vmem:[#allocation38_spill] sm:$0xff]  ;;  %v7746_v50 = vsub.f32 %v8790_v29, %v7713_v23  ;;  %v7759_v29 = vsub.f32 %v8791_v57, %v7732_v19 }
 0x575   : > { %3704 = vmatpush.msrb.mxu2 %v7594_v42  ;;  %3655 = vmatpush.msra.mxu0 %v3529_v16  ;;  %v3049_v16 = vsel %vm243_vm3, %v8793_v30, %v8792_v35  ;;  %v3786_v52 = vand.u32 4294901760, %v3785_v33  ;;  %v8794_v30 = vld [vmem:[#allocation15_spill] sm:$0xff] }
 0x576   : > { %3679 = vmatpush.msra.mxu1 %v6726_v55  ;;  %3775 = vmatpush.msrb.mxu3 %v3774_v31  ;;  %v3791_v55 = vsub.f32 %v7680_v49, %v8621_v39  ;;  %v8626_v31 = vand.u32 4294901760, %v7717_v58  ;;  %v7750_v35 = vand.u32 4294901760, %v3049_v16  ;;  %v7766_v39 = vand.u32 4294901760, %v8794_v30 }
 0x577   : > { %3609 = vmatmul.f32.vlgmr.msra.gmra.mxu3 %v7529_v54  ;;  %3706 = vmatpush.msrb.mxu2 %v7604_v47 }
 0x578   : > { %3853 = vmatpush.msrb.mxu0 %v7570_v26  ;;  %3681 = vmatpush.msra.mxu1 %v7411_v60  ;;  %v3797_v60 = vsub.f32 %v7698_v9, %v8622_v11  ;;  %v3792_v33 = vand.u32 4294901760, %v3791_v55  ;;  %v3803_v57 = vsub.f32 %v7717_v58, %v8626_v31  ;;  %v7774_v55 = vsub.f32 %v3049_v16, %v7750_v35  ;;  %v8795_v11 = vld [vmem:[#allocation8_spill] sm:$0xff] }
 0x579   : > { %3781 = vmatpush.msrb.mxu3 %v3780_v37  ;;  %3708 = vmatpush.msrb.mxu2 %v7616_v24  ;;  %v8624_v37 = vand.u32 4294901760, %v7729_v46  ;;  %v7779_v2 = vand.u32 4294901760, %v8795_v11  ;;  %v7790_v16 = vsub.f32 %v8794_v30, %v7766_v39 }
 0x57a   : > { %3856 = vmatpush.msrb.mxu0 %v7588_v34  ;;  %3438 = vmatmul.f32.gmra.mxu1 %v7457_v27 }
 0x57b   : > { %3683 = vmatpush.msra.mxu1 %v7423_v18  ;;  %3787 = vmatpush.msrb.mxu3 %v3786_v52  ;;  %v8625_v18 = vand.u32 4294901760, %v7746_v50  ;;  %v3798_v52 = vand.u32 4294901760, %v3797_v60  ;;  %v3804_v60 = vand.u32 4294901760, %v3803_v57 }
 0x57c   : > { %3710 = vmatpush.msrb.mxu2 %v7642_v6  ;;  %3859 = vmatpush.msrb.mxu0 %v7608_v21 }
 0x57d   : > { %3685 = vmatpush.msra.mxu1 %v7429_v56  ;;  %3793 = vmatpush.msrb.mxu3 %v3792_v33  ;;  %v3809_v56 = vsub.f32 %v7729_v46, %v8624_v37  ;;  %v8629_v33 = vand.u32 4294901760, %v7759_v29  ;;  %v7802_v37 = vsub.f32 %v8795_v11, %v7779_v2 }
 0x57e   : > { %3579 = vmatmul.f32.gmra.mxu2 %v7554_v43  ;;  %3862 = vmatpush.msrb.mxu0 %v7619_v12 }
 0x57f   : > { %3712 = vmatpush.msrb.mxu2 %v7654_v48  ;;  %3687 = vmatpush.msra.mxu1 %v7452_v63  ;;  %v3815_v63 = vsub.f32 %v7746_v50, %v8625_v18  ;;  %v3810_v30 = vand.u32 4294901760, %v3809_v56  ;;  %v3821_v57 = vsub.f32 %v7759_v29, %v8629_v33  ;;  %v8627_v18 = vand.u32 4294901760, %v7790_v16  ;;  %v8796_v33 = vld [vmem:[#allocation22_spill] sm:$0xff] }
 0x580   : > { %3799 = vmatpush.msrb.mxu3 %v3798_v52  ;;  %3657 = vmatmul.f32.vlgmr.msra.gmra.mxu0 %v7488_v41  ;;  %v8628_v52 = vand.u32 4294901760, %v7774_v55  ;;  %v8631_v56 = vand.u32 4294901760, %v7802_v37  ;;  %v3057_v45 = vsel %vm243_vm3, %v8796_v33, 1.0 }
 0x581   : > { %3615 = vmatmul.f32.gmra.mxu3 %v7575_v10  ;;  %3714 = vmatpush.msrb.mxu2 %v7670_v53  ;;  %v3816_v31 = vand.u32 4294901760, %v3815_v63  ;;  %v3833_v63 = vsub.f32 %v7790_v16, %v8627_v18 }
 0x582   : > { %3865 = vmatpush.msrb.mxu0 %v7633_v40  ;;  %3911 = vmatpush.msrb.mxu1 %v7549_v14  ;;  %v3827_v11 = vsub.f32 %v7774_v55, %v8628_v52 }
 0x583   : > { %3805 = vmatpush.msrb.mxu3 %v3804_v60  ;;  %3716 = vmatpush.msrb.mxu2 %v7690_v15  ;;  %v3822_v60 = vand.u32 4294901760, %v3821_v57  ;;  %v3834_v57 = vand.u32 4294901760, %v3833_v63 }
 0x584   : > { %3868 = vmatpush.msrb.mxu0 %v7648_v38  ;;  %3913 = vmatpush.msrb.mxu1 %v7559_v25 }
 0x585   : > { %3689 = vmatmul.f32.vlgmr.msra.gmra.mxu1 %v7488_v41  ;;  %3811 = vmatpush.msrb.mxu3 %v3810_v30  ;;  %v3828_v30 = vand.u32 4294901760, %v3827_v11 }
 0x586   : > { %3718 = vmatpush.msrb.mxu2 %v7705_v7  ;;  %3871 = vmatpush.msrb.mxu0 %v7665_v3 }
 0x587   : > { %3915 = vmatpush.msrb.mxu1 %v7584_v5  ;;  %3817 = vmatpush.msrb.mxu3 %v3816_v31  ;;  %v3839_v31 = vsub.f32 %v7802_v37, %v8631_v56 }
 0x588   : > { %3720 = vmatpush.msrb.mxu2 %v7713_v23  ;;  %3874 = vmatpush.msrb.mxu0 %v7680_v49 }
 0x589   : > { %3917 = vmatpush.msrb.mxu1 %v7594_v42  ;;  %3823 = vmatpush.msrb.mxu3 %v3822_v60  ;;  %v3840_v56 = vand.u32 4294901760, %v3839_v31 }
 0x58a   : > { %3661 = vmatmul.f32.gmra.mxu0 %v7535_v17  ;;  %3722 = vmatpush.msrb.mxu2 %v7732_v19 }
 0x58b   : > { %3877 = vmatpush.msrb.mxu0 %v7698_v9  ;;  %3919 = vmatpush.msrb.mxu1 %v7604_v47  ;;  %v2560_v32 = vpop.f32.mrf.mxu3 }
 0x58c   : > { %3829 = vmatpush.msrb.mxu3 %v3828_v30  ;;  %3724 = vmatpush.msrb.mxu2 %v7750_v35  ;;  %v2366_v18 = vpop.f32.mrf.mxu0  ;;  %v2467_v52 = vpop.f32.mrf.mxu1  ;;  %v3068_v30 = vsel %vm8797_vm7, %v3057_v45, 0  ;;  %v8802_v45 = vld [vmem:[#allocation11_spill] sm:$0xff] }
 0x58d   : > { %3880 = vmatpush.msrb.mxu0 %v7717_v58  ;;  %3921 = vmatpush.msrb.mxu1 %v7616_v24  ;;  %v2468_v60 = vadd.f32 %v2467_v52, %v2366_v18  ;;  %v2521_v11 = vpop.f32.mrf.mxu2  ;;  %v7849_v33 = vand.u32 4294901760, %v3068_v30  ;;  %v7882_v52 = vand.u32 4294901760, %v8802_v45 }
 0x58e   : > { %3693 = vmatmul.f32.gmra.mxu1 %v7535_v17  ;;  %3835 = vmatpush.msrb.mxu3 %v3834_v57  ;;  %v8804_v57 = vld [vmem:[#allocation10_spill] sm:$0xff] }
 0x58f   : > { %3726 = vmatpush.msrb.mxu2 %v7766_v39  ;;  %3883 = vmatpush.msrb.mxu0 %v7729_v46  ;;  %v2522_v63 = vadd.f32 %v2521_v11, %v2468_v60  ;;  %v3055_v60 = vsel %vm243_vm3, %v7370_v20, %v8804_v57 }
 0x590   : > { %3923 = vmatpush.msrb.mxu1 %v7642_v6  ;;  %3841 = vmatpush.msrb.mxu3 %v3840_v56 }
 0x591   : > { %3728 = vmatpush.msrb.mxu2 %v7779_v2  ;;  %3886 = vmatpush.msrb.mxu0 %v7746_v50  ;;  %v2561_v18 = vadd.f32 %v2560_v32, %v2522_v63  ;;  %v7865_v32 = vsub.f32 %v3068_v30, %v7849_v33  ;;  %v8806_v63 = vand.u32 4294901760, %v7648_v38  ;;  %v7907_v30 = vsub.f32 %v8802_v45, %v7882_v52 }
 0x592   : > { %3925 = vmatpush.msrb.mxu1 %v7654_v48  ;;  %4029 = vmatpush.msra.mxu3 %v7549_v14  ;;  %v8798_v14 = vld [vmem:[#allocation18_spill] sm:$0xff] }
 0x593   : > { %3958 = vmatpush.msra.mxu2 %v3748_v61  ;;  %3889 = vmatpush.msrb.mxu0 %v7759_v29  ;;  %v7859_v26 = vand.u32 4294901760, %v8798_v14  ;;  %v8799_v61 = vand.u32 4294901760, %v7608_v21  ;;  %v4120_v31 = vand.u32 4294901760, %v7865_v32 }
 0x594   : > { %3927 = vmatpush.msrb.mxu1 %v7670_v53  ;;  %4031 = vmatpush.msra.mxu3 %v7559_v25  ;;  %v8800_v25 = vld [vmem:[#allocation9_spill] sm:$0xff] }
 0x595   : > { %3962 = vmatpush.msra.mxu2 %v3754_v1  ;;  %3892 = vmatpush.msrb.mxu0 %v7774_v55  ;;  %v7870_v34 = vand.u32 4294901760, %v8800_v25  ;;  %v7879_v1 = vsub.f32 %v8798_v14, %v7859_v26  ;;  %v4121_v38 = vsub.f32 %v7865_v32, %v4120_v31 }
 0x596   : > { %3929 = vmatpush.msrb.mxu1 %v7690_v15  ;;  %4033 = vmatpush.msra.mxu3 %v7584_v5  ;;  %v8801_v5 = vand.u32 4294901760, %v7619_v12 }
 0x597   : > { %3966 = vmatpush.msra.mxu2 %v8799_v61  ;;  %3895 = vmatpush.msrb.mxu0 %v7790_v16  ;;  %v4126_v20 = vand.u32 4294901760, %v7879_v1  ;;  %v7928_v61 = vand.u32 4294901760, %v7416_v13 }
 0x598   : > { %3931 = vmatpush.msrb.mxu1 %v7705_v7  ;;  %4035 = vmatpush.msra.mxu3 %v7594_v42  ;;  %v8803_v42 = vand.u32 4294901760, %v7633_v40  ;;  %v8805_v40 = vld [vmem:[#allocation43_spill] sm:$0xff] }
 0x599   : > { %3970 = vmatpush.msra.mxu2 %v8801_v5  ;;  %3898 = vmatpush.msrb.mxu0 %v7802_v37  ;;  %v7900_v11 = vand.u32 4294901760, %v8805_v40 }
 0x59a   : > { %3933 = vmatpush.msrb.mxu1 %v7713_v23  ;;  %4037 = vmatpush.msra.mxu3 %v7604_v47  ;;  %v2629_v21 = vpop.f32.mrf.mxu0  ;;  %v7892_v47 = vsub.f32 %v8800_v25, %v7870_v34  ;;  %v4138_v25 = vand.u32 4294901760, %v7907_v30 }
 0x59b   : > { %3974 = vmatpush.msra.mxu2 %v8803_v42  ;;  %4079 = vmatpush.msra.mxu0 %v7849_v33  ;;  %v2630_v12 = vadd.f32 %v2629_v21, %v2561_v18  ;;  %v2698_v56 = vpop.f32.mrf.mxu2  ;;  %v8807_v18 = vand.u32 4294901760, %v7665_v3  ;;  %v8808_v3 = vand.u32 4294901760, %v7680_v49  ;;  %v8809_v21 = vand.u32 4294901760, %v7698_v9 }
 0x59c   : > { %3734 = vmatmul.f32.vlgmr.msrb.gmra.mxu2 %v7493_v51  ;;  %3843 = vmatmul.f32.vlgmr.msrb.gmra.mxu3 %v7396_v8  ;;  %v2754_v51 = vpop.f32.mrf.mxu3  ;;  %v4132_v14 = vand.u32 4294901760, %v7892_v47 }
 0x59d   : > { %3935 = vmatpush.msrb.mxu1 %v7732_v19  ;;  %4039 = vmatpush.msra.mxu3 %v7616_v24  ;;  %v7912_v24 = vand.u32 4294901760, %v3055_v60 }
 0x59e   : > { %3978 = vmatpush.msra.mxu2 %v8806_v63  ;;  %4081 = vmatpush.msra.mxu0 %v7859_v26  ;;  %v4133_v45 = vsub.f32 %v7892_v47, %v4132_v14  ;;  %v8811_v63 = vand.u32 4294901760, %v7729_v46  ;;  %v8812_v46 = vand.u32 4294901760, %v7746_v50 }
 0x59f   : > { %3937 = vmatpush.msrb.mxu1 %v7750_v35  ;;  %4041 = vmatpush.msra.mxu3 %v7642_v6  ;;  %v7925_v6 = vsub.f32 %v8805_v40, %v7900_v11  ;;  %v7940_v5 = vsub.f32 %v3055_v60, %v7912_v24  ;;  %v7952_v60 = vsub.f32 %v7416_v13, %v7928_v61 }
 0x5a0   : > { %3982 = vmatpush.msra.mxu2 %v8807_v18  ;;  %4083 = vmatpush.msra.mxu0 %v7870_v34  ;;  %v4134_v18 = vand.u32 4294901760, %v4133_v45 }
 0x5a1   : > { %3901 = vmatmul.f32.vlgmr.msrb.gmra.mxu0 %v7421_v0  ;;  %3939 = vmatpush.msrb.mxu1 %v7766_v39  ;;  %v4127_v0 = vsub.f32 %v7879_v1, %v4126_v20  ;;  %v4150_v13 = vand.u32 4294901760, %v7940_v5 }
 0x5a2   : > { %4043 = vmatpush.msra.mxu3 %v7654_v48  ;;  %3986 = vmatpush.msra.mxu2 %v8808_v3  ;;  %v4122_v48 = vand.u32 4294901760, %v4121_v38 }
 0x5a3   : > { %4085 = vmatpush.msra.mxu0 %v7882_v52  ;;  %3941 = vmatpush.msrb.mxu1 %v7779_v2  ;;  %v4128_v9 = vand.u32 4294901760, %v4127_v0  ;;  %v8813_v0 = vand.u32 4294901760, %v7759_v29 }
 0x5a4   : > { %4045 = vmatpush.msra.mxu3 %v7670_v53  ;;  %3945 = vmatmul.f32.vlgmr.msrb.gmra.mxu1 %v7445_v59  ;;  %v2666_v49 = vpop.f32.mrf.mxu1  ;;  %v4144_v59 = vand.u32 4294901760, %v7925_v6  ;;  %v8810_v53 = vand.u32 4294901760, %v7717_v58 }
 0x5a5   : > { %3990 = vmatpush.msra.mxu2 %v8809_v21  ;;  %4087 = vmatpush.msra.mxu0 %v7900_v11  ;;  %v2667_v42 = vadd.f32 %v2666_v49, %v2630_v12  ;;  %v2790_v57 = vpop.f32.mrf.mxu2  ;;  %v4139_v12 = vsub.f32 %v7907_v30, %v4138_v25 }
 0x5a6   : > { %4123 = vmatpush.msra.mxu1 %v4122_v48  ;;  %3742 = vmatmul.f32.gmra.mxu2 %v7540_v28 }
 0x5a7   : > { %3847 = vmatmul.f32.gmra.mxu3 %v7457_v27  ;;  %3994 = vmatpush.msra.mxu2 %v8810_v53  ;;  %v2699_v40 = vadd.f32 %v2698_v56, %v2667_v42  ;;  %v2820_v28 = vpop.f32.mrf.mxu3  ;;  %v4145_v56 = vsub.f32 %v7925_v6, %v4144_v59  ;;  %v4140_v38 = vand.u32 4294901760, %v4139_v12 }
 0x5a8   : > { %4047 = vmatpush.msra.mxu3 %v7690_v15  ;;  %4089 = vmatpush.msra.mxu0 %v7912_v24  ;;  %v4156_v15 = vand.u32 4294901760, %v7952_v60 }
 0x5a9   : > { %4129 = vmatpush.msra.mxu1 %v4128_v9  ;;  %3998 = vmatpush.msra.mxu2 %v8811_v63  ;;  %v2755_v58 = vadd.f32 %v2754_v51, %v2699_v40 }
 0x5aa   : > { %4049 = vmatpush.msra.mxu3 %v7705_v7  ;;  %4091 = vmatpush.msra.mxu0 %v7928_v61  ;;  %v4151_v7 = vsub.f32 %v7940_v5, %v4150_v13 }
 0x5ab   : > { %4135 = vmatpush.msra.mxu1 %v4134_v18  ;;  %3906 = vmatmul.f32.gmra.mxu0 %v7480_v36  ;;  %v2791_v3 = vadd.f32 %v2790_v57, %v2755_v58  ;;  %v4146_v36 = vand.u32 4294901760, %v4145_v56 }
 0x5ac   : > { %4051 = vmatpush.msra.mxu3 %v7713_v23  ;;  %4180 = vmatpush.msrb.mxu0 %v7865_v32  ;;  %v4157_v23 = vsub.f32 %v7952_v60, %v4156_v15  ;;  %v4152_v50 = vand.u32 4294901760, %v4151_v7 }
 0x5ad   : > { %4002 = vmatpush.msra.mxu2 %v8812_v46  ;;  %4141 = vmatpush.msra.mxu1 %v4140_v38  ;;  %v2821_v51 = vadd.f32 %v2820_v28, %v2791_v3 }
 0x5ae   : > { %4053 = vmatpush.msra.mxu3 %v7732_v19  ;;  %4183 = vmatpush.msrb.mxu0 %v7879_v1  ;;  %v8814_v19 = vand.u32 4294901760, %v7774_v55  ;;  %v4158_v21 = vand.u32 4294901760, %v4157_v23 }
 0x5af   : > { %3951 = vmatmul.f32.gmra.mxu1 %v7503_v4  ;;  %4006 = vmatpush.msra.mxu2 %v8813_v0  ;;  %v2862_v48 = vpop.f32.mrf.mxu2  ;;  %v8815_v4 = vand.u32 4294901760, %v7790_v16 }
 0x5b0   : > { %4147 = vmatpush.msra.mxu1 %v4146_v36  ;;  %4055 = vmatpush.msra.mxu3 %v7750_v35  ;;  %v2863_v49 = vadd.f32 %v2862_v48, %v2821_v51 }
 0x5b1   : > { %4186 = vmatpush.msrb.mxu0 %v7892_v47  ;;  %4010 = vmatpush.msra.mxu2 %v8814_v19 }
 0x5b2   : > { %4153 = vmatpush.msra.mxu1 %v4152_v50  ;;  %4057 = vmatpush.msra.mxu3 %v7766_v39  ;;  %v2890_v45 = vpop.f32.mrf.mxu3  ;;  %v8816_v39 = vand.u32 4294901760, %v7802_v37 }
 0x5b3   : > { %4189 = vmatpush.msrb.mxu0 %v7907_v30  ;;  %4014 = vmatpush.msra.mxu2 %v8815_v4  ;;  %v7997_v29 = vadd.f32 %v2890_v45, %v2863_v49 }
 0x5b4   : > { %4159 = vmatpush.msra.mxu1 %v4158_v21  ;;  %4059 = vmatpush.msra.mxu3 %v7779_v2 }
 0x5b5   : > { %4097 = vmatmul.f32.vlgmr.msra.gmra.mxu0 %v7563_v44  ;;  %4018 = vmatpush.msra.mxu2 %v8816_v39 }
 0x5b6   : > { %4220 = vmatpush.msrb.mxu1 %v7849_v33  ;;  %4192 = vmatpush.msrb.mxu0 %v7925_v6 }
 0x5b7   : > { %4302 = vmatpush.msrb.mxu3 %v7849_v33  ;;  %4020 = vmatmul.f32.vlgmr.msra.gmra.mxu2 %v7396_v8 }
 0x5b8   : > { %4195 = vmatpush.msrb.mxu0 %v7940_v5  ;;  %4222 = vmatpush.msrb.mxu1 %v7859_v26 }
 0x5b9   : > { %4258 = vmatpush.msrb.mxu2 %v4120_v31  ;;  %4161 = vmatmul.f32.vlgmr.msra.gmra.mxu1 %v7488_v41 }
 0x5ba   : > { %4304 = vmatpush.msrb.mxu3 %v7859_v26  ;;  %4198 = vmatpush.msrb.mxu0 %v7952_v60 }
 0x5bb   : > { %4061 = vmatmul.f32.vlgmr.msra.gmra.mxu3 %v7396_v8  ;;  %4224 = vmatpush.msrb.mxu1 %v7870_v34 }
 0x5bc   : > { %4262 = vmatpush.msrb.mxu2 %v4126_v20  ;;  %4306 = vmatpush.msrb.mxu3 %v7870_v34 }
 0x5bd   : > { %4226 = vmatpush.msrb.mxu1 %v7882_v52  ;;  %4105 = vmatmul.f32.gmra.mxu0 %v7623_v22 }
 0x5be   : > { %4266 = vmatpush.msrb.mxu2 %v4132_v14  ;;  %4308 = vmatpush.msrb.mxu3 %v7882_v52 }
 0x5bf   : > { %4228 = vmatpush.msrb.mxu1 %v7900_v11  ;;  %4024 = vmatmul.f32.gmra.mxu2 %v7457_v27 }
 0x5c0   : > { %4270 = vmatpush.msrb.mxu2 %v4138_v25  ;;  %4310 = vmatpush.msrb.mxu3 %v7900_v11 }
 0x5c1   : > { %4230 = vmatpush.msrb.mxu1 %v7912_v24 }
 0x5c2   : > { %4274 = vmatpush.msrb.mxu2 %v4144_v59  ;;  %4165 = vmatmul.f32.gmra.mxu1 %v7535_v17 }
 0x5c3   : > { %4312 = vmatpush.msrb.mxu3 %v7912_v24  ;;  %4232 = vmatpush.msrb.mxu1 %v7928_v61 }
 0x5c4   : > { %4065 = vmatmul.f32.gmra.mxu3 %v7457_v27  ;;  %4278 = vmatpush.msrb.mxu2 %v4150_v13 }
 0x5c5   : > { %4314 = vmatpush.msrb.mxu3 %v7928_v61  ;;  %4201 = vmatmul.f32.vlgmr.msrb.gmra.mxu0 %v7513_v62 }
 0x5c6   : > { %4282 = vmatpush.msrb.mxu2 %v4156_v15 }
 0x5c7   : > { %4284 = vmatmul.f32.vlgmr.msrb.gmra.mxu2 %v7488_v41 }
 0x5ca   : > { %4236 = vmatmul.f32.vlgmr.msrb.gmra.mxu1 %v7529_v54 }
 0x5cc   : > { %4316 = vmatmul.f32.vlgmr.msrb.gmra.mxu3 %v7488_v41 }
 0x5cd   : > { %4206 = vmatmul.f32.gmra.mxu0 %v7554_v43 }
 0x5ce   : > { %v3275_v8 = vpop.f32.mrf.mxu2  ;;  %v3108_v62 = vpop.f32.mrf.mxu0 }
 0x5cf   : > { %4288 = vmatmul.f32.gmra.mxu2 %v7535_v17 }
 0x5d1   : > { %v3319_v27 = vpop.f32.mrf.mxu3 }
 0x5d2   : > { %4242 = vmatmul.f32.gmra.mxu1 %v7575_v10 }
 0x5d4   : > { %4320 = vmatmul.f32.gmra.mxu3 %v7535_v17 }
 0x5d7   : > { %v3280_v22 = vpop.f32.mrf.mxu2 }
 0x5d8   : > { %v3116_v35 = vpop.f32.mrf.mxu0 }
 0x5d9   : > { %v3217_v44 = vpop.f32.mrf.mxu1 }
 0x5da   : > { %v3325_v2 = vpop.f32.mrf.mxu3  ;;  %v3218_v37 = vadd.f32 %v3217_v44, %v3108_v62 }
 0x5dc   : > { %v3276_v54 = vadd.f32 %v3275_v8, %v3218_v37 }
 0x5de   : > { %v3320_v33 = vadd.f32 %v3319_v27, %v3276_v54 }
 0x5e2   : > { %v3221_v55 = vpop.f32.mrf.mxu1 }
 0x5e3   : > { %v3471_v16 = vpop.f32.mrf.mxu2  ;;  %v3394_v43 = vpop.f32.mrf.mxu0  ;;  %v3222_v26 = vadd.f32 %v3221_v55, %v3116_v35 }
 0x5e4   : > { %v3395_v32 = vadd.f32 %v3394_v43, %v3320_v33 }
 0x5e5   : > { %v3535_v41 = vpop.f32.mrf.mxu3  ;;  %v3281_v1 = vadd.f32 %v3280_v22, %v3222_v26 }
 0x5e7   : > { %v3326_v17 = vadd.f32 %v3325_v2, %v3281_v1 }
 0x5ed   : > { %v3435_v34 = vpop.f32.mrf.mxu1  ;;  %v3479_v52 = vpop.f32.mrf.mxu2 }
 0x5ee   : > { %v3436_v10 = vadd.f32 %v3435_v34, %v3395_v32  ;;  %v3398_v11 = vpop.f32.mrf.mxu0 }
 0x5ef   : > { %v3399_v30 = vadd.f32 %v3398_v11, %v3326_v17 }
 0x5f0   : > { %v3539_v31 = vpop.f32.mrf.mxu3  ;;  %v3472_v47 = vadd.f32 %v3471_v16, %v3436_v10 }
 0x5f2   : > { %v3536_v20 = vadd.f32 %v3535_v41, %v3472_v47 }
 0x5f7   : > { %v3439_v24 = vpop.f32.mrf.mxu1  ;;  %v3575_v14 = vpop.f32.mrf.mxu2 }
 0x5f8   : > { %v3440_v6 = vadd.f32 %v3439_v24, %v3399_v30  ;;  %v3576_v61 = vadd.f32 %v3575_v14, %v3536_v20 }
 0x5fa   : > { %v3610_v25 = vpop.f32.mrf.mxu3  ;;  %v3480_v42 = vadd.f32 %v3479_v52, %v3440_v6 }
 0x5fb   : > { %v3611_v5 = vadd.f32 %v3610_v25, %v3576_v61 }
 0x5fc   : > { %v3540_v59 = vadd.f32 %v3539_v31, %v3480_v42 }
 0x5fd   : > { %v3658_v57 = vpop.f32.mrf.mxu0 }
 0x5fe   : > { %v3659_v60 = vadd.f32 %v3658_v57, %v3611_v5 }
 0x601   : > { %v3580_v53 = vpop.f32.mrf.mxu2 }
 0x602   : > { %v3690_v9 = vpop.f32.mrf.mxu1  ;;  %v3581_v12 = vadd.f32 %v3580_v53, %v3540_v59 }
 0x603   : > { %v3691_v40 = vadd.f32 %v3690_v9, %v3659_v60 }
 0x604   : > { %v3616_v13 = vpop.f32.mrf.mxu3 }
 0x605   : > { %v4328_v28 = vmin.f32 %v3691_v40, 20.0  ;;  %v3617_v63 = vadd.f32 %v3616_v13, %v3581_v12  ;;  %vm4324_vm0 = vcmp.gt.f32.partialorder %v3691_v40, 20.0 }
 0x607   : > { %v4332_v18 = vmul.f32 1.442695, %v4328_v28  ;;  %v3662_v58 = vpop.f32.mrf.mxu0 }
 0x608   : > { %v3663_v56 = vadd.f32 %v3662_v58, %v3617_v63 }
 0x609   : > { %5182 = vpow2.f32 %v4332_v18 }
 0x60b   : > { %v3694_v15 = vpop.f32.mrf.mxu1 }
 0x60c   : > { %v3695_v38 = vadd.f32 %v3694_v15, %v3663_v56 }
 0x60e   : > { %v4330_v3 = vmin.f32 %v3695_v38, 20.0  ;;  %vm4326_vm8 = vcmp.gt.f32.partialorder %v3695_v38, 20.0 }
 0x60f   : > { %v5183_v7 = vpop.eup %5182 }
 0x610   : > { %v4340_v46 = vadd.f32 1.0, %v5183_v7  ;;  %v4336_v51 = vmul.f32 1.442695, %v4330_v3  ;;  %v4343_v36 = vmul.f32 -0.5, %v5183_v7  ;;  %v4346_v0 = vand.u32 2147483647, %v5183_v7 }
 0x612   : > { %5184 = vlog2.f32 %v4340_v46  ;;  %v4344_v23 = vadd.f32 1.0, %v4343_v36  ;;  %vm4347_vm5 = vcmp.lt.f32.partialorder %v4346_v0, 0.0004427343 }
 0x613   : > { %5186 = vpow2.f32 %v4336_v51 }
 0x614   : > { %v4345_v19 = vmul.f32 %v5183_v7, %v4344_v23 }
 0x618   : > { %v5185_v48 = vpop.eup %5184 }
 0x619   : > { %v5187_v50 = vpop.eup %5186  ;;  %v4342_v49 = vmul.f32 0.6931472, %v5185_v48 }
 0x61a   : > { %v4358_v21 = vadd.f32 1.0, %v5187_v50  ;;  %v4361_v4 = vmul.f32 -0.5, %v5187_v50  ;;  %v4364_v62 = vand.u32 2147483647, %v5187_v50 }
 0x61b   : > { %v4348_v45 = vsel %vm4347_vm5, %v4345_v19, %v4342_v49  ;;  %vm4383_vm5 = vcmask 261120  }
 0x61c   : > { %v8049_v39 = vsel %vm4324_vm0, %v3691_v40, %v4348_v45  ;;  %5188 = vlog2.f32 %v4358_v21  ;;  %v4362_v27 = vadd.f32 1.0, %v4361_v4  ;;  %vm4365_vm2 = vcmp.lt.f32.partialorder %v4364_v62, 0.0004427343 }
 0x61d   : > { %4432 = vrot.lane.b32.xlu2 %v8049_v39, %s5253_s3  ;;  %4456 = vrot.lane.b32.xlu0 %v8049_v39, %s5249_s28  ;;  %v8058_v37 = vrot.slane %v8049_v39, 4 }
 0x61e   : > { %v3902_v8 = vpop.f32.mrf.mxu0  ;;  %4480 = vrot.lane.b32.xlu1 %v8049_v39, %s5246_s25  ;;  %v4363_v35 = vmul.f32 %v5187_v50, %v4362_v27 }
 0x61f   : > { %v3735_v16 = vpop.f32.mrf.mxu2  ;;  %v3844_v33 = vpop.f32.mrf.mxu3 }
 0x620   : > { %v3845_v32 = vadd.f32 %v3844_v33, %v3735_v16 }
 0x621   : > { %v3946_v22 = vpop.f32.mrf.mxu1 }
 0x622   : > { %v5189_v44 = vpop.eup %5188  ;;  %v3903_v52 = vadd.f32 %v3902_v8, %v3845_v32 }
 0x623   : > { %v4360_v2 = vmul.f32 0.6931472, %v5189_v44 }
 0x624   : > { %v3947_v47 = vadd.f32 %v3946_v22, %v3903_v52 }
 0x625   : > { %v4366_v55 = vsel %vm4365_vm2, %v4363_v35, %v4360_v2  ;;  %4444 = vrot.lane.b32.xlu0 %v8058_v37, %s5254_s4 }
 0x626   : > { %v8062_v54 = vsel %vm4326_vm8, %v3695_v38, %v4366_v55  ;;  %4468 = vrot.lane.b32.xlu1 %v8058_v37, %s5252_s30 }
 0x627   : > { %4484 = vrot.lane.b32.xlu2 %v8062_v54, %s5246_s25  ;;  %v4392_v26 = vrot.slane %v8062_v54, 4 }
 0x628   : > { %v3907_v41 = vpop.f32.mrf.mxu0 }
 0x629   : > { %v3743_v34 = vpop.f32.mrf.mxu2  ;;  %v8077_v10 = vsel %vm243_vm3, %v8058_v37, %v4392_v26 }
 0x62a   : > { %v3848_v31 = vpop.f32.mrf.mxu3 }
 0x62b   : > { %v3849_v11 = vadd.f32 %v3848_v31, %v3743_v34 }
 0x62c   : > { %v3952_v43 = vpop.f32.mrf.mxu1 }
 0x62d   : > { %4412 = vrot.lane.b32.xlu0 %v8062_v54, %s5250_s29  ;;  %v3908_v14 = vadd.f32 %v3907_v41, %v3849_v11 }
 0x62e   : > { %4436 = vrot.lane.b32.xlu1 %v8062_v54, %s5253_s3 }
 0x62f   : > { %4460 = vrot.lane.b32.xlu2 %v8062_v54, %s5249_s28  ;;  %v3953_v42 = vadd.f32 %v3952_v43, %v3908_v14 }
 0x632   : > { %v4098_v1 = vpop.f32.mrf.mxu0 }
 0x635   : > { %4472 = vrot.lane.b32.xlu0 %v8077_v10, %s5252_s30 }
 0x636   : > { %v4162_v17 = vpop.f32.mrf.mxu1  ;;  %4424 = vrot.lane.b32.xlu1 %v8077_v10, %s5255_s5 }
 0x637   : > { %4448 = vrot.lane.b32.xlu2 %v8077_v10, %s5254_s4 }
 0x63a   : > { %v4021_v30 = vpop.f32.mrf.mxu2  ;;  %v4106_v20 = vpop.f32.mrf.mxu0 }
 0x63b   : > { %v4022_v24 = vadd.f32 %v4021_v30, %v3947_v47 }
 0x63e   : > { %v4062_v6 = vpop.f32.mrf.mxu3 }
 0x63f   : > { %v4063_v61 = vadd.f32 %v4062_v6, %v4022_v24  ;;  %v4166_v25 = vpop.f32.mrf.mxu1  ;;  %v4854_v24 = vrot.slane %v7997_v29, 4  ;;  %v8817_v6 = vld [vmem:[#allocation5_spill] sm:$0xff] }
 0x641   : > { %v4099_v5 = vadd.f32 %v4098_v1, %v4063_v61  ;;  %v8818_v61 = vld [vmem:[#allocation12_spill] sm:$0xff] }
 0x642   : > { %v4025_v57 = vpop.f32.mrf.mxu2  ;;  %v4202_v60 = vpop.f32.mrf.mxu0 }
 0x643   : > { %v4163_v59 = vadd.f32 %v4162_v17, %v4099_v5  ;;  %v4026_v53 = vadd.f32 %v4025_v57, %v3953_v42 }
 0x645   : > { %v4203_v9 = vadd.f32 %v4202_v60, %v4163_v59 }
 0x647   : > { %v4066_v12 = vpop.f32.mrf.mxu3  ;;  %v4237_v40 = vpop.f32.mrf.mxu1 }
 0x648   : > { %v4067_v13 = vadd.f32 %v4066_v12, %v4026_v53  ;;  %v4238_v63 = vadd.f32 %v4237_v40, %v4203_v9 }
 0x64a   : > { %v4107_v28 = vadd.f32 %v4106_v20, %v4067_v13  ;;  %v4285_v18 = vpop.f32.mrf.mxu2  ;;  %v4207_v58 = vpop.f32.mrf.mxu0 }
 0x64b   : > { %v4286_v15 = vadd.f32 %v4285_v18, %v4238_v63 }
 0x64c   : > { %v4167_v56 = vadd.f32 %v4166_v25, %v4107_v28 }
 0x64e   : > { %v4208_v38 = vadd.f32 %v4207_v58, %v4167_v56 }
 0x64f   : > { %v4317_v3 = vpop.f32.mrf.mxu3  ;;  %v4243_v7 = vpop.f32.mrf.mxu1 }
 0x650   : > { %v4318_v46 = vadd.f32 %v4317_v3, %v4286_v15  ;;  %v4244_v36 = vadd.f32 %v4243_v7, %v4208_v38 }
 0x652   : > { %v4329_v51 = vmin.f32 %v4318_v46, 20.0  ;;  %v4289_v23 = vpop.f32.mrf.mxu2  ;;  %vm4325_vm0 = vcmp.gt.f32.partialorder %v4318_v46, 20.0 }
 0x653   : > { %v4290_v48 = vadd.f32 %v4289_v23, %v4244_v36 }
 0x654   : > { %v4334_v0 = vmul.f32 1.442695, %v4329_v51 }
 0x656   : > { %5190 = vpow2.f32 %v4334_v0 }
 0x657   : > { %v4321_v50 = vpop.f32.mrf.mxu3 }
 0x658   : > { %v4322_v49 = vadd.f32 %v4321_v50, %v4290_v48 }
 0x65a   : > { %v4331_v19 = vmin.f32 %v4322_v49, 20.0  ;;  %vm4327_vm8 = vcmp.gt.f32.partialorder %v4322_v49, 20.0 }
 0x65c   : > { %v5191_v21 = vpop.eup %5190  ;;  %v4338_v45 = vmul.f32 1.442695, %v4331_v19 }
 0x65d   : > { %v4349_v4 = vadd.f32 1.0, %v5191_v21  ;;  %v4352_v8 = vmul.f32 -0.5, %v5191_v21  ;;  %v4355_v62 = vand.u32 2147483647, %v5191_v21 }
 0x65e   : > { %5192 = vpow2.f32 %v4338_v45 }
 0x65f   : > { %5194 = vlog2.f32 %v4349_v4  ;;  %v4353_v27 = vadd.f32 1.0, %v4352_v8  ;;  %vm4356_vm7 = vcmp.lt.f32.partialorder %v4355_v62, 0.0004427343 }
 0x661   : > { %v4354_v55 = vmul.f32 %v5191_v21, %v4353_v27 }
 0x664   : > { %v5193_v44 = vpop.eup %5192 }
 0x665   : > { %v5195_v22 = vpop.eup %5194  ;;  %v4367_v2 = vadd.f32 1.0, %v5193_v44  ;;  %v4370_v16 = vmul.f32 -0.5, %v5193_v44  ;;  %v4373_v32 = vand.u32 2147483647, %v5193_v44 }
 0x666   : > { %v4351_v35 = vmul.f32 0.6931472, %v5195_v22 }
 0x667   : > { %5196 = vlog2.f32 %v4367_v2  ;;  %v4371_v43 = vadd.f32 1.0, %v4370_v16  ;;  %vm4374_vm2 = vcmp.lt.f32.partialorder %v4373_v32, 0.0004427343 }
 0x668   : > { %v4357_v41 = vsel %vm4356_vm7, %v4354_v55, %v4351_v35  ;;  %vm8819_vm7 = vcmask 1044480  }
 0x669   : > { %v4377_v33 = vsel %vm4325_vm0, %v4318_v46, %v4357_v41  ;;  %v4372_v52 = vmul.f32 %v5193_v44, %v4371_v43 }
 0x66a   : > { %v4384_v26 = vsel %vm4383_vm5, %v4377_v33, 0.0 }
 0x66b   : > { %4458 = vrot.lane.b32.xlu1 %v4384_v26, %s5249_s28  ;;  %4482 = vrot.lane.b32.xlu2 %v4384_v26, %s5246_s25  ;;  %v4391_v47 = vrot.slane %v4384_v26, 4 }
 0x66c   : > { %4434 = vrot.lane.b32.xlu0 %v4384_v26, %s5253_s3 }
 0x66d   : > { %v5197_v34 = vpop.eup %5196 }
 0x66e   : > { %v4369_v1 = vmul.f32 0.6931472, %v5197_v34 }
 0x670   : > { %v4375_v31 = vsel %vm4374_vm2, %v4372_v52, %v4369_v1 }
 0x671   : > { %v4379_v17 = vsel %vm4327_vm8, %v4322_v49, %v4375_v31 }
 0x672   : > { %v4385_v11 = vsel %vm4383_vm5, %v4379_v17, 0.0 }
 0x673   : > { %4446 = vrot.lane.b32.xlu1 %v4391_v47, %s5254_s4  ;;  %4470 = vrot.lane.b32.xlu2 %v4391_v47, %s5252_s30  ;;  %v4394_v30 = vrot.slane %v4385_v11, 4 }
 0x674   : > { %4486 = vrot.lane.b32.xlu0 %v4385_v11, %s5246_s25 }
 0x675   : > { %v4395_v20 = vsel %vm243_vm3, %v4391_v47, %v4394_v30 }
 0x677   : > { %v8114_v14 = vpop.permute.xlu2 %4432 }
 0x67b   : > { %4474 = vrot.lane.b32.xlu1 %v4395_v20, %s5252_s30  ;;  %4438 = vrot.lane.b32.xlu2 %v4385_v11, %s5253_s3 }
 0x67c   : > { %4462 = vrot.lane.b32.xlu0 %v4385_v11, %s5249_s28 }
 0x681   : > { %v4485_v25 = vpop.permute.xlu2 %4484 }
 0x683   : > { %4414 = vrot.lane.b32.xlu1 %v4385_v11, %s5250_s29  ;;  %4420 = vrot.lane.b32.xlu2 %v8058_v37, %s5255_s5 }
 0x684   : > { %4422 = vrot.lane.b32.xlu0 %v4391_v47, %s5255_s5 }
 0x689   : > { %v4461_v29 = vpop.permute.xlu2 %4460 }
 0x68b   : > { %4408 = vrot.lane.b32.xlu1 %v8049_v39, %s5250_s29  ;;  %4410 = vrot.lane.b32.xlu2 %v4384_v26, %s5250_s29 }
 0x68c   : > { %4450 = vrot.lane.b32.xlu0 %v4395_v20, %s5254_s4 }
 0x68f   : > { %v4457_v5 = vpop.permute.xlu0 %4456 }
 0x691   : > { %v8122_v42 = vpop.permute.xlu2 %4448 }
 0x693   : > { %4402 = vrot.lane.b32.xlu1 %v4395_v20, %s5256_s6  ;;  %4426 = vrot.lane.b32.xlu2 %v4395_v20, %s5255_s5 }
 0x694   : > { %4400 = vrot.lane.b32.xlu0 %v8077_v10, %s5256_s6  ;;  %v4481_v10 = vpop.permute.xlu1 %4480 }
 0x697   : > { %v4445_v57 = vpop.permute.xlu0 %4444 }
 0x69b   : > { %4855 = vrot.lane.b32.xlu1 %v4854_v24, %s5258_s8  ;;  %4396 = vrot.lane.b32.xlu2 %v8058_v37, %s5256_s6 }
 0x69c   : > { %4398 = vrot.lane.b32.xlu0 %v4391_v47, %s5256_s6  ;;  %v4469_v37 = vpop.permute.xlu1 %4468 }
 0x69f   : > { %v8124_v53 = vpop.permute.xlu0 %4412 }
 0x6a3   : > { %4873 = vrot.lane.b32.xlu1 %v8817_v6, %s5244_s23  ;;  %4875 = vrot.lane.b32.xlu2 %v8818_v61, %s5244_s23 }
 0x6a4   : > { %v4437_v59 = vpop.permute.xlu1 %4436 }
 0x6a7   : > { %v4473_v40 = vpop.permute.xlu0 %4472 }
 0x6ab   : > { %4890 = vrot.lane.b32.xlu1 %v8818_v61, %s5259_s10 }
 0x6ac   : > { %v8126_v12 = vpop.permute.xlu1 %4424 }
 0x6c5   : > { %v4483_v60 = vpop.permute.xlu2 %4482 }
 0x6c6   : > { %v4488_v18 = vsel %vm199_vm6, %v4481_v10, %v4483_v60 }
 0x6c7   : > { %v8131_v58 = vand.u32 4294901760, %v4488_v18 }
 0x6c9   : > { %v8137_v7 = vsub.f32 %v4488_v18, %v8131_v58 }
 0x6cb   : > { %v4564_v50 = vand.u32 4294901760, %v8137_v7 }
 0x6cd   : > { %v4471_v9 = vpop.permute.xlu2 %4470  ;;  %v4565_v35 = vsub.f32 %v8137_v7, %v4564_v50 }
 0x6ce   : > { %v4476_v8 = vsel %vm723_vm11, %v4469_v37, %v4471_v9 }
 0x6cf   : > { %v4566_v34 = vand.u32 4294901760, %v4565_v35 }
 0x6d5   : > { %v4439_v13 = vpop.permute.xlu2 %4438 }
 0x6d6   : > { %v4441_v17 = vsel %vm698_vm12, %v4437_v59, %v4439_v13 }
 0x6dd   : > { %v4459_v28 = vpop.permute.xlu1 %4458  ;;  %v8133_v56 = vpop.permute.xlu2 %4420 }
 0x6de   : > { %v8128_v63 = vpop.permute.xlu0 %4434  ;;  %v4464_v46 = vsel %vm191_vm9, %v4457_v5, %v4459_v28 }
 0x6df   : > { %v8144_v0 = vand.u32 4294901760, %v4464_v46 }
 0x6e1   : > { %v8160_v27 = vsub.f32 %v4464_v46, %v8144_v0 }
 0x6e3   : > { %v4582_v26 = vand.u32 4294901760, %v8160_v27 }
 0x6e5   : > { %v4447_v15 = vpop.permute.xlu1 %4446  ;;  %v8152_v19 = vpop.permute.xlu2 %4410  ;;  %v4583_v24 = vsub.f32 %v8160_v27, %v4582_v26 }
 0x6e6   : > { %v4487_v38 = vpop.permute.xlu0 %4486  ;;  %v4452_v32 = vsel %vm706_vm13, %v4445_v57, %v4447_v15 }
 0x6e7   : > { %v4489_v3 = vsel %vm199_vm6, %v4485_v25, %v4487_v38  ;;  %v4494_v11 = vsel %vm243_vm3, %v4441_v17, %v4452_v32  ;;  %v4584_v59 = vand.u32 4294901760, %v4583_v24  ;;  %v4381_v38 = vld [vmem:[#allocation2 + $0xa0] sm:$0xff]  ;;  %vm4497_vm6 = vcmask 891904  }
 0x6e8   : > { %v4496_v51 = vsel %vm243_vm3, %v4489_v3, 1.0  ;;  %v8209_v5 = vand.u32 4294901760, %v4494_v11  ;;  %v8289_v24 = vand.u32 4294901760, %v8049_v39 }
 0x6e9   : > { %v4505_v36 = vsel %vm8819_vm7, %v4496_v51, 0 }
 0x6ea   : > { %v8142_v23 = vand.u32 4294901760, %v4505_v36 }
 0x6ec   : > { %v8147_v48 = vsub.f32 %v4505_v36, %v8142_v23  ;;  %4510 = vmatpush.msra.mxu0 %v8142_v23  ;;  %4707 = vmatpush.msra.mxu3 %v8142_v23 }
 0x6ed   : > { %v4475_v49 = vpop.permute.xlu1 %4474  ;;  %v4427_v25 = vpop.permute.xlu2 %4426 }
 0x6ee   : > { %v4558_v21 = vand.u32 4294901760, %v8147_v48  ;;  %v4477_v45 = vsel %vm723_vm11, %v4473_v40, %v4475_v49  ;;  %4512 = vmatpush.msra.mxu0 %v8131_v58  ;;  %4653 = vmatpush.msra.mxu2 %v8147_v48  ;;  %v4463_v4 = vpop.permute.xlu0 %4462  ;;  %v4429_v37 = vsel %vm690_vm14, %v8126_v12, %v4427_v25  ;;  %vm5017_vm11 = vcmask 326656  }
 0x6ef   : > { %v8162_v62 = vand.u32 4294901760, %v4477_v45  ;;  %4709 = vmatpush.msra.mxu3 %v8131_v58  ;;  %v4465_v44 = vsel %vm191_vm9, %v4461_v29, %v4463_v4  ;;  %v4440_v29 = vsel %vm698_vm12, %v8114_v14, %v8128_v63  ;;  %v8219_v14 = vand.u32 4294901760, %v4429_v37 }
 0x6f0   : > { %v4495_v22 = vsel %vm243_vm3, %v4465_v44, %v4476_v8  ;;  %4656 = vmatpush.msra.mxu2 %v8137_v7  ;;  %v4559_v2 = vsub.f32 %v8147_v48, %v4558_v21  ;;  %v8217_v9 = vand.u32 4294901760, %v4440_v29  ;;  %v8223_v63 = vsub.f32 %v4494_v11, %v8209_v5  ;;  %v8821_v7 = vld [vmem:[#allocation6_spill] sm:$0xff] }
 0x6f1   : > { %v8175_v55 = vsub.f32 %v4477_v45, %v8162_v62  ;;  %v8177_v16 = vand.u32 4294901760, %v4495_v22  ;;  %4514 = vmatpush.msra.mxu0 %v8162_v62  ;;  %4711 = vmatpush.msra.mxu3 %v8162_v62  ;;  %v8237_v3 = vsub.f32 %v4429_v37, %v8219_v14  ;;  %vm4994_vm9 = vcmask 64512  }
 0x6f2   : > { %v4560_v41 = vand.u32 4294901760, %v4559_v2  ;;  %v8228_v12 = vsub.f32 %v4440_v29, %v8217_v9  ;;  %vm5023_vm12 = vcmask 392192  }
 0x6f3   : > { %4516 = vmatpush.msra.mxu0 %v8177_v16  ;;  %4659 = vmatpush.msra.mxu2 %v8175_v55  ;;  %v8184_v33 = vsub.f32 %v4495_v22, %v8177_v16  ;;  %v4570_v43 = vand.u32 4294901760, %v8175_v55  ;;  %v4606_v2 = vand.u32 4294901760, %v8237_v3 }
 0x6f4   : > { %4561 = vmatpush.msra.mxu1 %v4560_v41  ;;  %4713 = vmatpush.msra.mxu3 %v8177_v16  ;;  %v4600_v49 = vand.u32 4294901760, %v8228_v12 }
 0x6f5   : > { %v4415_v1 = vpop.permute.xlu1 %4414  ;;  %4518 = vmatpush.msra.mxu0 %v8144_v0  ;;  %4662 = vmatpush.msra.mxu2 %v8184_v33  ;;  %v4571_v52 = vsub.f32 %v8175_v55, %v4570_v43  ;;  %v4576_v31 = vand.u32 4294901760, %v8184_v33 }
 0x6f6   : > { %4567 = vmatpush.msra.mxu1 %v4566_v34  ;;  %4715 = vmatpush.msra.mxu3 %v8144_v0  ;;  %v4423_v47 = vpop.permute.xlu0 %4422  ;;  %v4417_v57 = vsel %vm175_vm10, %v8124_v53, %v4415_v1 }
 0x6f7   : > { %4665 = vmatpush.msra.mxu2 %v8160_v27  ;;  %v4572_v30 = vand.u32 4294901760, %v4571_v52  ;;  %v4577_v20 = vsub.f32 %v8184_v33, %v4576_v31  ;;  %v4428_v60 = vsel %vm690_vm14, %v8133_v56, %v4423_v47  ;;  %v4601_v52 = vsub.f32 %v8228_v12, %v4600_v49  ;;  %v4382_v47 = vld [vmem:[#allocation2 + $0xb0] sm:$0xf] }
 0x6f8   : > { %v4493_v13 = vsel %vm243_vm3, %v4417_v57, %v4428_v60  ;;  %v4502_v37 = vsel %vm4497_vm6, %v4382_v47, 0  ;;  %vm5039_vm14 = vcmask 521216  }
 0x6f9   : > { %4573 = vmatpush.msra.mxu1 %v4572_v30  ;;  %v4578_v10 = vand.u32 4294901760, %v4577_v20  ;;  %v8234_v15 = vand.u32 4294901760, %v4493_v13  ;;  %v4607_v20 = vsub.f32 %v8237_v3, %v4606_v2 }
 0x6fb   : > { %4579 = vmatpush.msra.mxu1 %v4578_v10  ;;  %v8254_v4 = vsub.f32 %v4493_v13, %v8234_v15  ;;  %v4602_v10 = vand.u32 4294901760, %v4601_v52 }
 0x6fd   : > { %v4409_v40 = vpop.permute.xlu1 %4408  ;;  %4585 = vmatpush.msra.mxu1 %v4584_v59  ;;  %v4612_v17 = vand.u32 4294901760, %v8254_v4 }
 0x6fe   : > { %v4451_v28 = vpop.permute.xlu0 %4450  ;;  %v4416_v18 = vsel %vm175_vm10, %v4409_v40, %v8152_v19  ;;  %v4499_v19 = vsel %vm4497_vm6, %v4381_v38, 0  ;;  %v4397_v40 = vpop.permute.xlu2 %4396  ;;  %v8315_v38 = vsub.f32 %v8049_v39, %v8289_v24  ;;  %vm5006_vm10 = vcmask 195584  }
 0x6ff   : > { %v4453_v53 = vsel %vm706_vm13, %v8122_v42, %v4451_v28  ;;  %v4594_v42 = vand.u32 4294901760, %v8223_v63  ;;  %v8245_v51 = vand.u32 4294901760, %v4416_v18  ;;  %v8270_v32 = vand.u32 4294901760, %v4499_v19  ;;  %v8820_v28 = vld [vmem:[#allocation13_spill] sm:$0xff] }
 0x700   : > { %v8232_v56 = vand.u32 4294901760, %v4453_v53  ;;  %v4613_v60 = vsub.f32 %v8254_v4, %v4612_v17  ;;  %vm5029_vm13 = vcmask 457728  }
 0x701   : > { %v4595_v22 = vsub.f32 %v8223_v63, %v4594_v42  ;;  %v8266_v35 = vsub.f32 %v4416_v18, %v8245_v51  ;;  %v8295_v29 = vsub.f32 %v4499_v19, %v8270_v32  ;;  %v4608_v18 = vand.u32 4294901760, %v4607_v20 }
 0x702   : > { %v8240_v46 = vsub.f32 %v4453_v53, %v8232_v56  ;;  %4520 = vmatpush.msra.mxu0 %v8232_v56  ;;  %4717 = vmatpush.msra.mxu3 %v8232_v56 }
 0x703   : > { %v4596_v30 = vand.u32 4294901760, %v4595_v22  ;;  %v4618_v25 = vand.u32 4294901760, %v8266_v35 }
 0x704   : > { %4522 = vmatpush.msra.mxu0 %v8209_v5  ;;  %4668 = vmatpush.msra.mxu2 %v8240_v46  ;;  %v4588_v36 = vand.u32 4294901760, %v8240_v46 }
 0x705   : > { %4719 = vmatpush.msra.mxu3 %v8209_v5  ;;  %v4403_v45 = vpop.permute.xlu1 %4402 }
 0x706   : > { %4524 = vmatpush.msra.mxu0 %v8217_v9  ;;  %4671 = vmatpush.msra.mxu2 %v8223_v63  ;;  %v4401_v8 = vpop.permute.xlu0 %4400  ;;  %v4589_v44 = vsub.f32 %v8240_v46, %v4588_v36 }
 0x707   : > { %4721 = vmatpush.msra.mxu3 %v8217_v9  ;;  %v4405_v41 = vsel %vm675_vm15, %v4401_v8, %v4403_v45  ;;  %v4619_v45 = vsub.f32 %v8266_v35, %v4618_v25  ;;  %v4539_v8 = vand.u32 4294901760, %v8295_v29 }
 0x708   : > { %v8272_v34 = vand.u32 4294901760, %v4405_v41  ;;  %4526 = vmatpush.msra.mxu0 %v8219_v14  ;;  %4674 = vmatpush.msra.mxu2 %v8228_v12  ;;  %v4590_v1 = vand.u32 4294901760, %v4589_v44  ;;  %v8324_v44 = vand.u32 4294901760, %v4502_v37 }
 0x709   : > { %4723 = vmatpush.msra.mxu3 %v8219_v14  ;;  %v4620_v52 = vand.u32 4294901760, %v4619_v45 }
 0x70a   : > { %v8282_v11 = vsub.f32 %v4405_v41, %v8272_v34  ;;  %4528 = vmatpush.msra.mxu0 %v8234_v15  ;;  %4591 = vmatpush.msra.mxu1 %v4590_v1  ;;  %v4614_v41 = vand.u32 4294901760, %v4613_v60  ;;  %v4546_v20 = vsub.f32 %v4502_v37, %v8324_v44 }
 0x70b   : > { %4677 = vmatpush.msra.mxu2 %v8237_v3  ;;  %4725 = vmatpush.msra.mxu3 %v8234_v15 }
 0x70c   : > { %4530 = vmatpush.msra.mxu0 %v8245_v51  ;;  %4597 = vmatpush.msra.mxu1 %v4596_v30  ;;  %v4624_v59 = vand.u32 4294901760, %v8282_v11  ;;  %v4540_v30 = vsub.f32 %v8295_v29, %v4539_v8 }
 0x70d   : > { %4680 = vmatpush.msra.mxu2 %v8254_v4  ;;  %4727 = vmatpush.msra.mxu3 %v8245_v51  ;;  %v8301_v57 = vpop.permute.xlu1 %4855 }
 0x70e   : > { %4532 = vmatpush.msra.mxu0 %v8272_v34  ;;  %4603 = vmatpush.msra.mxu1 %v4602_v10  ;;  %v4399_v13 = vpop.permute.xlu0 %4398  ;;  %v8311_v53 = vsel %vm243_vm3, %v8820_v28, %v8301_v57  ;;  %v4625_v1 = vsub.f32 %v8282_v11, %v4624_v59  ;;  %v4547_v28 = vand.u32 4294901760, %v4546_v20 }
 0x70f   : > { %4683 = vmatpush.msra.mxu2 %v8266_v35  ;;  %4729 = vmatpush.msra.mxu3 %v8272_v34  ;;  %v4404_v19 = vsel %vm675_vm15, %v4397_v40, %v4399_v13  ;;  %v4541_v13 = vand.u32 4294901760, %v4540_v30 }
 0x710   : > { %v4492_v22 = vsel %vm243_vm3, %v8062_v54, %v4404_v19  ;;  %4907 = vrot.lane.b32.xlu1 %v8311_v53, %s5260_s11  ;;  %4892 = vrot.lane.b32.xlu2 %v8311_v53, %s5259_s10  ;;  %v4636_v54 = vand.u32 4294901760, %v8315_v38  ;;  %v4626_v10 = vand.u32 4294901760, %v4625_v1 }
 0x711   : > { %v8332_v39 = vand.u32 4294901760, %v4492_v22  ;;  %4877 = vrot.lane.b32.xlu0 %v8311_v53, %s5244_s23  ;;  %4609 = vmatpush.msra.mxu1 %v4608_v18  ;;  %v4548_v18 = vsub.f32 %v4546_v20, %v4547_v28 }
 0x712   : > { %4686 = vmatpush.msra.mxu2 %v8282_v11  ;;  %v4637_v37 = vsub.f32 %v8315_v38, %v4636_v54 }
 0x713   : > { %4615 = vmatpush.msra.mxu1 %v4614_v41  ;;  %4534 = vmatpush.msra.mxu0 %v8332_v39  ;;  %v8343_v47 = vsub.f32 %v4492_v22, %v8332_v39 }
 0x714   : > { %4731 = vmatpush.msra.mxu3 %v8332_v39 }
 0x715   : > { %4621 = vmatpush.msra.mxu1 %v4620_v52  ;;  %4536 = vmatpush.msra.mxu0 %v8289_v24  ;;  %v4630_v60 = vand.u32 4294901760, %v8343_v47 }
 0x716   : > { %4689 = vmatpush.msra.mxu2 %v8343_v47  ;;  %4733 = vmatpush.msra.mxu3 %v8289_v24 }
 0x717   : > { %4627 = vmatpush.msra.mxu1 %v4626_v10  ;;  %4752 = vmatpush.msrb.mxu0 %v4558_v21  ;;  %v4631_v40 = vsub.f32 %v8343_v47, %v4630_v60  ;;  %v4638_v21 = vand.u32 4294901760, %v4637_v37 }
 0x718   : > { %4692 = vmatpush.msra.mxu2 %v8315_v38  ;;  %4918 = vrot.lane.b32.xlu1 %v8817_v6, %s5261_s12 }
 0x719   : > { %4903 = vrot.lane.b32.xlu2 %v8817_v6, %s5260_s11  ;;  %4888 = vrot.lane.b32.xlu0 %v8817_v6, %s5259_s10  ;;  %v4632_v48 = vand.u32 4294901760, %v4631_v40  ;;  %v4549_v6 = vand.u32 4294901760, %v4548_v18 }
 0x71a   : > { %4756 = vmatpush.msrb.mxu0 %v4564_v50  ;;  %4695 = vmatmul.f32.vlgmr.msra.gmra.mxu2 %v8295_v29  ;;  %v4876_v50 = vpop.permute.xlu2 %4875 }
 0x71b   : > { %4633 = vmatpush.msra.mxu1 %v4632_v48  ;;  %4542 = vmatmul.f32.vlgmr.msra.gmra.mxu0 %v4541_v13 }
 0x71c   : > { %4760 = vmatpush.msrb.mxu0 %v4570_v43  ;;  %4737 = vmatmul.f32.vlgmr.msra.gmra.mxu3 %v4539_v8 }
 0x71d   : > { %4639 = vmatpush.msra.mxu1 %v4638_v21 }
 0x71e   : > { %4764 = vmatpush.msrb.mxu0 %v4576_v31  ;;  %4641 = vmatmul.f32.vlgmr.msra.gmra.mxu1 %v8270_v32 }
 0x71f   : > { %4817 = vmatpush.msrb.mxu1 %v8142_v23  ;;  %v8823_v23 = vld [vmem:[#allocation7_spill] sm:$0xff] }
 0x720   : > { %4768 = vmatpush.msrb.mxu0 %v4582_v26  ;;  %4936 = vrot.lane.b32.xlu1 %v8821_v7, %s5262_s14 }
 0x721   : > { %4920 = vrot.lane.b32.xlu2 %v8818_v61, %s5261_s12  ;;  %4905 = vrot.lane.b32.xlu0 %v8818_v61, %s5260_s11  ;;  %v8822_v61 = vld [vmem:[#allocation14_spill] sm:$0xff] }
 0x722   : > { %4772 = vmatpush.msrb.mxu0 %v4588_v36  ;;  %4819 = vmatpush.msrb.mxu1 %v8131_v58  ;;  %v8398_v58 = vsel %vm243_vm3, %v8822_v61, %v8301_v57  ;;  %vm5000_vm3 = vcmask 130048  }
 0x723   : > { %4550 = vmatmul.f32.gmra.mxu0 %v4549_v6  ;;  %4700 = vmatmul.f32.gmra.mxu2 %v4546_v20 }
 0x724   : > { %4776 = vmatpush.msrb.mxu0 %v4594_v42  ;;  %4821 = vmatpush.msrb.mxu1 %v8162_v62 }
 0x725   : > { %4743 = vmatmul.f32.gmra.mxu3 %v4547_v28 }
 0x726   : > { %4780 = vmatpush.msrb.mxu0 %v4600_v49  ;;  %4823 = vmatpush.msrb.mxu1 %v8177_v16 }
 0x727   : > { %4645 = vmatmul.f32.gmra.mxu1 %v8324_v44 }
 0x728   : > { %4784 = vmatpush.msrb.mxu0 %v4606_v2  ;;  %4825 = vmatpush.msrb.mxu1 %v8144_v0  ;;  %v4874_v0 = vpop.permute.xlu1 %4873 }
 0x729   : > { %4953 = vrot.lane.b32.xlu1 %v8398_v58, %s5263_s15  ;;  %4938 = vrot.lane.b32.xlu2 %v8398_v58, %s5262_s14 }
 0x72a   : > { %4922 = vrot.lane.b32.xlu0 %v8311_v53, %s5261_s12  ;;  %4788 = vmatpush.msrb.mxu0 %v4612_v17 }
 0x72b   : > { %4827 = vmatpush.msrb.mxu1 %v8232_v56 }
 0x72c   : > { %4792 = vmatpush.msrb.mxu0 %v4618_v25 }
 0x72d   : > { %4829 = vmatpush.msrb.mxu1 %v8209_v5 }
 0x72e   : > { %4796 = vmatpush.msrb.mxu0 %v4624_v59 }
 0x72f   : > { %4831 = vmatpush.msrb.mxu1 %v8217_v9 }
 0x730   : > { %4800 = vmatpush.msrb.mxu0 %v4630_v60  ;;  %v4891_v27 = vpop.permute.xlu1 %4890 }
 0x731   : > { %4833 = vmatpush.msrb.mxu1 %v8219_v14  ;;  %4964 = vrot.lane.b32.xlu1 %v8823_v23, %s5264_s16 }
 0x732   : > { %4949 = vrot.lane.b32.xlu2 %v8823_v23, %s5263_s15  ;;  %4934 = vrot.lane.b32.xlu0 %v8823_v23, %s5262_s14 }
 0x733   : > { %4804 = vmatpush.msrb.mxu0 %v4636_v54  ;;  %4835 = vmatpush.msrb.mxu1 %v8234_v15 }
 0x734   : > { %4806 = vmatmul.f32.vlgmr.msrb.gmra.mxu0 %v8270_v32 }
 0x735   : > { %4837 = vmatpush.msrb.mxu1 %v8245_v51 }
 0x737   : > { %4839 = vmatpush.msrb.mxu1 %v8272_v34  ;;  %v4996_v34 = vsel %vm4994_vm9, %v4876_v50, %v4891_v27 }
 0x739   : > { %4841 = vmatpush.msrb.mxu1 %v8332_v39  ;;  %4981 = vrot.lane.b32.xlu1 %v8821_v7, %s5265_s17 }
 0x73a   : > { %4966 = vrot.lane.b32.xlu2 %v8821_v7, %s5264_s16  ;;  %4951 = vrot.lane.b32.xlu0 %v8821_v7, %s5263_s15 }
 0x73b   : > { %4843 = vmatpush.msrb.mxu1 %v8289_v24 }
 0x73c   : > { %4810 = vmatmul.f32.gmra.mxu0 %v8324_v44  ;;  %4845 = vmatmul.f32.vlgmr.msrb.gmra.mxu1 %v8270_v32 }
 0x742   : > { %4968 = vrot.lane.b32.xlu0 %v8398_v58, %s5264_s16 }
 0x744   : > { %4849 = vmatmul.f32.gmra.mxu1 %v8324_v44 }
 0x76a   : > { %v4893_v62 = vpop.permute.xlu2 %4892 }
 0x773   : > { %v4904_v43 = vpop.permute.xlu2 %4903 }
 0x77b   : > { %v4921_v12 = vpop.permute.xlu2 %4920 }
 0x782   : > { %v4908_v55 = vpop.permute.xlu1 %4907 }
 0x783   : > { %v4878_v16 = vpop.permute.xlu0 %4877  ;;  %v4939_v3 = vpop.permute.xlu2 %4938 }
 0x784   : > { %v4997_v33 = vsel %vm4994_vm9, %v4878_v16, %v4893_v62 }
 0x785   : > { %v5003_v26 = vsel %vm5000_vm3, %v4997_v33, %v4908_v55 }
 0x78a   : > { %v4919_v31 = vpop.permute.xlu1 %4918 }
 0x78b   : > { %v4889_v5 = vpop.permute.xlu0 %4888 }
 0x78c   : > { %v4995_v9 = vsel %vm4994_vm9, %v4874_v0, %v4889_v5  ;;  %v4950_v2 = vpop.permute.xlu2 %4949 }
 0x78d   : > { %v5001_v14 = vsel %vm5000_vm3, %v4995_v9, %v4904_v43 }
 0x78e   : > { %v5007_v63 = vsel %vm5006_vm10, %v5001_v14, %v4919_v31 }
 0x792   : > { %v4937_v56 = vpop.permute.xlu1 %4936 }
 0x793   : > { %v4906_v15 = vpop.permute.xlu0 %4905 }
 0x794   : > { %v5002_v11 = vsel %vm5000_vm3, %v4996_v34, %v4906_v15  ;;  %v4967_v45 = vpop.permute.xlu2 %4966 }
 0x795   : > { %v5008_v59 = vsel %vm5006_vm10, %v5002_v11, %v4921_v12 }
 0x796   : > { %v5013_v38 = vsel %vm4383_vm5, %v5008_v59, %v4937_v56 }
 0x798   : > { %v4543_v49 = vpop.f32.mrf.mxu0 }
 0x79b   : > { %v4954_v46 = vpop.permute.xlu1 %4953  ;;  %v4642_v25 = vpop.f32.mrf.mxu1 }
 0x79c   : > { %v4923_v42 = vpop.permute.xlu0 %4922  ;;  %v4643_v22 = vadd.f32 %v4642_v25, %v4543_v49 }
 0x79d   : > { %v5009_v51 = vsel %vm5006_vm10, %v5003_v26, %v4923_v42  ;;  %v4696_v8 = vpop.f32.mrf.mxu2 }
 0x79e   : > { %v5014_v36 = vsel %vm4383_vm5, %v5009_v51, %v4939_v3  ;;  %v4697_v47 = vadd.f32 %v4696_v8, %v4643_v22 }
 0x79f   : > { %v8449_v4 = vsel %vm5017_vm11, %v5014_v36, %v4954_v46  ;;  %v4738_v54 = vpop.f32.mrf.mxu3 }
 0x7a0   : > { %v4551_v53 = vpop.f32.mrf.mxu0  ;;  %v4739_v20 = vadd.f32 %v4738_v54, %v4697_v47 }
 0x7a3   : > { %v4965_v35 = vpop.permute.xlu1 %4964 }
 0x7a4   : > { %v4935_v32 = vpop.permute.xlu0 %4934  ;;  %v4646_v52 = vpop.f32.mrf.mxu1 }
 0x7a5   : > { %v5012_v17 = vsel %vm4383_vm5, %v5007_v63, %v4935_v32  ;;  %v4647_v10 = vadd.f32 %v4646_v52, %v4551_v53 }
 0x7a6   : > { %v5018_v24 = vsel %vm5017_vm11, %v5012_v17, %v4950_v2  ;;  %v4701_v60 = vpop.f32.mrf.mxu2 }
 0x7a7   : > { %v5024_v29 = vsel %vm5023_vm12, %v5018_v24, %v4965_v35  ;;  %v4702_v13 = vadd.f32 %v4701_v60, %v4647_v10 }
 0x7a8   : > { %v4744_v48 = vpop.f32.mrf.mxu3 }
 0x7a9   : > { %v4745_v6 = vadd.f32 %v4744_v48, %v4702_v13 }
 0x7ab   : > { %v4982_v39 = vpop.permute.xlu1 %4981 }
 0x7ac   : > { %v4952_v19 = vpop.permute.xlu0 %4951 }
 0x7ad   : > { %v5019_v44 = vsel %vm5017_vm11, %v5013_v38, %v4952_v19 }
 0x7ae   : > { %v5025_v41 = vsel %vm5023_vm12, %v5019_v44, %v4967_v45 }
 0x7af   : > { %v5031_v1 = vsel %vm5029_vm13, %v5025_v41, %v4982_v39 }
 0x7b0   : > { %5036 = vst.msk [vmem:[%s8462_s21 + $0x8] sm:$0xff] %vm215_vm1, %v5031_v1 }
 0x7b1   : > { %v4807_v30 = vpop.f32.mrf.mxu0 }
 0x7b2   : > { %v4808_v40 = vadd.f32 %v4807_v30, %v4739_v20 }
 0x7b9   : > { %v4846_v37 = vpop.f32.mrf.mxu1  ;;  %v4811_v18 = vpop.f32.mrf.mxu0 }
 0x7ba   : > { %v4847_v28 = vadd.f32 %v4846_v37, %v4808_v40  ;;  %v4812_v7 = vadd.f32 %v4811_v18, %v4745_v6 }
 0x7bc   : > { %v4860_v21 = vrot.slane %v4847_v28, 6 }
 0x7be   : > { %4863 = vrot.lane.b32.xlu2 %v4860_v21, %s5258_s8 }
 0x7c1   : > { %v4850_v61 = vpop.f32.mrf.mxu1 }
 0x7c2   : > { %v4851_v0 = vadd.f32 %v4850_v61, %v4812_v7 }
 0x7c4   : > { %v4861_v50 = vrot.slane %v4851_v0, 6 }
 0x7c6   : > { %v4862_v27 = vsel %vm1283_vm4, %v4860_v21, %v4861_v50 }
 0x7c7   : > { %4865 = vrot.lane.b32.xlu0 %v4862_v27, %s5258_s8 }
 0x7cf   : > { %4979 = vrot.lane.b32.xlu0 %v8823_v23, %s5265_s17  ;;  %v4969_v23 = vpop.permute.xlu0 %4968 }
 0x7d0   : > { %v5026_v42 = vsel %vm5023_vm12, %v8449_v4, %v4969_v23 }
 0x818   : > { %v4864_v62 = vpop.permute.xlu2 %4863 }
 0x819   : > { %v4870_v55 = vsel %vm1283_vm4, %v8301_v57, %v4864_v62 }
 0x81a   : > { %4909 = vrot.lane.b32.xlu2 %v4870_v55, %s5260_s11  ;;  %4879 = vrot.lane.b32.xlu1 %v4870_v55, %s5244_s23 }
 0x81b   : > { %4894 = vrot.lane.b32.xlu0 %v4870_v55, %s5259_s10 }
 0x822   : > { %4955 = vrot.lane.b32.xlu2 %v4870_v55, %s5263_s15  ;;  %4924 = vrot.lane.b32.xlu1 %v4870_v55, %s5261_s12 }
 0x823   : > { %4940 = vrot.lane.b32.xlu0 %v4870_v55, %s5262_s14 }
 0x82a   : > { %4970 = vrot.lane.b32.xlu1 %v4870_v55, %s5264_s16 }
 0x839   : > { %v4866_v16 = vpop.permute.xlu0 %4865 }
 0x83a   : > { %4911 = vrot.lane.b32.xlu0 %v4866_v16, %s5260_s11  ;;  %4896 = vrot.lane.b32.xlu1 %v4866_v16, %s5259_s10 }
 0x83b   : > { %4881 = vrot.lane.b32.xlu2 %v4866_v16, %s5244_s23 }
 0x841   : > { %v4980_v57 = vpop.permute.xlu0 %4979 }
 0x842   : > { %v5030_v33 = vsel %vm5029_vm13, %v5024_v29, %v4980_v57  ;;  %4957 = vrot.lane.b32.xlu0 %v4866_v16, %s5263_s15  ;;  %4942 = vrot.lane.b32.xlu1 %v4866_v16, %s5262_s14 }
 0x843   : > { %5035 = vst.msk [vmem:[%s8462_s21] sm:$0xff] %vm215_vm1, %v5030_v33  ;;  %4926 = vrot.lane.b32.xlu2 %v4866_v16, %s5261_s12 }
 0x84a   : > { %4985 = vrot.lane.b32.xlu0 %v4870_v55, %s5265_s17  ;;  %4987 = vrot.lane.b32.xlu1 %v4866_v16, %s5265_s17 }
 0x84b   : > { %4972 = vrot.lane.b32.xlu2 %v4866_v16, %s5264_s16 }
 0x853   : > { %4983 = vrot.lane.b32.xlu2 %v8398_v58, %s5265_s17 }
 0x874   : > { %v4910_v43 = vpop.permute.xlu2 %4909 }
 0x87c   : > { %v4956_v26 = vpop.permute.xlu2 %4955 }
 0x88c   : > { %v4880_v31 = vpop.permute.xlu1 %4879 }
 0x88d   : > { %v4895_v9 = vpop.permute.xlu0 %4894 }
 0x88e   : > { %v4998_v49 = vsel %vm4994_vm9, %v4880_v31, %v4895_v9 }
 0x88f   : > { %v5004_v35 = vsel %vm5000_vm3, %v4998_v49, %v4910_v43 }
 0x894   : > { %v4925_v14 = vpop.permute.xlu1 %4924 }
 0x895   : > { %v4882_v5 = vpop.permute.xlu2 %4881  ;;  %v4941_v12 = vpop.permute.xlu0 %4940  ;;  %v5010_v17 = vsel %vm5006_vm10, %v5004_v35, %v4925_v14 }
 0x896   : > { %v5015_v24 = vsel %vm4383_vm5, %v5010_v17, %v4941_v12 }
 0x897   : > { %v5021_v29 = vsel %vm5017_vm11, %v5015_v24, %v4956_v26 }
 0x89c   : > { %v4971_v56 = vpop.permute.xlu1 %4970 }
 0x89d   : > { %v4927_v63 = vpop.permute.xlu2 %4926  ;;  %v5027_v59 = vsel %vm5023_vm12, %v5021_v29, %v4971_v56 }
 0x8a5   : > { %v4973_v15 = vpop.permute.xlu2 %4972 }
 0x8ac   : > { %v4897_v3 = vpop.permute.xlu1 %4896  ;;  %v4912_v46 = vpop.permute.xlu0 %4911 }
 0x8ad   : > { %v4984_v51 = vpop.permute.xlu2 %4983  ;;  %v4999_v58 = vsel %vm4994_vm9, %v4882_v5, %v4897_v3 }
 0x8ae   : > { %v5032_v36 = vsel %vm5029_vm13, %v5026_v42, %v4984_v51  ;;  %v5005_v2 = vsel %vm5000_vm3, %v4999_v58, %v4912_v46 }
 0x8af   : > { %5037 = vst.msk [vmem:[%s8462_s21 + $0x10] sm:$0xff] %vm215_vm1, %v5032_v36  ;;  %v5011_v4 = vsel %vm5006_vm10, %v5005_v2, %v4927_v63 }
 0x8b4   : > { %v4943_v32 = vpop.permute.xlu1 %4942  ;;  %v4958_v34 = vpop.permute.xlu0 %4957 }
 0x8b5   : > { %v5016_v11 = vsel %vm4383_vm5, %v5011_v4, %v4943_v32 }
 0x8b6   : > { %v5022_v25 = vsel %vm5017_vm11, %v5016_v11, %v4958_v34 }
 0x8b7   : > { %v5028_v38 = vsel %vm5023_vm12, %v5022_v25, %v4973_v15 }
 0x8bc   : > { %v4988_v53 = vpop.permute.xlu1 %4987  ;;  %v4986_v19 = vpop.permute.xlu0 %4985 }
 0x8bd   : > { %v5034_v45 = vsel %vm5029_vm13, %v5028_v38, %v4988_v53  ;;  %v5033_v8 = vsel %vm5029_vm13, %v5027_v59, %v4986_v19 }
 0x8be   : > { %5040 = vst.msk [vmem:[%s8462_s21 + $0x20] sm:$0x3f] %vm5039_vm14, %v5034_v45 }
 0x8bf   : > { %5038 = vst.msk [vmem:[%s8462_s21 + $0x18] sm:$0xff] %vm215_vm1, %v5033_v8 }
 0x8c0 PF: > { %s13_s9 = sadd.s32 1, %s5238_s9  }
 0x8c1   : > { %p10_p7 = scmp.ge.s32.totalorder %s13_s9, 4  }
 0x8c3   :  { %12 = sbr.rel (!%p10_p7) target bundleno = 1 (0x1), region = 68 }
 0x8c8   :  { %5062 = vsyncpa [#allocation3], 1 }
 0x8c9   :  { %5064 = vsyncpa [#allocation3 + $0x1], 1 }

</bundles_post_ra>
